<compile_context>
chip_gen: v7x
topology: tpu7x:2x2x1
jax: 0.10.0
libtpu: 0.0.40
codegen_flags: <defaults>
</compile_context>

<pallas_src>
import numpy as np
import jax
import jax.numpy as jnp
from jax.experimental import pallas as pl
from jax.experimental.pallas import tpu as pltpu

# ------------------------------ config --------------------------------------
C_FEAT   = 32          # VGG16 feature channels (real: 512)
FM_H     = 16          # feature-map height
FM_W     = 16          # feature-map width
HW       = FM_H * FM_W
ROI      = 7           # roi_region forced to 7 by the module
P        = ROI * ROI   # 49 pooled positions
P_PAD    = 128         # lane-dense padding of the pooled-position axis
FC_IN    = C_FEAT * P  # flattened roi feature (real: 512*49 = 25088)
FC_HID   = 256         # vgg16.classifier hidden width (real: 4096)
NODE_DIM = 128         # node_feature_dim (proj: Linear(FC_HID, NODE_DIM))
N_KF     = 4           # number of key-frame feature maps
N_NODES  = 3           # number of graph nodes
K        = 2           # keyframes per node (fixed here for regular shapes)
R_TOTAL  = N_NODES * K # total (node, keyframe) ROIs
AGGR     = "mean"      # global_pooling_method in {'max', 'mean', 'sum'}


# --------------------- host-side ROI-align sampling matrix ------------------
def roi_align_matrix(box, fh, fw, out_h, out_w, sampling_ratio=-1,
                     aligned=False):
    """Exact torchvision roi_align as a [fh*fw, out_h*out_w] linear map."""
    x1, y1, x2, y2 = [float(v) for v in box]
    offset = 0.5 if aligned else 0.0
    x1 -= offset; y1 -= offset; x2 -= offset; y2 -= offset
    roi_w = x2 - x1
    roi_h = y2 - y1
    if not aligned:
        roi_w = max(roi_w, 1.0)
        roi_h = max(roi_h, 1.0)
    bin_h = roi_h / out_h
    bin_w = roi_w / out_w
    grid_h = sampling_ratio if sampling_ratio > 0 else int(np.ceil(roi_h / out_h))
    grid_w = sampling_ratio if sampling_ratio > 0 else int(np.ceil(roi_w / out_w))
    grid_h = max(grid_h, 1)
    grid_w = max(grid_w, 1)
    count = grid_h * grid_w
    s_t = np.zeros((fh * fw, out_h * out_w), dtype=np.float32)  # [HW, P]
    for ph in range(out_h):
        for pw in range(out_w):
            p = ph * out_w + pw
            for iy in range(grid_h):
                y = y1 + ph * bin_h + (iy + 0.5) * bin_h / grid_h
                for ix in range(grid_w):
                    x = x1 + pw * bin_w + (ix + 0.5) * bin_w / grid_w
                    if y < -1.0 or y > fh or x < -1.0 or x > fw:
                        continue
                    yy = max(y, 0.0)
                    xx = max(x, 0.0)
                    y_low = int(yy)
                    x_low = int(xx)
                    if y_low >= fh - 1:
                        y_high = y_low = fh - 1
                        yy = float(y_low)
                    else:
                        y_high = y_low + 1
                    if x_low >= fw - 1:
                        x_high = x_low = fw - 1
                        xx = float(x_low)
                    else:
                        x_high = x_low + 1
                    ly = yy - y_low
                    lx = xx - x_low
                    hy = 1.0 - ly
                    hx = 1.0 - lx
                    s_t[y_low * fw + x_low,  p] += hy * hx / count
                    s_t[y_low * fw + x_high, p] += hy * lx / count
                    s_t[y_high * fw + x_low, p] += ly * hx / count
                    s_t[y_high * fw + x_high, p] += ly * lx / count
    return s_t


# ------------------------------ fused Pallas kernel --------------------------
def _fused_node_encoder_kernel(feat_ref, st_ref, w1_ref, b1_ref, w2_ref,
                               b2_ref, wp_ref, bp_ref, pool_ref, o_ref,
                               roi_scr):
    # feat_ref: [R, C, HW] bf16        st_ref: [R, HW, P_PAD] bf16 (cols>=49 = 0)
    # w1_ref:   [C, P_PAD, FC_HID] bf16 (rows>=49 of each c-block = 0)
    # b1_ref:   [1, FC_HID] f32        w2_ref: [FC_HID, FC_HID] bf16
    # b2_ref:   [1, FC_HID] f32        wp_ref: [FC_HID, NODE_DIM] bf16
    # bp_ref:   [1, NODE_DIM] f32      pool_ref: [N_NODES, R_TOTAL] f32
    # o_ref:    [N_NODES, NODE_DIM] f32 (lane-dense output)
    # roi_scr:  VMEM scratch [R, C, P_PAD] bf16

    # --- Stage 1: ROI align, all ROIs in one batched MXU matmul -------------
    # Lane-dense N = P_PAD = 128; padded sampling columns are exact zeros.
    roi = jnp.einsum("rch,rhp->rcp", feat_ref[...], st_ref[...],
                     preferred_element_type=jnp.float32)        # [R, C, 128] f32
    roi_scr[...] = roi.astype(jnp.bfloat16)                     # one dense store

    # --- Stage 2: vgg16.classifier[:-1] (Linear-ReLU-Drop-Linear-ReLU-Drop) --
    # FC1: h[r, j] = sum_c roi[r, c, :] @ w1_3[c]  ==  roi.view(R,-1) @ w1,
    # because w1 was re-laid-out host-side to [C, P_PAD, FC_HID].  No in-kernel
    # flatten / scatter; 32 aligned [R,128]x[128,FC_HID] dots, f32 accumulation.
    h = jnp.zeros((R_TOTAL, FC_HID), jnp.float32)
    for c in range(C_FEAT):
        h = h + jnp.dot(roi_scr[:, c, :], w1_ref[c],
                        preferred_element_type=jnp.float32)
    h = jnp.maximum(h + b1_ref[...], 0.0)                       # ReLU (+Dropout=id)

    # FC2
    h = jnp.dot(h.astype(jnp.bfloat16), w2_ref[...],
                preferred_element_type=jnp.float32) + b2_ref[...]
    h = jnp.maximum(h, 0.0)                                     # ReLU (+Dropout=id)

    # --- Stage 3: projection Linear(FC_HID, NODE_DIM) ------------------------
    p = jnp.dot(h.astype(jnp.bfloat16), wp_ref[...],
                preferred_element_type=jnp.float32) + bp_ref[...]   # [R, NODE_DIM]

    # --- Stage 4: per-node pooling over each node's K keyframes --------------
    if AGGR in ("mean", "sum"):
        # pooling as a tiny matmul -> single dense [N_NODES, NODE_DIM] store
        o_ref[...] = jnp.dot(pool_ref[...], p,
                             preferred_element_type=jnp.float32)
    else:  # 'max' (pool matrix unused) -- 3 lane-dense row stores
        for n in range(N_NODES):
            rows = p[n * K:(n + 1) * K, :]
            o_ref[pl.ds(n, 1), :] = jnp.max(rows, axis=0, keepdims=True)


def fused_node_encoder_pallas(sel_feats_bf16, s_pad_bf16, kparams, pool_mat):
    """sel_feats_bf16: [R, C, HW] bf16, s_pad_bf16: [R, HW, P_PAD] bf16
       -> nodes_feature [N_NODES, NODE_DIM] f32."""
    w1_3, b1, w2, b2, wp, bp = kparams

    flops = (2 * R_TOTAL * C_FEAT * HW * P_PAD
             + 2 * R_TOTAL * (C_FEAT * P_PAD) * FC_HID
             + 2 * R_TOTAL * FC_HID * FC_HID
             + 2 * R_TOTAL * FC_HID * NODE_DIM
             + 2 * N_NODES * R_TOTAL * NODE_DIM)
    bytes_accessed = (sel_feats_bf16.size * 2 + s_pad_bf16.size * 2
                      + w1_3.size * 2 + w2.size * 2 + wp.size * 2
                      + (b1.size + b2.size + bp.size + pool_mat.size) * 4
                      + N_NODES * NODE_DIM * 4)

    return pl.pallas_call(
        _fused_node_encoder_kernel,
        out_shape=jax.ShapeDtypeStruct((N_NODES, NODE_DIM), jnp.float32),
        grid=(1,),   # single fused step: all rois/nodes batched (M=R matmuls)
        in_specs=[
            pl.BlockSpec((R_TOTAL, C_FEAT, HW), lambda i: (0, 0, 0)),
            pl.BlockSpec((R_TOTAL, HW, P_PAD), lambda i: (0, 0, 0)),
            pl.BlockSpec((C_FEAT, P_PAD, FC_HID), lambda i: (0, 0, 0)),
            pl.BlockSpec((1, FC_HID), lambda i: (0, 0)),
            pl.BlockSpec((FC_HID, FC_HID), lambda i: (0, 0)),
            pl.BlockSpec((1, FC_HID), lambda i: (0, 0)),
            pl.BlockSpec((FC_HID, NODE_DIM), lambda i: (0, 0)),
            pl.BlockSpec((1, NODE_DIM), lambda i: (0, 0)),
            pl.BlockSpec((N_NODES, R_TOTAL), lambda i: (0, 0)),
        ],
        out_specs=pl.BlockSpec((N_NODES, NODE_DIM), lambda i: (0, 0)),
        scratch_shapes=[pltpu.VMEM((R_TOTAL, C_FEAT, P_PAD), jnp.bfloat16)],
        compiler_params=pltpu.CompilerParams(
            dimension_semantics=("arbitrary",)),
        cost_estimate=pl.CostEstimate(flops=flops, transcendentals=0,
                                      bytes_accessed=bytes_accessed),
    )(sel_feats_bf16, s_pad_bf16, w1_3, b1, w2, b2, wp, bp, pool_mat)


# ------------------------------ parameters -----------------------------------
def init_params(key):
    ks = jax.random.split(key, 6)
    w1 = jax.random.normal(ks[0], (FC_IN, FC_HID), jnp.float32) / np.sqrt(FC_IN)
    b1 = jax.random.normal(ks[1], (1, FC_HID), jnp.float32) * 0.01
    w2 = jax.random.normal(ks[2], (FC_HID, FC_HID), jnp.float32) / np.sqrt(FC_HID)
    b2 = jax.random.normal(ks[3], (1, FC_HID), jnp.float32) * 0.01
    wp = jax.random.normal(ks[4], (FC_HID, NODE_DIM), jnp.float32) / np.sqrt(FC_HID)
    bp = jax.random.normal(ks[5], (1, NODE_DIM), jnp.float32) * 0.01
    return (w1, b1, w2, b2, wp, bp)


def prepare_params_for_kernel(params):
    """Re-lay w1 rows out at stride P_PAD=128 ([C, P_PAD, FC_HID], zero pad
    rows) so the kernel never has to flatten the [C, P] roi tensor, and cast
    matmul operands to bf16 (biases stay f32)."""
    w1, b1, w2, b2, wp, bp = params
    w1_3 = np.zeros((C_FEAT, P_PAD, FC_HID), np.float32)
    w1_3[:, :P, :] = np.asarray(w1).reshape(C_FEAT, P, FC_HID)
    return (jnp.asarray(w1_3, jnp.bfloat16), b1,
            w2.astype(jnp.bfloat16), b2,
            wp.astype(jnp.bfloat16), bp)


def make_pool_matrix():
    """[N_NODES, R_TOTAL] pooling matrix (mean/sum); unused for 'max'."""
    m = np.zeros((N_NODES, R_TOTAL), np.float32)
    w = (1.0 / K) if AGGR == "mean" else 1.0
    for n in range(N_NODES):
        m[n, n * K:(n + 1) * K] = w
    return jnp.asarray(m)


# ------------------------------ forward glue ---------------------------------
def preprocess(img_features, bboxes):
    """Select per-(node, keyframe) feature maps and build zero-padded
    lane-dense ROI sampling maps ([HW, P_PAD], cols >= 49 are zero)."""
    width, height = img_features.shape[-1], img_features.shape[-2]
    feats_flat = np.asarray(img_features).reshape(img_features.shape[0],
                                                  C_FEAT, HW)
    sel, smats = [], []
    for node_idx in range(len(bboxes)):
        kf2box = bboxes[node_idx]
        for kf_idx, box in kf2box.items():
            b = np.asarray(box, np.float32).reshape(4).copy()
            # scale bounding box with the current feature map size
            b[0] *= width
            b[1] *= height
            b[2] *= width
            b[3] *= height
            sel.append(feats_flat[kf_idx])
            s_pad = np.zeros((HW, P_PAD), np.float32)
            s_pad[:, :P] = roi_align_matrix(b, FM_H, FM_W, ROI, ROI)
            smats.append(s_pad)
    sel_feats = jnp.asarray(np.stack(sel))            # [R, C, HW] f32
    s_mats_pad = jnp.asarray(np.stack(smats))         # [R, HW, P_PAD] f32
    return sel_feats, s_mats_pad


def node_encoder_vgg16_forward(img_features, bboxes, params):
    sel_feats, s_mats_pad = preprocess(img_features, bboxes)
    kparams = prepare_params_for_kernel(params)
    pool_mat = make_pool_matrix()
    return fused_node_encoder_pallas(sel_feats.astype(jnp.bfloat16),
                                     s_mats_pad.astype(jnp.bfloat16),
                                     kparams, pool_mat)   # [N_NODES, NODE_DIM]


def reference_forward(img_features, bboxes, params):
    """Pure-JAX reference mirroring the kernel numerics (bf16 operands,
    f32 accumulation), using the un-padded torch-style (c, p) flatten."""
    sel_feats, s_mats_pad = preprocess(img_features, bboxes)
    w1, b1, w2, b2, wp, bp = params
    feats_bf = sel_feats.astype(jnp.bfloat16)
    s_bf = s_mats_pad[:, :, :P].astype(jnp.bfloat16)
    roi = jnp.einsum("rch,rhp->rcp", feats_bf, s_bf,
                     preferred_element_type=jnp.float32)        # [R, C, P]
    x = roi.reshape(R_TOTAL, FC_IN).astype(jnp.bfloat16)        # (c, p) flatten
    h = jnp.maximum(jnp.dot(x, w1.astype(jnp.bfloat16),
                            preferred_element_type=jnp.float32) + b1, 0.0)
    h = jnp.maximum(jnp.dot(h.astype(jnp.bfloat16), w2.astype(jnp.bfloat16),
                            preferred_element_type=jnp.float32) + b2, 0.0)
    p = jnp.dot(h.astype(jnp.bfloat16), wp.astype(jnp.bfloat16),
                preferred_element_type=jnp.float32) + bp        # [R, NODE_DIM]
    p = p.reshape(N_NODES, K, NODE_DIM)
    if AGGR == "max":
        return p.max(axis=1)
    if AGGR == "mean":
        return p.mean(axis=1)
    return p.sum(axis=1)


# ------------------------------ main -----------------------------------------
if __name__ == "__main__":
    key = jax.random.PRNGKey(0)
    k_img, k_par = jax.random.split(key)

    # precomputed image features (with_precompute=True path), NCHW
    img_features = jax.random.normal(k_img, (N_KF, C_FEAT, FM_H, FM_W),
                                     jnp.float32)

    # bboxes: list (per node) of {keyframe_index: normalized [x1,y1,x2,y2]}
    bboxes = [
        {0: np.array([0.10, 0.15, 0.60, 0.70], np.float32),
         1: np.array([0.05, 0.05, 0.45, 0.55], np.float32)},
        {1: np.array([0.30, 0.20, 0.90, 0.80], np.float32),
         2: np.array([0.25, 0.30, 0.75, 0.95], np.float32)},
        {2: np.array([0.00, 0.00, 0.50, 0.50], np.float32),
         3: np.array([0.40, 0.35, 0.85, 0.90], np.float32)},
    ]
    edges = None  # unused by the forward pass

    params = init_params(k_par)

    nodes_feature = node_encoder_vgg16_forward(img_features, bboxes, params)
    nodes_feature = jax.block_until_ready(nodes_feature)

    ref = jax.block_until_ready(reference_forward(img_features, bboxes, params))

    assert nodes_feature.shape == (N_NODES, NODE_DIM)
    assert bool(jnp.all(jnp.isfinite(nodes_feature)))
    np.testing.assert_allclose(np.asarray(nodes_feature), np.asarray(ref),
                               rtol=1e-2, atol=1e-2)

    print("KERNEL_OK")
</pallas_src>

<mosaic_0001>
module attributes {stable_mosaic.version = 11 : i64} {
  func.func @_fused_node_encoder_kernel(%arg0: i32, %arg1: memref<6x32x256xbf16, #tpu.memory_space<vmem>>, %arg2: memref<6x256x128xbf16, #tpu.memory_space<vmem>>, %arg3: memref<32x128x256xbf16, #tpu.memory_space<vmem>>, %arg4: memref<1x256xf32, #tpu.memory_space<vmem>>, %arg5: memref<256x256xbf16, #tpu.memory_space<vmem>>, %arg6: memref<1x256xf32, #tpu.memory_space<vmem>>, %arg7: memref<256x128xbf16, #tpu.memory_space<vmem>>, %arg8: memref<1x128xf32, #tpu.memory_space<vmem>>, %arg9: memref<3x6xf32, #tpu.memory_space<vmem>>, %arg10: memref<3x128xf32, #tpu.memory_space<vmem>>, %arg11: memref<6x32x128xbf16, #tpu.memory_space<vmem>>) attributes {dimension_semantics = [#tpu.dimension_semantics<arbitrary>], iteration_bounds = array<i64: 1>, scalar_prefetch = 0 : i64, scratch_operands = 1 : i64, tpu.core_type = #tpu.core_type<tc>, window_params = [{pipeline_mode = #tpu.pipeline_mode<synchronous>, transform_indices = @transform_0, window_bounds = array<i64: 6, 32, 256>}, {pipeline_mode = #tpu.pipeline_mode<synchronous>, transform_indices = @transform_1, window_bounds = array<i64: 6, 256, 128>}, {pipeline_mode = #tpu.pipeline_mode<synchronous>, transform_indices = @transform_2, window_bounds = array<i64: 32, 128, 256>}, {pipeline_mode = #tpu.pipeline_mode<synchronous>, transform_indices = @transform_3, window_bounds = array<i64: 1, 256>}, {pipeline_mode = #tpu.pipeline_mode<synchronous>, transform_indices = @transform_4, window_bounds = array<i64: 256, 256>}, {pipeline_mode = #tpu.pipeline_mode<synchronous>, transform_indices = @transform_5, window_bounds = array<i64: 1, 256>}, {pipeline_mode = #tpu.pipeline_mode<synchronous>, transform_indices = @transform_6, window_bounds = array<i64: 256, 128>}, {pipeline_mode = #tpu.pipeline_mode<synchronous>, transform_indices = @transform_7, window_bounds = array<i64: 1, 128>}, {pipeline_mode = #tpu.pipeline_mode<synchronous>, transform_indices = @transform_8, window_bounds = array<i64: 3, 6>}, {pipeline_mode = #tpu.pipeline_mode<synchronous>, transform_indices = @transform_9, window_bounds = array<i64: 3, 128>}]} {
    %c0 = arith.constant 0 : index
    %c0_0 = arith.constant 0 : index
    %c0_1 = arith.constant 0 : index
    %0 = vector.load %arg1[%c0, %c0_0, %c0_1] : memref<6x32x256xbf16, #tpu.memory_space<vmem>>, vector<6x32x256xbf16>
    %c0_2 = arith.constant 0 : index
    %c0_3 = arith.constant 0 : index
    %c0_4 = arith.constant 0 : index
    %1 = vector.load %arg2[%c0_2, %c0_3, %c0_4] : memref<6x256x128xbf16, #tpu.memory_space<vmem>>, vector<6x256x128xbf16>
    "tpu.trace_start"() <{level = 10 : i32, message = "rch,rhp->rcp"}> : () -> ()
    %cst = arith.constant dense<0.000000e+00> : vector<6x32x128xf32>
    %2 = tpu.matmul %0, %1, %cst {dimension_numbers = #tpu.dot_dimension_numbers<[2], [1], [1], [2], [0, 0, 0, 1, 1, 2], [0], [0]>} : vector<6x32x256xbf16>, vector<6x256x128xbf16>, vector<6x32x128xf32> -> vector<6x32x128xf32>
    "tpu.trace_stop"() : () -> ()
    %3 = arith.truncf %2 : vector<6x32x128xf32> to vector<6x32x128xbf16>
    %c0_5 = arith.constant 0 : index
    %c0_6 = arith.constant 0 : index
    %c0_7 = arith.constant 0 : index
    %4 = vector.load %arg11[%c0_5, %c0_6, %c0_7] : memref<6x32x128xbf16, #tpu.memory_space<vmem>>, vector<6x32x128xbf16>
    tpu.vector_store %arg11[%c0_5, %c0_6, %c0_7], %3 {strides = array<i32>} : memref<6x32x128xbf16, #tpu.memory_space<vmem>>, vector<6x32x128xbf16>,
    %cst_8 = arith.constant 0.000000e+00 : f32
    %5 = vector.broadcast %cst_8 : f32 to vector<6x256xf32>
    %c0_9 = arith.constant 0 : index
    %c0_10 = arith.constant 0 : index
    %c0_11 = arith.constant 0 : index
    %6 = vector.load %arg11[%c0_9, %c0_10, %c0_11] : memref<6x32x128xbf16, #tpu.memory_space<vmem>>, vector<6x1x128xbf16>
    %7 = vector.shape_cast %6 : vector<6x1x128xbf16> to vector<6x128xbf16>
    %c0_12 = arith.constant 0 : index
    %c0_13 = arith.constant 0 : index
    %c0_14 = arith.constant 0 : index
    %8 = vector.load %arg3[%c0_12, %c0_13, %c0_14] : memref<32x128x256xbf16, #tpu.memory_space<vmem>>, vector<1x128x256xbf16>
    %9 = vector.shape_cast %8 : vector<1x128x256xbf16> to vector<128x256xbf16>
    %cst_15 = arith.constant dense<0.000000e+00> : vector<6x256xf32>
    %10 = tpu.matmul %7, %9, %cst_15 {dimension_numbers = #tpu.dot_dimension_numbers<[1], [0], [0], [1], [0, 0, 1, 1], [], []>} : vector<6x128xbf16>, vector<128x256xbf16>, vector<6x256xf32> -> vector<6x256xf32>
    %11 = arith.addf %5, %10 : vector<6x256xf32>
    %c0_16 = arith.constant 0 : index
    %c1 = arith.constant 1 : index
    %c0_17 = arith.constant 0 : index
    %12 = vector.load %arg11[%c0_16, %c1, %c0_17] : memref<6x32x128xbf16, #tpu.memory_space<vmem>>, vector<6x1x128xbf16>
    %13 = vector.shape_cast %12 : vector<6x1x128xbf16> to vector<6x128xbf16>
    %c1_18 = arith.constant 1 : index
    %c0_19 = arith.constant 0 : index
    %c0_20 = arith.constant 0 : index
    %14 = vector.load %arg3[%c1_18, %c0_19, %c0_20] : memref<32x128x256xbf16, #tpu.memory_space<vmem>>, vector<1x128x256xbf16>
    %15 = vector.shape_cast %14 : vector<1x128x256xbf16> to vector<128x256xbf16>
    %cst_21 = arith.constant dense<0.000000e+00> : vector<6x256xf32>
    %16 = tpu.matmul %13, %15, %cst_21 {dimension_numbers = #tpu.dot_dimension_numbers<[1], [0], [0], [1], [0, 0, 1, 1], [], []>} : vector<6x128xbf16>, vector<128x256xbf16>, vector<6x256xf32> -> vector<6x256xf32>
    %17 = arith.addf %11, %16 : vector<6x256xf32>
    %c0_22 = arith.constant 0 : index
    %c2 = arith.constant 2 : index
    %c0_23 = arith.constant 0 : index
    %18 = vector.load %arg11[%c0_22, %c2, %c0_23] : memref<6x32x128xbf16, #tpu.memory_space<vmem>>, vector<6x1x128xbf16>
    %19 = vector.shape_cast %18 : vector<6x1x128xbf16> to vector<6x128xbf16>
    %c2_24 = arith.constant 2 : index
    %c0_25 = arith.constant 0 : index
    %c0_26 = arith.constant 0 : index
    %20 = vector.load %arg3[%c2_24, %c0_25, %c0_26] : memref<32x128x256xbf16, #tpu.memory_space<vmem>>, vector<1x128x256xbf16>
    %21 = vector.shape_cast %20 : vector<1x128x256xbf16> to vector<128x256xbf16>
    %cst_27 = arith.constant dense<0.000000e+00> : vector<6x256xf32>
    %22 = tpu.matmul %19, %21, %cst_27 {dimension_numbers = #tpu.dot_dimension_numbers<[1], [0], [0], [1], [0, 0, 1, 1], [], []>} : vector<6x128xbf16>, vector<128x256xbf16>, vector<6x256xf32> -> vector<6x256xf32>
    %23 = arith.addf %17, %22 : vector<6x256xf32>
    %c0_28 = arith.constant 0 : index
    %c3 = arith.constant 3 : index
    %c0_29 = arith.constant 0 : index
    %24 = vector.load %arg11[%c0_28, %c3, %c0_29] : memref<6x32x128xbf16, #tpu.memory_space<vmem>>, vector<6x1x128xbf16>
    %25 = vector.shape_cast %24 : vector<6x1x128xbf16> to vector<6x128xbf16>
    %c3_30 = arith.constant 3 : index
    %c0_31 = arith.constant 0 : index
    %c0_32 = arith.constant 0 : index
    %26 = vector.load %arg3[%c3_30, %c0_31, %c0_32] : memref<32x128x256xbf16, #tpu.memory_space<vmem>>, vector<1x128x256xbf16>
    %27 = vector.shape_cast %26 : vector<1x128x256xbf16> to vector<128x256xbf16>
    %cst_33 = arith.constant dense<0.000000e+00> : vector<6x256xf32>
    %28 = tpu.matmul %25, %27, %cst_33 {dimension_numbers = #tpu.dot_dimension_numbers<[1], [0], [0], [1], [0, 0, 1, 1], [], []>} : vector<6x128xbf16>, vector<128x256xbf16>, vector<6x256xf32> -> vector<6x256xf32>
    %29 = arith.addf %23, %28 : vector<6x256xf32>
    %c0_34 = arith.constant 0 : index
    %c4 = arith.constant 4 : index
    %c0_35 = arith.constant 0 : index
    %30 = vector.load %arg11[%c0_34, %c4, %c0_35] : memref<6x32x128xbf16, #tpu.memory_space<vmem>>, vector<6x1x128xbf16>
    %31 = vector.shape_cast %30 : vector<6x1x128xbf16> to vector<6x128xbf16>
    %c4_36 = arith.constant 4 : index
    %c0_37 = arith.constant 0 : index
    %c0_38 = arith.constant 0 : index
    %32 = vector.load %arg3[%c4_36, %c0_37, %c0_38] : memref<32x128x256xbf16, #tpu.memory_space<vmem>>, vector<1x128x256xbf16>
    %33 = vector.shape_cast %32 : vector<1x128x256xbf16> to vector<128x256xbf16>
    %cst_39 = arith.constant dense<0.000000e+00> : vector<6x256xf32>
    %34 = tpu.matmul %31, %33, %cst_39 {dimension_numbers = #tpu.dot_dimension_numbers<[1], [0], [0], [1], [0, 0, 1, 1], [], []>} : vector<6x128xbf16>, vector<128x256xbf16>, vector<6x256xf32> -> vector<6x256xf32>
    %35 = arith.addf %29, %34 : vector<6x256xf32>
    %c0_40 = arith.constant 0 : index
    %c5 = arith.constant 5 : index
    %c0_41 = arith.constant 0 : index
    %36 = vector.load %arg11[%c0_40, %c5, %c0_41] : memref<6x32x128xbf16, #tpu.memory_space<vmem>>, vector<6x1x128xbf16>
    %37 = vector.shape_cast %36 : vector<6x1x128xbf16> to vector<6x128xbf16>
    %c5_42 = arith.constant 5 : index
    %c0_43 = arith.constant 0 : index
    %c0_44 = arith.constant 0 : index
    %38 = vector.load %arg3[%c5_42, %c0_43, %c0_44] : memref<32x128x256xbf16, #tpu.memory_space<vmem>>, vector<1x128x256xbf16>
    %39 = vector.shape_cast %38 : vector<1x128x256xbf16> to vector<128x256xbf16>
    %cst_45 = arith.constant dense<0.000000e+00> : vector<6x256xf32>
    %40 = tpu.matmul %37, %39, %cst_45 {dimension_numbers = #tpu.dot_dimension_numbers<[1], [0], [0], [1], [0, 0, 1, 1], [], []>} : vector<6x128xbf16>, vector<128x256xbf16>, vector<6x256xf32> -> vector<6x256xf32>
    %41 = arith.addf %35, %40 : vector<6x256xf32>
    %c0_46 = arith.constant 0 : index
    %c6 = arith.constant 6 : index
    %c0_47 = arith.constant 0 : index
    %42 = vector.load %arg11[%c0_46, %c6, %c0_47] : memref<6x32x128xbf16, #tpu.memory_space<vmem>>, vector<6x1x128xbf16>
    %43 = vector.shape_cast %42 : vector<6x1x128xbf16> to vector<6x128xbf16>
    %c6_48 = arith.constant 6 : index
    %c0_49 = arith.constant 0 : index
    %c0_50 = arith.constant 0 : index
    %44 = vector.load %arg3[%c6_48, %c0_49, %c0_50] : memref<32x128x256xbf16, #tpu.memory_space<vmem>>, vector<1x128x256xbf16>
    %45 = vector.shape_cast %44 : vector<1x128x256xbf16> to vector<128x256xbf16>
    %cst_51 = arith.constant dense<0.000000e+00> : vector<6x256xf32>
    %46 = tpu.matmul %43, %45, %cst_51 {dimension_numbers = #tpu.dot_dimension_numbers<[1], [0], [0], [1], [0, 0, 1, 1], [], []>} : vector<6x128xbf16>, vector<128x256xbf16>, vector<6x256xf32> -> vector<6x256xf32>
    %47 = arith.addf %41, %46 : vector<6x256xf32>
    %c0_52 = arith.constant 0 : index
    %c7 = arith.constant 7 : index
    %c0_53 = arith.constant 0 : index
    %48 = vector.load %arg11[%c0_52, %c7, %c0_53] : memref<6x32x128xbf16, #tpu.memory_space<vmem>>, vector<6x1x128xbf16>
    %49 = vector.shape_cast %48 : vector<6x1x128xbf16> to vector<6x128xbf16>
    %c7_54 = arith.constant 7 : index
    %c0_55 = arith.constant 0 : index
    %c0_56 = arith.constant 0 : index
    %50 = vector.load %arg3[%c7_54, %c0_55, %c0_56] : memref<32x128x256xbf16, #tpu.memory_space<vmem>>, vector<1x128x256xbf16>
    %51 = vector.shape_cast %50 : vector<1x128x256xbf16> to vector<128x256xbf16>
    %cst_57 = arith.constant dense<0.000000e+00> : vector<6x256xf32>
    %52 = tpu.matmul %49, %51, %cst_57 {dimension_numbers = #tpu.dot_dimension_numbers<[1], [0], [0], [1], [0, 0, 1, 1], [], []>} : vector<6x128xbf16>, vector<128x256xbf16>, vector<6x256xf32> -> vector<6x256xf32>
    %53 = arith.addf %47, %52 : vector<6x256xf32>
    %c0_58 = arith.constant 0 : index
    %c8 = arith.constant 8 : index
    %c0_59 = arith.constant 0 : index
    %54 = vector.load %arg11[%c0_58, %c8, %c0_59] : memref<6x32x128xbf16, #tpu.memory_space<vmem>>, vector<6x1x128xbf16>
    %55 = vector.shape_cast %54 : vector<6x1x128xbf16> to vector<6x128xbf16>
    %c8_60 = arith.constant 8 : index
    %c0_61 = arith.constant 0 : index
    %c0_62 = arith.constant 0 : index
    %56 = vector.load %arg3[%c8_60, %c0_61, %c0_62] : memref<32x128x256xbf16, #tpu.memory_space<vmem>>, vector<1x128x256xbf16>
    %57 = vector.shape_cast %56 : vector<1x128x256xbf16> to vector<128x256xbf16>
    %cst_63 = arith.constant dense<0.000000e+00> : vector<6x256xf32>
    %58 = tpu.matmul %55, %57, %cst_63 {dimension_numbers = #tpu.dot_dimension_numbers<[1], [0], [0], [1], [0, 0, 1, 1], [], []>} : vector<6x128xbf16>, vector<128x256xbf16>, vector<6x256xf32> -> vector<6x256xf32>
    %59 = arith.addf %53, %58 : vector<6x256xf32>
    %c0_64 = arith.constant 0 : index
    %c9 = arith.constant 9 : index
    %c0_65 = arith.constant 0 : index
    %60 = vector.load %arg11[%c0_64, %c9, %c0_65] : memref<6x32x128xbf16, #tpu.memory_space<vmem>>, vector<6x1x128xbf16>
    %61 = vector.shape_cast %60 : vector<6x1x128xbf16> to vector<6x128xbf16>
    %c9_66 = arith.constant 9 : index
    %c0_67 = arith.constant 0 : index
    %c0_68 = arith.constant 0 : index
    %62 = vector.load %arg3[%c9_66, %c0_67, %c0_68] : memref<32x128x256xbf16, #tpu.memory_space<vmem>>, vector<1x128x256xbf16>
    %63 = vector.shape_cast %62 : vector<1x128x256xbf16> to vector<128x256xbf16>
    %cst_69 = arith.constant dense<0.000000e+00> : vector<6x256xf32>
    %64 = tpu.matmul %61, %63, %cst_69 {dimension_numbers = #tpu.dot_dimension_numbers<[1], [0], [0], [1], [0, 0, 1, 1], [], []>} : vector<6x128xbf16>, vector<128x256xbf16>, vector<6x256xf32> -> vector<6x256xf32>
    %65 = arith.addf %59, %64 : vector<6x256xf32>
    %c0_70 = arith.constant 0 : index
    %c10 = arith.constant 10 : index
    %c0_71 = arith.constant 0 : index
    %66 = vector.load %arg11[%c0_70, %c10, %c0_71] : memref<6x32x128xbf16, #tpu.memory_space<vmem>>, vector<6x1x128xbf16>
    %67 = vector.shape_cast %66 : vector<6x1x128xbf16> to vector<6x128xbf16>
    %c10_72 = arith.constant 10 : index
    %c0_73 = arith.constant 0 : index
    %c0_74 = arith.constant 0 : index
    %68 = vector.load %arg3[%c10_72, %c0_73, %c0_74] : memref<32x128x256xbf16, #tpu.memory_space<vmem>>, vector<1x128x256xbf16>
    %69 = vector.shape_cast %68 : vector<1x128x256xbf16> to vector<128x256xbf16>
    %cst_75 = arith.constant dense<0.000000e+00> : vector<6x256xf32>
    %70 = tpu.matmul %67, %69, %cst_75 {dimension_numbers = #tpu.dot_dimension_numbers<[1], [0], [0], [1], [0, 0, 1, 1], [], []>} : vector<6x128xbf16>, vector<128x256xbf16>, vector<6x256xf32> -> vector<6x256xf32>
    %71 = arith.addf %65, %70 : vector<6x256xf32>
    %c0_76 = arith.constant 0 : index
    %c11 = arith.constant 11 : index
    %c0_77 = arith.constant 0 : index
    %72 = vector.load %arg11[%c0_76, %c11, %c0_77] : memref<6x32x128xbf16, #tpu.memory_space<vmem>>, vector<6x1x128xbf16>
    %73 = vector.shape_cast %72 : vector<6x1x128xbf16> to vector<6x128xbf16>
    %c11_78 = arith.constant 11 : index
    %c0_79 = arith.constant 0 : index
    %c0_80 = arith.constant 0 : index
    %74 = vector.load %arg3[%c11_78, %c0_79, %c0_80] : memref<32x128x256xbf16, #tpu.memory_space<vmem>>, vector<1x128x256xbf16>
    %75 = vector.shape_cast %74 : vector<1x128x256xbf16> to vector<128x256xbf16>
    %cst_81 = arith.constant dense<0.000000e+00> : vector<6x256xf32>
    %76 = tpu.matmul %73, %75, %cst_81 {dimension_numbers = #tpu.dot_dimension_numbers<[1], [0], [0], [1], [0, 0, 1, 1], [], []>} : vector<6x128xbf16>, vector<128x256xbf16>, vector<6x256xf32> -> vector<6x256xf32>
    %77 = arith.addf %71, %76 : vector<6x256xf32>
    %c0_82 = arith.constant 0 : index
    %c12 = arith.constant 12 : index
    %c0_83 = arith.constant 0 : index
    %78 = vector.load %arg11[%c0_82, %c12, %c0_83] : memref<6x32x128xbf16, #tpu.memory_space<vmem>>, vector<6x1x128xbf16>
    %79 = vector.shape_cast %78 : vector<6x1x128xbf16> to vector<6x128xbf16>
    %c12_84 = arith.constant 12 : index
    %c0_85 = arith.constant 0 : index
    %c0_86 = arith.constant 0 : index
    %80 = vector.load %arg3[%c12_84, %c0_85, %c0_86] : memref<32x128x256xbf16, #tpu.memory_space<vmem>>, vector<1x128x256xbf16>
    %81 = vector.shape_cast %80 : vector<1x128x256xbf16> to vector<128x256xbf16>
    %cst_87 = arith.constant dense<0.000000e+00> : vector<6x256xf32>
    %82 = tpu.matmul %79, %81, %cst_87 {dimension_numbers = #tpu.dot_dimension_numbers<[1], [0], [0], [1], [0, 0, 1, 1], [], []>} : vector<6x128xbf16>, vector<128x256xbf16>, vector<6x256xf32> -> vector<6x256xf32>
    %83 = arith.addf %77, %82 : vector<6x256xf32>
    %c0_88 = arith.constant 0 : index
    %c13 = arith.constant 13 : index
    %c0_89 = arith.constant 0 : index
    %84 = vector.load %arg11[%c0_88, %c13, %c0_89] : memref<6x32x128xbf16, #tpu.memory_space<vmem>>, vector<6x1x128xbf16>
    %85 = vector.shape_cast %84 : vector<6x1x128xbf16> to vector<6x128xbf16>
    %c13_90 = arith.constant 13 : index
    %c0_91 = arith.constant 0 : index
    %c0_92 = arith.constant 0 : index
    %86 = vector.load %arg3[%c13_90, %c0_91, %c0_92] : memref<32x128x256xbf16, #tpu.memory_space<vmem>>, vector<1x128x256xbf16>
    %87 = vector.shape_cast %86 : vector<1x128x256xbf16> to vector<128x256xbf16>
    %cst_93 = arith.constant dense<0.000000e+00> : vector<6x256xf32>
    %88 = tpu.matmul %85, %87, %cst_93 {dimension_numbers = #tpu.dot_dimension_numbers<[1], [0], [0], [1], [0, 0, 1, 1], [], []>} : vector<6x128xbf16>, vector<128x256xbf16>, vector<6x256xf32> -> vector<6x256xf32>
    %89 = arith.addf %83, %88 : vector<6x256xf32>
    %c0_94 = arith.constant 0 : index
    %c14 = arith.constant 14 : index
    %c0_95 = arith.constant 0 : index
    %90 = vector.load %arg11[%c0_94, %c14, %c0_95] : memref<6x32x128xbf16, #tpu.memory_space<vmem>>, vector<6x1x128xbf16>
    %91 = vector.shape_cast %90 : vector<6x1x128xbf16> to vector<6x128xbf16>
    %c14_96 = arith.constant 14 : index
    %c0_97 = arith.constant 0 : index
    %c0_98 = arith.constant 0 : index
    %92 = vector.load %arg3[%c14_96, %c0_97, %c0_98] : memref<32x128x256xbf16, #tpu.memory_space<vmem>>, vector<1x128x256xbf16>
    %93 = vector.shape_cast %92 : vector<1x128x256xbf16> to vector<128x256xbf16>
    %cst_99 = arith.constant dense<0.000000e+00> : vector<6x256xf32>
    %94 = tpu.matmul %91, %93, %cst_99 {dimension_numbers = #tpu.dot_dimension_numbers<[1], [0], [0], [1], [0, 0, 1, 1], [], []>} : vector<6x128xbf16>, vector<128x256xbf16>, vector<6x256xf32> -> vector<6x256xf32>
    %95 = arith.addf %89, %94 : vector<6x256xf32>
    %c0_100 = arith.constant 0 : index
    %c15 = arith.constant 15 : index
    %c0_101 = arith.constant 0 : index
    %96 = vector.load %arg11[%c0_100, %c15, %c0_101] : memref<6x32x128xbf16, #tpu.memory_space<vmem>>, vector<6x1x128xbf16>
    %97 = vector.shape_cast %96 : vector<6x1x128xbf16> to vector<6x128xbf16>
    %c15_102 = arith.constant 15 : index
    %c0_103 = arith.constant 0 : index
    %c0_104 = arith.constant 0 : index
    %98 = vector.load %arg3[%c15_102, %c0_103, %c0_104] : memref<32x128x256xbf16, #tpu.memory_space<vmem>>, vector<1x128x256xbf16>
    %99 = vector.shape_cast %98 : vector<1x128x256xbf16> to vector<128x256xbf16>
    %cst_105 = arith.constant dense<0.000000e+00> : vector<6x256xf32>
    %100 = tpu.matmul %97, %99, %cst_105 {dimension_numbers = #tpu.dot_dimension_numbers<[1], [0], [0], [1], [0, 0, 1, 1], [], []>} : vector<6x128xbf16>, vector<128x256xbf16>, vector<6x256xf32> -> vector<6x256xf32>
    %101 = arith.addf %95, %100 : vector<6x256xf32>
    %c0_106 = arith.constant 0 : index
    %c16 = arith.constant 16 : index
    %c0_107 = arith.constant 0 : index
    %102 = vector.load %arg11[%c0_106, %c16, %c0_107] : memref<6x32x128xbf16, #tpu.memory_space<vmem>>, vector<6x1x128xbf16>
    %103 = vector.shape_cast %102 : vector<6x1x128xbf16> to vector<6x128xbf16>
    %c16_108 = arith.constant 16 : index
    %c0_109 = arith.constant 0 : index
    %c0_110 = arith.constant 0 : index
    %104 = vector.load %arg3[%c16_108, %c0_109, %c0_110] : memref<32x128x256xbf16, #tpu.memory_space<vmem>>, vector<1x128x256xbf16>
    %105 = vector.shape_cast %104 : vector<1x128x256xbf16> to vector<128x256xbf16>
    %cst_111 = arith.constant dense<0.000000e+00> : vector<6x256xf32>
    %106 = tpu.matmul %103, %105, %cst_111 {dimension_numbers = #tpu.dot_dimension_numbers<[1], [0], [0], [1], [0, 0, 1, 1], [], []>} : vector<6x128xbf16>, vector<128x256xbf16>, vector<6x256xf32> -> vector<6x256xf32>
    %107 = arith.addf %101, %106 : vector<6x256xf32>
    %c0_112 = arith.constant 0 : index
    %c17 = arith.constant 17 : index
    %c0_113 = arith.constant 0 : index
    %108 = vector.load %arg11[%c0_112, %c17, %c0_113] : memref<6x32x128xbf16, #tpu.memory_space<vmem>>, vector<6x1x128xbf16>
    %109 = vector.shape_cast %108 : vector<6x1x128xbf16> to vector<6x128xbf16>
    %c17_114 = arith.constant 17 : index
    %c0_115 = arith.constant 0 : index
    %c0_116 = arith.constant 0 : index
    %110 = vector.load %arg3[%c17_114, %c0_115, %c0_116] : memref<32x128x256xbf16, #tpu.memory_space<vmem>>, vector<1x128x256xbf16>
    %111 = vector.shape_cast %110 : vector<1x128x256xbf16> to vector<128x256xbf16>
    %cst_117 = arith.constant dense<0.000000e+00> : vector<6x256xf32>
    %112 = tpu.matmul %109, %111, %cst_117 {dimension_numbers = #tpu.dot_dimension_numbers<[1], [0], [0], [1], [0, 0, 1, 1], [], []>} : vector<6x128xbf16>, vector<128x256xbf16>, vector<6x256xf32> -> vector<6x256xf32>
    %113 = arith.addf %107, %112 : vector<6x256xf32>
    %c0_118 = arith.constant 0 : index
    %c18 = arith.constant 18 : index
    %c0_119 = arith.constant 0 : index
    %114 = vector.load %arg11[%c0_118, %c18, %c0_119] : memref<6x32x128xbf16, #tpu.memory_space<vmem>>, vector<6x1x128xbf16>
    %115 = vector.shape_cast %114 : vector<6x1x128xbf16> to vector<6x128xbf16>
    %c18_120 = arith.constant 18 : index
    %c0_121 = arith.constant 0 : index
    %c0_122 = arith.constant 0 : index
    %116 = vector.load %arg3[%c18_120, %c0_121, %c0_122] : memref<32x128x256xbf16, #tpu.memory_space<vmem>>, vector<1x128x256xbf16>
    %117 = vector.shape_cast %116 : vector<1x128x256xbf16> to vector<128x256xbf16>
    %cst_123 = arith.constant dense<0.000000e+00> : vector<6x256xf32>
    %118 = tpu.matmul %115, %117, %cst_123 {dimension_numbers = #tpu.dot_dimension_numbers<[1], [0], [0], [1], [0, 0, 1, 1], [], []>} : vector<6x128xbf16>, vector<128x256xbf16>, vector<6x256xf32> -> vector<6x256xf32>
    %119 = arith.addf %113, %118 : vector<6x256xf32>
    %c0_124 = arith.constant 0 : index
    %c19 = arith.constant 19 : index
    %c0_125 = arith.constant 0 : index
    %120 = vector.load %arg11[%c0_124, %c19, %c0_125] : memref<6x32x128xbf16, #tpu.memory_space<vmem>>, vector<6x1x128xbf16>
    %121 = vector.shape_cast %120 : vector<6x1x128xbf16> to vector<6x128xbf16>
    %c19_126 = arith.constant 19 : index
    %c0_127 = arith.constant 0 : index
    %c0_128 = arith.constant 0 : index
    %122 = vector.load %arg3[%c19_126, %c0_127, %c0_128] : memref<32x128x256xbf16, #tpu.memory_space<vmem>>, vector<1x128x256xbf16>
    %123 = vector.shape_cast %122 : vector<1x128x256xbf16> to vector<128x256xbf16>
    %cst_129 = arith.constant dense<0.000000e+00> : vector<6x256xf32>
    %124 = tpu.matmul %121, %123, %cst_129 {dimension_numbers = #tpu.dot_dimension_numbers<[1], [0], [0], [1], [0, 0, 1, 1], [], []>} : vector<6x128xbf16>, vector<128x256xbf16>, vector<6x256xf32> -> vector<6x256xf32>
    %125 = arith.addf %119, %124 : vector<6x256xf32>
    %c0_130 = arith.constant 0 : index
    %c20 = arith.constant 20 : index
    %c0_131 = arith.constant 0 : index
    %126 = vector.load %arg11[%c0_130, %c20, %c0_131] : memref<6x32x128xbf16, #tpu.memory_space<vmem>>, vector<6x1x128xbf16>
    %127 = vector.shape_cast %126 : vector<6x1x128xbf16> to vector<6x128xbf16>
    %c20_132 = arith.constant 20 : index
    %c0_133 = arith.constant 0 : index
    %c0_134 = arith.constant 0 : index
    %128 = vector.load %arg3[%c20_132, %c0_133, %c0_134] : memref<32x128x256xbf16, #tpu.memory_space<vmem>>, vector<1x128x256xbf16>
    %129 = vector.shape_cast %128 : vector<1x128x256xbf16> to vector<128x256xbf16>
    %cst_135 = arith.constant dense<0.000000e+00> : vector<6x256xf32>
    %130 = tpu.matmul %127, %129, %cst_135 {dimension_numbers = #tpu.dot_dimension_numbers<[1], [0], [0], [1], [0, 0, 1, 1], [], []>} : vector<6x128xbf16>, vector<128x256xbf16>, vector<6x256xf32> -> vector<6x256xf32>
    %131 = arith.addf %125, %130 : vector<6x256xf32>
    %c0_136 = arith.constant 0 : index
    %c21 = arith.constant 21 : index
    %c0_137 = arith.constant 0 : index
    %132 = vector.load %arg11[%c0_136, %c21, %c0_137] : memref<6x32x128xbf16, #tpu.memory_space<vmem>>, vector<6x1x128xbf16>
    %133 = vector.shape_cast %132 : vector<6x1x128xbf16> to vector<6x128xbf16>
    %c21_138 = arith.constant 21 : index
    %c0_139 = arith.constant 0 : index
    %c0_140 = arith.constant 0 : index
    %134 = vector.load %arg3[%c21_138, %c0_139, %c0_140] : memref<32x128x256xbf16, #tpu.memory_space<vmem>>, vector<1x128x256xbf16>
    %135 = vector.shape_cast %134 : vector<1x128x256xbf16> to vector<128x256xbf16>
    %cst_141 = arith.constant dense<0.000000e+00> : vector<6x256xf32>
    %136 = tpu.matmul %133, %135, %cst_141 {dimension_numbers = #tpu.dot_dimension_numbers<[1], [0], [0], [1], [0, 0, 1, 1], [], []>} : vector<6x128xbf16>, vector<128x256xbf16>, vector<6x256xf32> -> vector<6x256xf32>
    %137 = arith.addf %131, %136 : vector<6x256xf32>
    %c0_142 = arith.constant 0 : index
    %c22 = arith.constant 22 : index
    %c0_143 = arith.constant 0 : index
    %138 = vector.load %arg11[%c0_142, %c22, %c0_143] : memref<6x32x128xbf16, #tpu.memory_space<vmem>>, vector<6x1x128xbf16>
    %139 = vector.shape_cast %138 : vector<6x1x128xbf16> to vector<6x128xbf16>
    %c22_144 = arith.constant 22 : index
    %c0_145 = arith.constant 0 : index
    %c0_146 = arith.constant 0 : index
    %140 = vector.load %arg3[%c22_144, %c0_145, %c0_146] : memref<32x128x256xbf16, #tpu.memory_space<vmem>>, vector<1x128x256xbf16>
    %141 = vector.shape_cast %140 : vector<1x128x256xbf16> to vector<128x256xbf16>
    %cst_147 = arith.constant dense<0.000000e+00> : vector<6x256xf32>
    %142 = tpu.matmul %139, %141, %cst_147 {dimension_numbers = #tpu.dot_dimension_numbers<[1], [0], [0], [1], [0, 0, 1, 1], [], []>} : vector<6x128xbf16>, vector<128x256xbf16>, vector<6x256xf32> -> vector<6x256xf32>
    %143 = arith.addf %137, %142 : vector<6x256xf32>
    %c0_148 = arith.constant 0 : index
    %c23 = arith.constant 23 : index
    %c0_149 = arith.constant 0 : index
    %144 = vector.load %arg11[%c0_148, %c23, %c0_149] : memref<6x32x128xbf16, #tpu.memory_space<vmem>>, vector<6x1x128xbf16>
    %145 = vector.shape_cast %144 : vector<6x1x128xbf16> to vector<6x128xbf16>
    %c23_150 = arith.constant 23 : index
    %c0_151 = arith.constant 0 : index
    %c0_152 = arith.constant 0 : index
    %146 = vector.load %arg3[%c23_150, %c0_151, %c0_152] : memref<32x128x256xbf16, #tpu.memory_space<vmem>>, vector<1x128x256xbf16>
    %147 = vector.shape_cast %146 : vector<1x128x256xbf16> to vector<128x256xbf16>
    %cst_153 = arith.constant dense<0.000000e+00> : vector<6x256xf32>
    %148 = tpu.matmul %145, %147, %cst_153 {dimension_numbers = #tpu.dot_dimension_numbers<[1], [0], [0], [1], [0, 0, 1, 1], [], []>} : vector<6x128xbf16>, vector<128x256xbf16>, vector<6x256xf32> -> vector<6x256xf32>
    %149 = arith.addf %143, %148 : vector<6x256xf32>
    %c0_154 = arith.constant 0 : index
    %c24 = arith.constant 24 : index
    %c0_155 = arith.constant 0 : index
    %150 = vector.load %arg11[%c0_154, %c24, %c0_155] : memref<6x32x128xbf16, #tpu.memory_space<vmem>>, vector<6x1x128xbf16>
    %151 = vector.shape_cast %150 : vector<6x1x128xbf16> to vector<6x128xbf16>
    %c24_156 = arith.constant 24 : index
    %c0_157 = arith.constant 0 : index
    %c0_158 = arith.constant 0 : index
    %152 = vector.load %arg3[%c24_156, %c0_157, %c0_158] : memref<32x128x256xbf16, #tpu.memory_space<vmem>>, vector<1x128x256xbf16>
    %153 = vector.shape_cast %152 : vector<1x128x256xbf16> to vector<128x256xbf16>
    %cst_159 = arith.constant dense<0.000000e+00> : vector<6x256xf32>
    %154 = tpu.matmul %151, %153, %cst_159 {dimension_numbers = #tpu.dot_dimension_numbers<[1], [0], [0], [1], [0, 0, 1, 1], [], []>} : vector<6x128xbf16>, vector<128x256xbf16>, vector<6x256xf32> -> vector<6x256xf32>
    %155 = arith.addf %149, %154 : vector<6x256xf32>
    %c0_160 = arith.constant 0 : index
    %c25 = arith.constant 25 : index
    %c0_161 = arith.constant 0 : index
    %156 = vector.load %arg11[%c0_160, %c25, %c0_161] : memref<6x32x128xbf16, #tpu.memory_space<vmem>>, vector<6x1x128xbf16>
    %157 = vector.shape_cast %156 : vector<6x1x128xbf16> to vector<6x128xbf16>
    %c25_162 = arith.constant 25 : index
    %c0_163 = arith.constant 0 : index
    %c0_164 = arith.constant 0 : index
    %158 = vector.load %arg3[%c25_162, %c0_163, %c0_164] : memref<32x128x256xbf16, #tpu.memory_space<vmem>>, vector<1x128x256xbf16>
    %159 = vector.shape_cast %158 : vector<1x128x256xbf16> to vector<128x256xbf16>
    %cst_165 = arith.constant dense<0.000000e+00> : vector<6x256xf32>
    %160 = tpu.matmul %157, %159, %cst_165 {dimension_numbers = #tpu.dot_dimension_numbers<[1], [0], [0], [1], [0, 0, 1, 1], [], []>} : vector<6x128xbf16>, vector<128x256xbf16>, vector<6x256xf32> -> vector<6x256xf32>
    %161 = arith.addf %155, %160 : vector<6x256xf32>
    %c0_166 = arith.constant 0 : index
    %c26 = arith.constant 26 : index
    %c0_167 = arith.constant 0 : index
    %162 = vector.load %arg11[%c0_166, %c26, %c0_167] : memref<6x32x128xbf16, #tpu.memory_space<vmem>>, vector<6x1x128xbf16>
    %163 = vector.shape_cast %162 : vector<6x1x128xbf16> to vector<6x128xbf16>
    %c26_168 = arith.constant 26 : index
    %c0_169 = arith.constant 0 : index
    %c0_170 = arith.constant 0 : index
    %164 = vector.load %arg3[%c26_168, %c0_169, %c0_170] : memref<32x128x256xbf16, #tpu.memory_space<vmem>>, vector<1x128x256xbf16>
    %165 = vector.shape_cast %164 : vector<1x128x256xbf16> to vector<128x256xbf16>
    %cst_171 = arith.constant dense<0.000000e+00> : vector<6x256xf32>
    %166 = tpu.matmul %163, %165, %cst_171 {dimension_numbers = #tpu.dot_dimension_numbers<[1], [0], [0], [1], [0, 0, 1, 1], [], []>} : vector<6x128xbf16>, vector<128x256xbf16>, vector<6x256xf32> -> vector<6x256xf32>
    %167 = arith.addf %161, %166 : vector<6x256xf32>
    %c0_172 = arith.constant 0 : index
    %c27 = arith.constant 27 : index
    %c0_173 = arith.constant 0 : index
    %168 = vector.load %arg11[%c0_172, %c27, %c0_173] : memref<6x32x128xbf16, #tpu.memory_space<vmem>>, vector<6x1x128xbf16>
    %169 = vector.shape_cast %168 : vector<6x1x128xbf16> to vector<6x128xbf16>
    %c27_174 = arith.constant 27 : index
    %c0_175 = arith.constant 0 : index
    %c0_176 = arith.constant 0 : index
    %170 = vector.load %arg3[%c27_174, %c0_175, %c0_176] : memref<32x128x256xbf16, #tpu.memory_space<vmem>>, vector<1x128x256xbf16>
    %171 = vector.shape_cast %170 : vector<1x128x256xbf16> to vector<128x256xbf16>
    %cst_177 = arith.constant dense<0.000000e+00> : vector<6x256xf32>
    %172 = tpu.matmul %169, %171, %cst_177 {dimension_numbers = #tpu.dot_dimension_numbers<[1], [0], [0], [1], [0, 0, 1, 1], [], []>} : vector<6x128xbf16>, vector<128x256xbf16>, vector<6x256xf32> -> vector<6x256xf32>
    %173 = arith.addf %167, %172 : vector<6x256xf32>
    %c0_178 = arith.constant 0 : index
    %c28 = arith.constant 28 : index
    %c0_179 = arith.constant 0 : index
    %174 = vector.load %arg11[%c0_178, %c28, %c0_179] : memref<6x32x128xbf16, #tpu.memory_space<vmem>>, vector<6x1x128xbf16>
    %175 = vector.shape_cast %174 : vector<6x1x128xbf16> to vector<6x128xbf16>
    %c28_180 = arith.constant 28 : index
    %c0_181 = arith.constant 0 : index
    %c0_182 = arith.constant 0 : index
    %176 = vector.load %arg3[%c28_180, %c0_181, %c0_182] : memref<32x128x256xbf16, #tpu.memory_space<vmem>>, vector<1x128x256xbf16>
    %177 = vector.shape_cast %176 : vector<1x128x256xbf16> to vector<128x256xbf16>
    %cst_183 = arith.constant dense<0.000000e+00> : vector<6x256xf32>
    %178 = tpu.matmul %175, %177, %cst_183 {dimension_numbers = #tpu.dot_dimension_numbers<[1], [0], [0], [1], [0, 0, 1, 1], [], []>} : vector<6x128xbf16>, vector<128x256xbf16>, vector<6x256xf32> -> vector<6x256xf32>
    %179 = arith.addf %173, %178 : vector<6x256xf32>
    %c0_184 = arith.constant 0 : index
    %c29 = arith.constant 29 : index
    %c0_185 = arith.constant 0 : index
    %180 = vector.load %arg11[%c0_184, %c29, %c0_185] : memref<6x32x128xbf16, #tpu.memory_space<vmem>>, vector<6x1x128xbf16>
    %181 = vector.shape_cast %180 : vector<6x1x128xbf16> to vector<6x128xbf16>
    %c29_186 = arith.constant 29 : index
    %c0_187 = arith.constant 0 : index
    %c0_188 = arith.constant 0 : index
    %182 = vector.load %arg3[%c29_186, %c0_187, %c0_188] : memref<32x128x256xbf16, #tpu.memory_space<vmem>>, vector<1x128x256xbf16>
    %183 = vector.shape_cast %182 : vector<1x128x256xbf16> to vector<128x256xbf16>
    %cst_189 = arith.constant dense<0.000000e+00> : vector<6x256xf32>
    %184 = tpu.matmul %181, %183, %cst_189 {dimension_numbers = #tpu.dot_dimension_numbers<[1], [0], [0], [1], [0, 0, 1, 1], [], []>} : vector<6x128xbf16>, vector<128x256xbf16>, vector<6x256xf32> -> vector<6x256xf32>
    %185 = arith.addf %179, %184 : vector<6x256xf32>
    %c0_190 = arith.constant 0 : index
    %c30 = arith.constant 30 : index
    %c0_191 = arith.constant 0 : index
    %186 = vector.load %arg11[%c0_190, %c30, %c0_191] : memref<6x32x128xbf16, #tpu.memory_space<vmem>>, vector<6x1x128xbf16>
    %187 = vector.shape_cast %186 : vector<6x1x128xbf16> to vector<6x128xbf16>
    %c30_192 = arith.constant 30 : index
    %c0_193 = arith.constant 0 : index
    %c0_194 = arith.constant 0 : index
    %188 = vector.load %arg3[%c30_192, %c0_193, %c0_194] : memref<32x128x256xbf16, #tpu.memory_space<vmem>>, vector<1x128x256xbf16>
    %189 = vector.shape_cast %188 : vector<1x128x256xbf16> to vector<128x256xbf16>
    %cst_195 = arith.constant dense<0.000000e+00> : vector<6x256xf32>
    %190 = tpu.matmul %187, %189, %cst_195 {dimension_numbers = #tpu.dot_dimension_numbers<[1], [0], [0], [1], [0, 0, 1, 1], [], []>} : vector<6x128xbf16>, vector<128x256xbf16>, vector<6x256xf32> -> vector<6x256xf32>
    %191 = arith.addf %185, %190 : vector<6x256xf32>
    %c0_196 = arith.constant 0 : index
    %c31 = arith.constant 31 : index
    %c0_197 = arith.constant 0 : index
    %192 = vector.load %arg11[%c0_196, %c31, %c0_197] : memref<6x32x128xbf16, #tpu.memory_space<vmem>>, vector<6x1x128xbf16>
    %193 = vector.shape_cast %192 : vector<6x1x128xbf16> to vector<6x128xbf16>
    %c31_198 = arith.constant 31 : index
    %c0_199 = arith.constant 0 : index
    %c0_200 = arith.constant 0 : index
    %194 = vector.load %arg3[%c31_198, %c0_199, %c0_200] : memref<32x128x256xbf16, #tpu.memory_space<vmem>>, vector<1x128x256xbf16>
    %195 = vector.shape_cast %194 : vector<1x128x256xbf16> to vector<128x256xbf16>
    %cst_201 = arith.constant dense<0.000000e+00> : vector<6x256xf32>
    %196 = tpu.matmul %193, %195, %cst_201 {dimension_numbers = #tpu.dot_dimension_numbers<[1], [0], [0], [1], [0, 0, 1, 1], [], []>} : vector<6x128xbf16>, vector<128x256xbf16>, vector<6x256xf32> -> vector<6x256xf32>
    %197 = arith.addf %191, %196 : vector<6x256xf32>
    %c0_202 = arith.constant 0 : index
    %c0_203 = arith.constant 0 : index
    %198 = vector.load %arg4[%c0_202, %c0_203] : memref<1x256xf32, #tpu.memory_space<vmem>>, vector<1x256xf32>
    %199 = vector.broadcast %198 : vector<1x256xf32> to vector<6x256xf32>
    %200 = arith.addf %197, %199 : vector<6x256xf32>
    %cst_204 = arith.constant 0.000000e+00 : f32
    %201 = vector.broadcast %cst_204 : f32 to vector<6x256xf32>
    %202 = arith.maximumf %200, %201 : vector<6x256xf32>
    %203 = arith.truncf %202 : vector<6x256xf32> to vector<6x256xbf16>
    %c0_205 = arith.constant 0 : index
    %c0_206 = arith.constant 0 : index
    %204 = vector.load %arg5[%c0_205, %c0_206] : memref<256x256xbf16, #tpu.memory_space<vmem>>, vector<256x256xbf16>
    %cst_207 = arith.constant dense<0.000000e+00> : vector<6x256xf32>
    %205 = tpu.matmul %203, %204, %cst_207 {dimension_numbers = #tpu.dot_dimension_numbers<[1], [0], [0], [1], [0, 0, 1, 1], [], []>} : vector<6x256xbf16>, vector<256x256xbf16>, vector<6x256xf32> -> vector<6x256xf32>
    %c0_208 = arith.constant 0 : index
    %c0_209 = arith.constant 0 : index
    %206 = vector.load %arg6[%c0_208, %c0_209] : memref<1x256xf32, #tpu.memory_space<vmem>>, vector<1x256xf32>
    %207 = vector.broadcast %206 : vector<1x256xf32> to vector<6x256xf32>
    %208 = arith.addf %205, %207 : vector<6x256xf32>
    %cst_210 = arith.constant 0.000000e+00 : f32
    %209 = vector.broadcast %cst_210 : f32 to vector<6x256xf32>
    %210 = arith.maximumf %208, %209 : vector<6x256xf32>
    %211 = arith.truncf %210 : vector<6x256xf32> to vector<6x256xbf16>
    %c0_211 = arith.constant 0 : index
    %c0_212 = arith.constant 0 : index
    %212 = vector.load %arg7[%c0_211, %c0_212] : memref<256x128xbf16, #tpu.memory_space<vmem>>, vector<256x128xbf16>
    %cst_213 = arith.constant dense<0.000000e+00> : vector<6x128xf32>
    %213 = tpu.matmul %211, %212, %cst_213 {dimension_numbers = #tpu.dot_dimension_numbers<[1], [0], [0], [1], [0, 0, 1, 1], [], []>} : vector<6x256xbf16>, vector<256x128xbf16>, vector<6x128xf32> -> vector<6x128xf32>
    %c0_214 = arith.constant 0 : index
    %c0_215 = arith.constant 0 : index
    %214 = vector.load %arg8[%c0_214, %c0_215] : memref<1x128xf32, #tpu.memory_space<vmem>>, vector<1x128xf32>
    %215 = vector.broadcast %214 : vector<1x128xf32> to vector<6x128xf32>
    %216 = arith.addf %213, %215 : vector<6x128xf32>
    %c0_216 = arith.constant 0 : index
    %c0_217 = arith.constant 0 : index
    %217 = vector.load %arg9[%c0_216, %c0_217] : memref<3x6xf32, #tpu.memory_space<vmem>>, vector<3x6xf32>
    %cst_218 = arith.constant dense<0.000000e+00> : vector<3x128xf32>
    %218 = tpu.matmul %217, %216, %cst_218 {dimension_numbers = #tpu.dot_dimension_numbers<[1], [0], [0], [1], [0, 0, 1, 1], [], []>} : vector<3x6xf32>, vector<6x128xf32>, vector<3x128xf32> -> vector<3x128xf32>
    %c0_219 = arith.constant 0 : index
    %c0_220 = arith.constant 0 : index
    %219 = vector.load %arg10[%c0_219, %c0_220] : memref<3x128xf32, #tpu.memory_space<vmem>>, vector<3x128xf32>
    tpu.vector_store %arg10[%c0_219, %c0_220], %218 {strides = array<i32>} : memref<3x128xf32, #tpu.memory_space<vmem>>, vector<3x128xf32>,
    return
  }
  func.func @transform_0(%arg0: i32) -> (i32, i32, i32) {
    %c0_i32 = arith.constant 0 : i32
    %c0_i32_0 = arith.constant 0 : i32
    %c0_i32_1 = arith.constant 0 : i32
    %c0_i32_2 = arith.constant 0 : i32
    return %c0_i32, %c0_i32_0, %c0_i32_1 : i32, i32, i32
  }
  func.func @transform_1(%arg0: i32) -> (i32, i32, i32) {
    %c0_i32 = arith.constant 0 : i32
    %c0_i32_0 = arith.constant 0 : i32
    %c0_i32_1 = arith.constant 0 : i32
    %c0_i32_2 = arith.constant 0 : i32
    return %c0_i32, %c0_i32_0, %c0_i32_1 : i32, i32, i32
  }
  func.func @transform_2(%arg0: i32) -> (i32, i32, i32) {
    %c0_i32 = arith.constant 0 : i32
    %c0_i32_0 = arith.constant 0 : i32
    %c0_i32_1 = arith.constant 0 : i32
    %c0_i32_2 = arith.constant 0 : i32
    return %c0_i32, %c0_i32_0, %c0_i32_1 : i32, i32, i32
  }
  func.func @transform_3(%arg0: i32) -> (i32, i32) {
    %c0_i32 = arith.constant 0 : i32
    %c0_i32_0 = arith.constant 0 : i32
    %c0_i32_1 = arith.constant 0 : i32
    return %c0_i32, %c0_i32_0 : i32, i32
  }
  func.func @transform_4(%arg0: i32) -> (i32, i32) {
    %c0_i32 = arith.constant 0 : i32
    %c0_i32_0 = arith.constant 0 : i32
    %c0_i32_1 = arith.constant 0 : i32
    return %c0_i32, %c0_i32_0 : i32, i32
  }
  func.func @transform_5(%arg0: i32) -> (i32, i32) {
    %c0_i32 = arith.constant 0 : i32
    %c0_i32_0 = arith.constant 0 : i32
    %c0_i32_1 = arith.constant 0 : i32
    return %c0_i32, %c0_i32_0 : i32, i32
  }
  func.func @transform_6(%arg0: i32) -> (i32, i32) {
    %c0_i32 = arith.constant 0 : i32
    %c0_i32_0 = arith.constant 0 : i32
    %c0_i32_1 = arith.constant 0 : i32
    return %c0_i32, %c0_i32_0 : i32, i32
  }
  func.func @transform_7(%arg0: i32) -> (i32, i32) {
    %c0_i32 = arith.constant 0 : i32
    %c0_i32_0 = arith.constant 0 : i32
    %c0_i32_1 = arith.constant 0 : i32
    return %c0_i32, %c0_i32_0 : i32, i32
  }
  func.func @transform_8(%arg0: i32) -> (i32, i32) {
    %c0_i32 = arith.constant 0 : i32
    %c0_i32_0 = arith.constant 0 : i32
    %c0_i32_1 = arith.constant 0 : i32
    return %c0_i32, %c0_i32_0 : i32, i32
  }
  func.func @transform_9(%arg0: i32) -> (i32, i32) {
    %c0_i32 = arith.constant 0 : i32
    %c0_i32_0 = arith.constant 0 : i32
    %c0_i32_1 = arith.constant 0 : i32
    return %c0_i32, %c0_i32_0 : i32, i32
  }
}

</mosaic_0001>

<bundles_post_ra>
// kernel: tpu_custom_call.1
= control target key start
LH: loop header
LB: loop body
LE: loop exit
PB: predicated region body
PF: predicated region fallthrough
CT: control target
= control target key end

     0   :  { %14 = vsyncpa [#allocation4], 0  ;;  %s9614_s0 = inlined_call_operand.hbm [shape: bf16[6,32,256], index: 0, kind: input, shape index: {}]   ;;  %s9615_s1 = inlined_call_operand.hbm [shape: bf16[6,256,128], index: 1, kind: input, shape index: {}]   ;;  %s9616_s2 = inlined_call_operand.hbm [shape: bf16[32,128,256], index: 2, kind: input, shape index: {}]   ;;  %s9617_s3 = inlined_call_operand.hbm [shape: f32[1,256], index: 3, kind: input, shape index: {}]   ;;  %s9618_s4 = inlined_call_operand.hbm [shape: bf16[256,256], index: 4, kind: input, shape index: {}]   ;;  %s9619_s5 = inlined_call_operand.hbm [shape: f32[1,256], index: 5, kind: input, shape index: {}]   ;;  %s9620_s6 = inlined_call_operand.hbm [shape: bf16[256,128], index: 6, kind: input, shape index: {}]   ;;  %s9621_s7 = inlined_call_operand.hbm [shape: f32[1,128], index: 7, kind: input, shape index: {}]   ;;  %s9622_s8 = inlined_call_operand.hbm [shape: f32[3,6], index: 8, kind: input, shape index: {}]   ;;  %s9623_s9 = inlined_call_operand.hbm [shape: f32[3,128], index: 9, kind: output, shape index: {}]  }
   0x1   :  { %15 = vsyncpa [#allocation7], 0 }
   0x2   :  { %16 = vsyncpa [#allocation10], 0 }
   0x3   :  { %17 = vsyncpa [#allocation13], 0 }
   0x4   :  { %18 = vsyncpa [#allocation16], 0 }
   0x5   :  { %19 = vsyncpa [#allocation5], 0  ;;  %s9172_s30 = smov [#allocation6]   ;;  %s8940_s13 = scalar_lea.hbm %s9615_s1, 12288 }
   0x6   :  { %s37_s10 = sshll.u32 %s9172_s30, 4  ;;  %p8941_p0 = scmp.ne.s32.totalorder %s9615_s1, %s8940_s13  ;;  %s38_s10 = int_to_ptr.vmem [resolvable:$true] %s37_s10 }
   0x7   :  { %p8944_p1 = scmp.lt.u32.totalorder %s8940_s13, %s9615_s1 }
   0x9   :  { %p8946_p2 = pnand %p8944_p1, %p8941_p0 }
   0xb   :  { %8949 = shalt.err (!%p8946_p2)
}
   0xc   :  { %s8950_s18 = scalar_lea.vmem %s38_s10, 12288  ;;  %p8955_p4 = scmp.lt.s32.totalorder %s38_s10, %s38_s10 }
   0xd   :  { %p8951_p3 = scmp.ne.s32.totalorder %s38_s10, %s8950_s18  ;;  %p8956_p5 = scmp.lt.s32.totalorder %s8950_s18, %s8950_s18 }
   0xf   :  { %p8957_p6 = por %p8956_p5, %p8955_p4 }
  0x11   :  { %p8958_p7 = pnand %p8957_p6, %p8951_p3 }
  0x13   :  { %8961 = shalt.err (!%p8958_p7)
}
  0x14   :  { %s9173_s19 = smov 64   ;;  %s9174_s20 = smov 4  }
  0x15   :  { %43 = dma.hbm_to_vmem [thread:$0]  %s9615_s1, 12288, %s38_s10, [#allocation7], %s9173_s19, %s9173_s19, %s9174_s20  }
  0x16   :  { %s9175_s23 = smov [#allocation9]   ;;  %s9176_s25 = smov [#allocation12]  }
  0x17   :  { %s62_s24 = sshll.u32 %s9175_s23, 4  ;;  %s84_s26 = sshll.u32 %s9176_s25, 4  ;;  %s63_s24 = int_to_ptr.vmem [resolvable:$true] %s62_s24  ;;  %s85_s26 = int_to_ptr.vmem [resolvable:$true] %s84_s26 }
  0x18   :  { %s8962_s29 = scalar_lea.hbm %s9617_s3, 32 }
  0x19   :  { %p8963_p8 = scmp.ne.s32.totalorder %s9617_s3, %s8962_s29  ;;  %p8966_p9 = scmp.lt.u32.totalorder %s8962_s29, %s9617_s3 }
  0x1b   :  { %p8968_p10 = pnand %p8966_p9, %p8963_p8 }
  0x1d   :  { %8971 = shalt.err (!%p8968_p10)
}
  0x1e   :  { %s8972_s1 = scalar_lea.vmem %s63_s24, 32  ;;  %p8977_p12 = scmp.lt.s32.totalorder %s63_s24, %s63_s24 }
  0x1f   :  { %p8973_p11 = scmp.ne.s32.totalorder %s63_s24, %s8972_s1  ;;  %p8978_p13 = scmp.lt.s32.totalorder %s8972_s1, %s8972_s1 }
  0x21   :  { %p8979_p0 = por %p8978_p13, %p8977_p12 }
  0x23   :  { %p8980_p1 = pnand %p8979_p0, %p8973_p11 }
  0x25   :  { %8983 = shalt.err (!%p8980_p1)
}
  0x26   :  { %65 = dma.hbm_to_vmem [thread:$0]  %s9617_s3, 32, %s63_s24, [#allocation10]  }
  0x27   :  { %s8984_s17 = scalar_lea.hbm %s9619_s5, 32 }
  0x28   :  { %p8985_p2 = scmp.ne.s32.totalorder %s9619_s5, %s8984_s17  ;;  %p8988_p3 = scmp.lt.u32.totalorder %s8984_s17, %s9619_s5 }
  0x2a   :  { %p8990_p4 = pnand %p8988_p3, %p8985_p2 }
  0x2c   :  { %8993 = shalt.err (!%p8990_p4)
}
  0x2d   :  { %s8994_s25 = scalar_lea.vmem %s85_s26, 32  ;;  %p8999_p6 = scmp.lt.s32.totalorder %s85_s26, %s85_s26 }
  0x2e   :  { %p8995_p5 = scmp.ne.s32.totalorder %s85_s26, %s8994_s25  ;;  %p9000_p7 = scmp.lt.s32.totalorder %s8994_s25, %s8994_s25 }
  0x30   :  { %p9001_p8 = por %p9000_p7, %p8999_p6 }
  0x32   :  { %p9002_p9 = pnand %p9001_p8, %p8995_p5 }
  0x34   :  { %9005 = shalt.err (!%p9002_p9)
}
  0x35   :  { %87 = dma.hbm_to_vmem [thread:$0]  %s9619_s5, 32, %s85_s26, [#allocation13]  }
  0x36   :  { %s9177_s27 = smov [#allocation15]   ;;  %s9178_s29 = smov [#allocation3]  }
  0x37   :  { %s106_s28 = sshll.u32 %s9177_s27, 4  ;;  %s25_s30 = sshll.u32 %s9178_s29, 4  ;;  %s107_s28 = int_to_ptr.vmem [resolvable:$true] %s106_s28  ;;  %s26_s30 = int_to_ptr.vmem [resolvable:$true] %s25_s30 }
  0x38   :  { %s9006_s13 = scalar_lea.hbm %s9621_s7, 16 }
  0x39   :  { %p9007_p10 = scmp.ne.s32.totalorder %s9621_s7, %s9006_s13  ;;  %p9010_p11 = scmp.lt.u32.totalorder %s9006_s13, %s9621_s7 }
  0x3b   :  { %p9012_p12 = pnand %p9010_p11, %p9007_p10 }
  0x3d   :  { %9015 = shalt.err (!%p9012_p12)
}
  0x3e   :  { %s9016_s5 = scalar_lea.vmem %s107_s28, 16  ;;  %s9020_s26 = scalar_lea.vmem %s107_s28, 32 }
  0x3f   :  { %p9017_p13 = scmp.ne.s32.totalorder %s107_s28, %s9016_s5  ;;  %p9021_p0 = scmp.lt.s32.totalorder %s107_s28, %s107_s28 }
  0x40   :  { %p9022_p1 = scmp.lt.s32.totalorder %s9020_s26, %s9016_s5 }
  0x42   :  { %p9023_p2 = por %p9022_p1, %p9021_p0 }
  0x44   :  { %p9024_p3 = pnand %p9023_p2, %p9017_p13 }
  0x46   :  { %9027 = shalt.err (!%p9024_p3)
}
  0x47   :  { %109 = dma.hbm_to_vmem [thread:$0]  %s9621_s7, 16, %s107_s28, [#allocation16]  }
  0x48   :  { %s9028_s22 = scalar_lea.hbm %s9614_s0, 3072 }
  0x49   :  { %p9029_p4 = scmp.ne.s32.totalorder %s9614_s0, %s9028_s22  ;;  %p9032_p5 = scmp.lt.u32.totalorder %s9028_s22, %s9614_s0 }
  0x4b   :  { %p9034_p6 = pnand %p9032_p5, %p9029_p4 }
  0x4d   :  { %9037 = shalt.err (!%p9034_p6)
}
  0x4e   :  { %s9038_s27 = scalar_lea.vmem %s26_s30, 3072  ;;  %p9043_p8 = scmp.lt.s32.totalorder %s26_s30, %s26_s30 }
  0x4f   :  { %p9039_p7 = scmp.ne.s32.totalorder %s26_s30, %s9038_s27  ;;  %p9044_p9 = scmp.lt.s32.totalorder %s9038_s27, %s9038_s27 }
  0x51   :  { %p9045_p10 = por %p9044_p9, %p9043_p8 }
  0x53   :  { %p9046_p11 = pnand %p9045_p10, %p9039_p7 }
  0x55   :  { %9049 = shalt.err (!%p9046_p11)
}
  0x56   :  { %s9179_s7 = smov 128   ;;  %s9180_s28 = smov 8  }
  0x57   :  { %31 = dma.hbm_to_vmem [thread:$0]  %s9614_s0, 3072, %s26_s30, [#allocation4], %s9179_s7, %s9179_s7, %s9180_s28  }
  0x58   :  { %s9181_s12 = smov [#allocation8]   ;;  %s9182_s1 = smov [#allocation11]  }
  0x59   :  { %s49_s13 = sshll.u32 %s9181_s12, 4  ;;  %s71_s10 = sshll.u32 %s9182_s1, 4  ;;  %s50_s13 = int_to_ptr.vmem [resolvable:$true] %s49_s13  ;;  %s72_s10 = int_to_ptr.vmem [resolvable:$true] %s71_s10 }
  0x5a   :  { %s9050_s5 = scalar_lea.hbm %s9616_s2, 65536 }
  0x5b   :  { %p9051_p12 = scmp.ne.s32.totalorder %s9616_s2, %s9050_s5  ;;  %p9054_p13 = scmp.lt.u32.totalorder %s9050_s5, %s9616_s2 }
  0x5d   :  { %p9056_p0 = pnand %p9054_p13, %p9051_p12 }
  0x5f   :  { %9059 = shalt.err (!%p9056_p0)
}
  0x60   :  { %s9060_s0 = scalar_lea.vmem %s50_s13, 65536  ;;  %p9065_p2 = scmp.lt.s32.totalorder %s50_s13, %s50_s13 }
  0x61   :  { %p9061_p1 = scmp.ne.s32.totalorder %s50_s13, %s9060_s0  ;;  %p9066_p3 = scmp.lt.s32.totalorder %s9060_s0, %s9060_s0 }
  0x63   :  { %p9067_p4 = por %p9066_p3, %p9065_p2 }
  0x65   :  { %p9068_p5 = pnand %p9067_p4, %p9061_p1 }
  0x67   :  { %9071 = shalt.err (!%p9068_p5)
}
  0x68   :  { %55 = dma.hbm_to_vmem [thread:$0]  %s9616_s2, 65536, %s50_s13, [#allocation7], %s9179_s7, %s9179_s7, %s9180_s28  }
  0x69   :  { %s9072_s25 = scalar_lea.hbm %s9618_s4, 4096 }
  0x6a   :  { %p9073_p6 = scmp.ne.s32.totalorder %s9618_s4, %s9072_s25  ;;  %p9076_p7 = scmp.lt.u32.totalorder %s9072_s25, %s9618_s4 }
  0x6c   :  { %p9078_p8 = pnand %p9076_p7, %p9073_p6 }
  0x6e   :  { %9081 = shalt.err (!%p9078_p8)
}
  0x6f   :  { %s9082_s11 = scalar_lea.vmem %s72_s10, 4096  ;;  %p9087_p10 = scmp.lt.s32.totalorder %s72_s10, %s72_s10 }
  0x70   :  { %p9083_p9 = scmp.ne.s32.totalorder %s72_s10, %s9082_s11  ;;  %p9088_p11 = scmp.lt.s32.totalorder %s9082_s11, %s9082_s11 }
  0x72   :  { %p9089_p12 = por %p9088_p11, %p9087_p10 }
  0x74   :  { %p9090_p13 = pnand %p9089_p12, %p9083_p9 }
  0x76   :  { %9093 = shalt.err (!%p9090_p13)
}
  0x77   :  { %77 = dma.hbm_to_vmem [thread:$0]  %s9618_s4, 4096, %s72_s10, [#allocation10], %s9179_s7, %s9179_s7, %s9180_s28  }
  0x78   :  { %s9183_s13 = smov [#allocation14]   ;;  %s9184_s14 = smov [#allocation17]  }
  0x79   :  { %s93_s1 = sshll.u32 %s9183_s13, 4  ;;  %s116_s15 = sshll.u32 %s9184_s14, 4  ;;  %s94_s1 = int_to_ptr.vmem [resolvable:$true] %s93_s1  ;;  %s117_s15 = int_to_ptr.vmem [resolvable:$true] %s116_s15 }
  0x7a   :  { %s9094_s16 = scalar_lea.hbm %s9620_s6, 2048 }
  0x7b   :  { %p9095_p0 = scmp.ne.s32.totalorder %s9620_s6, %s9094_s16  ;;  %p9098_p1 = scmp.lt.u32.totalorder %s9094_s16, %s9620_s6 }
  0x7d   :  { %p9100_p2 = pnand %p9098_p1, %p9095_p0 }
  0x7f   :  { %9103 = shalt.err (!%p9100_p2)
}
  0x80   :  { %s9104_s4 = scalar_lea.vmem %s94_s1, 2048  ;;  %p9109_p4 = scmp.lt.s32.totalorder %s94_s1, %s94_s1 }
  0x81   :  { %p9105_p3 = scmp.ne.s32.totalorder %s94_s1, %s9104_s4  ;;  %p9110_p5 = scmp.lt.s32.totalorder %s9104_s4, %s9104_s4 }
  0x83   :  { %p9111_p6 = por %p9110_p5, %p9109_p4 }
  0x85   :  { %p9112_p7 = pnand %p9111_p6, %p9105_p3 }
  0x87   :  { %9115 = shalt.err (!%p9112_p7)
}
  0x88   :  { %99 = dma.hbm_to_vmem [thread:$0]  %s9620_s6, 2048, %s94_s1, [#allocation13], %s9173_s19, %s9173_s19, %s9174_s20  }
  0x89   :  { %s9116_s22 = scalar_lea.hbm %s9622_s8, 64 }
  0x8a   :  { %p9117_p8 = scmp.ne.s32.totalorder %s9622_s8, %s9116_s22  ;;  %p9120_p9 = scmp.lt.u32.totalorder %s9116_s22, %s9622_s8 }
  0x8c   :  { %p9122_p10 = pnand %p9120_p9, %p9117_p8 }
  0x8e   :  { %9125 = shalt.err (!%p9122_p10)
}
  0x8f   :  { %s9126_s27 = scalar_lea.vmem %s117_s15, 64  ;;  %p9131_p12 = scmp.lt.s32.totalorder %s117_s15, %s117_s15 }
  0x90   :  { %p9127_p11 = scmp.ne.s32.totalorder %s117_s15, %s9126_s27  ;;  %p9132_p13 = scmp.lt.s32.totalorder %s9126_s27, %s9126_s27 }
  0x92   :  { %p9133_p0 = por %p9132_p13, %p9131_p12 }
  0x94   :  { %p9134_p1 = pnand %p9133_p0, %p9127_p11 }
  0x96   :  { %9137 = shalt.err (!%p9134_p1)
}
  0x97   :  { %119 = dma.hbm_to_vmem [thread:$0]  %s9622_s8, 64, %s117_s15, [#allocation16]  }
  0x98   :  { %9160 = dma.done.wait [#allocation4], 3072  }
  0x99   :  { %9161 = vsyncadd [#allocation4], 4294964224 }
  0x9a   :  { %9162 = dma.done.wait [#allocation7], 77824  }
  0x9b   :  { %9163 = vsyncadd [#allocation7], 4294889472 }
  0x9c   :  { %9164 = dma.done.wait [#allocation10], 4128  }
  0x9d   :  { %9165 = vsyncadd [#allocation10], 4294963168 }
  0x9e   :  { %9166 = dma.done.wait [#allocation13], 2080  }
  0x9f   :  { %9167 = vsyncadd [#allocation13], 4294965216 }
  0xa0   :  { %9168 = dma.done.wait [#allocation16], 80  }
  0xa1   :  { %9169 = vsyncadd [#allocation16], 4294967216  ;;  %v7976_v0 = vld [vmem:[#allocation6 + $0x40] sm:$0xff]   ;;  %v7980_v4 = vld [vmem:[#allocation6 + $0x48] sm:$0xff]   ;;  %vm1430_vm0 = vcmask 1041409   ;;  %vm1433_vm1 = vcmask 1042434  }
  0xa2   :  { %v7977_v1 = vld [vmem:[#allocation6 + $0xc0] sm:$0xff]   ;;  %7762 = vmatprep.subr.bf16.mxu0 %v7976_v0  ;;  %v7981_v5 = vld [vmem:[#allocation6 + $0xc8] sm:$0xff]   ;;  %v7984_v8 = vld [vmem:[#allocation6 + $0x50] sm:$0xff]   ;;  %vm1436_vm2 = vcmask 1043459   ;;  %vm1439_vm3 = vcmask 1044484   ;;  %vm1442_vm4 = vcmask 1045509  }
  0xa3   :  { %v7978_v2 = vld [vmem:[#allocation6] sm:$0xff]   ;;  %7790 = vmatprep.subr.bf16.mxu1 %v7977_v1  ;;  %v7982_v6 = vld [vmem:[#allocation6 + $0x8] sm:$0xff]   ;;  %v7985_v9 = vld [vmem:[#allocation6 + $0xd0] sm:$0xff]   ;;  %vm9187_vm5 = vmmov 0   ;;  %vm6985_vm6 = vcmask 1045504   ;;  %vm6981_vm7 = vcmask 48128  }
  0xa4   :  { %v7979_v3 = vld [vmem:[#allocation6 + $0x80] sm:$0xff]   ;;  %7763 = vmatpush3.bf16.msra.mxu0 %v7978_v2  ;;  %v7983_v7 = vld [vmem:[#allocation6 + $0x88] sm:$0xff]   ;;  %v7986_v10 = vld [vmem:[#allocation6 + $0x10] sm:$0xff]   ;;  %s9188_s8 = smov [#allocation18]  }
  0xa5   :  { %7791 = vmatpush3.bf16.msra.mxu1 %v7979_v3  ;;  %7764 = vmatprep.subr.bf16.mxu0 %v7980_v4  ;;  %v7987_v11 = vld [vmem:[#allocation6 + $0x90] sm:$0xff]   ;;  %v7988_v12 = vld [vmem:[#allocation6 + $0x58] sm:$0xff]   ;;  %v7992_v16 = vld [vmem:[#allocation6 + $0x60] sm:$0xff]   ;;  %s7066_s20 = sshll.u32 %s9188_s8, 4  ;;  %s7067_s20 = int_to_ptr.vmem [resolvable:$true] %s7066_s20 }
  0xa6   :  { %7792 = vmatprep.subr.bf16.mxu1 %v7981_v5  ;;  %v7989_v13 = vld [vmem:[#allocation6 + $0xd8] sm:$0xff]   ;;  %v7993_v17 = vld [vmem:[#allocation6 + $0xe0] sm:$0xff]   ;;  %v7996_v20 = vld [vmem:[#allocation6 + $0x68] sm:$0xff]   ;;  %s9138_s29 = scalar_lea.vmem %s7067_s20, 64  ;;  %p9143_p3 = scmp.lt.s32.totalorder %s7067_s20, %s7067_s20 }
  0xa7   :  { %v7990_v14 = vld [vmem:[#allocation6 + $0x18] sm:$0xff]   ;;  %v7994_v18 = vld [vmem:[#allocation6 + $0x20] sm:$0xff]   ;;  %v7997_v21 = vld [vmem:[#allocation6 + $0xe8] sm:$0xff]   ;;  %p9139_p2 = scmp.ne.s32.totalorder %s7067_s20, %s9138_s29  ;;  %p9144_p4 = scmp.lt.s32.totalorder %s9138_s29, %s9138_s29 }
  0xa8   :  { %7765 = vmatpush3.bf16.msra.mxu0 %v7982_v6  ;;  %v7991_v15 = vld [vmem:[#allocation6 + $0x98] sm:$0xff]   ;;  %v7995_v19 = vld [vmem:[#allocation6 + $0xa0] sm:$0xff]   ;;  %v7998_v22 = vld [vmem:[#allocation6 + $0x28] sm:$0xff]  }
  0xa9   :  { %7793 = vmatpush3.bf16.msra.mxu1 %v7983_v7  ;;  %7766 = vmatprep.subr.bf16.mxu0 %v7984_v8  ;;  %v7999_v23 = vld [vmem:[#allocation6 + $0xa8] sm:$0xff]   ;;  %v8000_v24 = vld [vmem:[#allocation6 + $0x70] sm:$0xff]   ;;  %v8004_v28 = vld [vmem:[#allocation6 + $0x78] sm:$0xff]   ;;  %p9145_p5 = por %p9144_p4, %p9143_p3 }
  0xaa   :  { %7794 = vmatprep.subr.bf16.mxu1 %v7985_v9  ;;  %v8001_v25 = vld [vmem:[#allocation6 + $0xf0] sm:$0xff]   ;;  %v8005_v29 = vld [vmem:[#allocation6 + $0xf8] sm:$0xff]   ;;  %v8008_v32 = vld [vmem:[#allocation3] ss:$8 sps:$4 sm:$0xff]  }
  0xab   :  { %v8002_v26 = vld [vmem:[#allocation6 + $0x30] sm:$0xff]   ;;  %v8006_v30 = vld [vmem:[#allocation6 + $0x38] sm:$0xff]   ;;  %v8010_v33 = vld [vmem:[#allocation3 + $0x4] ss:$8 sps:$4 sm:$0xff]   ;;  %p9146_p6 = pnand %p9145_p5, %p9139_p2 }
  0xac   :  { %7767 = vmatpush3.bf16.msra.mxu0 %v7986_v10  ;;  %v8003_v27 = vld [vmem:[#allocation6 + $0xb0] sm:$0xff]   ;;  %v8007_v31 = vld [vmem:[#allocation6 + $0xb8] sm:$0xff]   ;;  %v8011_v34 = vld [vmem:[#allocation3 + $0x20] ss:$8 sps:$4 sm:$0xff]   ;;  %512 = vmatprep.mubr.bf16.mxu0 %v8010_v33 }
  0xad   :  { %7795 = vmatpush3.bf16.msra.mxu1 %v7987_v11  ;;  %7768 = vmatprep.subr.bf16.mxu0 %v7988_v12  ;;  %v8013_v35 = vld [vmem:[#allocation3 + $0x24] ss:$8 sps:$4 sm:$0xff]   ;;  %v8022_v44 = vld [vmem:[#allocation6 + $0x150] sm:$0xff]   ;;  %v8026_v48 = vld [vmem:[#allocation6 + $0x158] sm:$0xff]  }
  0xae   :  { %7796 = vmatprep.subr.bf16.mxu1 %v7989_v13  ;;  %v8014_v36 = vld [vmem:[#allocation6 + $0x140] sm:$0xff]   ;;  %677 = vmatprep.mubr.bf16.mxu1 %v8013_v35  ;;  %v8018_v40 = vld [vmem:[#allocation6 + $0x148] sm:$0xff]   ;;  %v8023_v45 = vld [vmem:[#allocation6 + $0x1d0] sm:$0xff]  }
  0xaf   :  { %v8015_v37 = vld [vmem:[#allocation6 + $0x1c0] sm:$0xff]   ;;  %v8019_v41 = vld [vmem:[#allocation6 + $0x1c8] sm:$0xff]   ;;  %v8024_v46 = vld [vmem:[#allocation6 + $0x110] sm:$0xff]  }
  0xb0   :  { %7769 = vmatpush3.bf16.msra.mxu0 %v7990_v14  ;;  %v8016_v38 = vld [vmem:[#allocation6 + $0x100] sm:$0xff]   ;;  %v8020_v42 = vld [vmem:[#allocation6 + $0x108] sm:$0xff]   ;;  %v8025_v47 = vld [vmem:[#allocation6 + $0x190] sm:$0xff]  }
  0xb1   :  { %7797 = vmatpush3.bf16.msra.mxu1 %v7991_v15  ;;  %7770 = vmatprep.subr.bf16.mxu0 %v7992_v16  ;;  %v8017_v39 = vld [vmem:[#allocation6 + $0x180] sm:$0xff]   ;;  %v8021_v43 = vld [vmem:[#allocation6 + $0x188] sm:$0xff]   ;;  %v8027_v49 = vld [vmem:[#allocation6 + $0x1d8] sm:$0xff]  }
  0xb2   :  { %7798 = vmatprep.subr.bf16.mxu1 %v7993_v17  ;;  %v8028_v50 = vld [vmem:[#allocation6 + $0x118] sm:$0xff]   ;;  %v8030_v52 = vld [vmem:[#allocation6 + $0x160] sm:$0xff]   ;;  %v8039_v59 = vld [vmem:[#allocation6 + $0x168] sm:$0xff]  }
  0xb3   :  { %v8029_v51 = vld [vmem:[#allocation6 + $0x198] sm:$0xff]   ;;  %v8031_v53 = vld [vmem:[#allocation6 + $0x1e0] sm:$0xff]   ;;  %v8040_v60 = vld [vmem:[#allocation6 + $0x1e8] sm:$0xff]  }
  0xb4   :  { %7771 = vmatpush3.bf16.msra.mxu0 %v7994_v18  ;;  %v8032_v54 = vld [vmem:[#allocation6 + $0x120] sm:$0xff]   ;;  %v8034_v56 = vld [vmem:[#allocation3 + $0x34] ss:$8 sps:$4 sm:$0xff]   ;;  %v8038_v58 = vld [vmem:[#allocation3 + $0x30] ss:$8 sps:$4 sm:$0xff]  }
  0xb5   :  { %7799 = vmatpush3.bf16.msra.mxu1 %v7995_v19  ;;  %7772 = vmatprep.subr.bf16.mxu0 %v7996_v20  ;;  %v8033_v55 = vld [vmem:[#allocation6 + $0x1a0] sm:$0xff]   ;;  %v8036_v57 = vld [vmem:[#allocation3 + $0x14] ss:$8 sps:$4 sm:$0xff]   ;;  %v8041_v61 = vld [vmem:[#allocation3 + $0x10] ss:$8 sps:$4 sm:$0xff]  }
  0xb6   :  { %7800 = vmatprep.subr.bf16.mxu1 %v7997_v21  ;;  %v8042_v62 = vld [vmem:[#allocation6 + $0x128] sm:$0xff]   ;;  %v8044_v0 = vld [vmem:[#allocation6 + $0x170] sm:$0xff]   ;;  %v8048_v4 = vld [vmem:[#allocation6 + $0x178] sm:$0xff]  }
  0xb7   :  { %v8043_v63 = vld [vmem:[#allocation6 + $0x1a8] sm:$0xff]   ;;  %v8045_v1 = vld [vmem:[#allocation6 + $0x1f0] sm:$0xff]   ;;  %v8049_v5 = vld [vmem:[#allocation6 + $0x1f8] sm:$0xff]  }
  0xb8   :  { %7773 = vmatpush3.bf16.msra.mxu0 %v7998_v22  ;;  %v8046_v2 = vld [vmem:[#allocation6 + $0x130] sm:$0xff]   ;;  %v8050_v6 = vld [vmem:[#allocation6 + $0x138] sm:$0xff]   ;;  %v8052_v8 = vld [vmem:[#allocation3 + $0x40] ss:$8 sps:$4 sm:$0xff]  }
  0xb9   :  { %7801 = vmatpush3.bf16.msra.mxu1 %v7999_v23  ;;  %7774 = vmatprep.subr.bf16.mxu0 %v8000_v24  ;;  %v8047_v3 = vld [vmem:[#allocation6 + $0x1b0] sm:$0xff]   ;;  %v8051_v7 = vld [vmem:[#allocation6 + $0x1b8] sm:$0xff]   ;;  %v8054_v9 = vld [vmem:[#allocation3 + $0x44] ss:$8 sps:$4 sm:$0xff]  }
  0xba   :  { %7802 = vmatprep.subr.bf16.mxu1 %v8001_v25  ;;  %v8055_v10 = vld [vmem:[#allocation3 + $0x60] ss:$8 sps:$4 sm:$0xff]   ;;  %v8057_v11 = vld [vmem:[#allocation3 + $0x64] ss:$8 sps:$4 sm:$0xff]   ;;  %v8066_v20 = vld [vmem:[#allocation3 + $0x54] ss:$8 sps:$4 sm:$0xff]  }
  0xbb   :  { %v8058_v12 = vld [vmem:[#allocation6 + $0x240] sm:$0xff]   ;;  %v8062_v16 = vld [vmem:[#allocation6 + $0x248] sm:$0xff]   ;;  %v8068_v21 = vld [vmem:[#allocation3 + $0x74] ss:$8 sps:$4 sm:$0xff]  }
  0xbc   :  { %7775 = vmatpush3.bf16.msra.mxu0 %v8002_v26  ;;  %v8059_v13 = vld [vmem:[#allocation6 + $0x2c0] sm:$0xff]   ;;  %v8063_v17 = vld [vmem:[#allocation6 + $0x2c8] sm:$0xff]   ;;  %v8070_v22 = vld [vmem:[#allocation3 + $0x50] ss:$8 sps:$4 sm:$0xff]  }
  0xbd   :  { %7803 = vmatpush3.bf16.msra.mxu1 %v8003_v27  ;;  %7776 = vmatprep.subr.bf16.mxu0 %v8004_v28  ;;  %v8060_v14 = vld [vmem:[#allocation6 + $0x200] sm:$0xff]   ;;  %v8064_v18 = vld [vmem:[#allocation6 + $0x208] sm:$0xff]   ;;  %v8071_v23 = vld [vmem:[#allocation3 + $0x70] ss:$8 sps:$4 sm:$0xff]  }
  0xbe   :  { %7804 = vmatprep.subr.bf16.mxu1 %v8005_v29  ;;  %v8061_v15 = vld [vmem:[#allocation6 + $0x280] sm:$0xff]   ;;  %v8065_v19 = vld [vmem:[#allocation6 + $0x288] sm:$0xff]   ;;  %v8072_v24 = vld [vmem:[#allocation6 + $0x250] sm:$0xff]  }
  0xbf   :  { %v8073_v25 = vld [vmem:[#allocation6 + $0x2d0] sm:$0xff]   ;;  %v8076_v28 = vld [vmem:[#allocation6 + $0x258] sm:$0xff]   ;;  %v8081_v33 = vld [vmem:[#allocation6 + $0x2e0] sm:$0xff]  }
  0xc0   :  { %7777 = vmatpush3.bf16.msra.mxu0 %v8006_v30  ;;  %v8074_v26 = vld [vmem:[#allocation6 + $0x210] sm:$0xff]   ;;  %v8077_v29 = vld [vmem:[#allocation6 + $0x2d8] sm:$0xff]   ;;  %v8083_v35 = vld [vmem:[#allocation6 + $0x2a0] sm:$0xff]  }
  0xc1   :  { %7805 = vmatpush3.bf16.msra.mxu1 %v8007_v31  ;;  %7818 = vmatprep.subr.bf16.mxu0 %v8014_v36  ;;  %v8075_v27 = vld [vmem:[#allocation6 + $0x290] sm:$0xff]   ;;  %v8078_v30 = vld [vmem:[#allocation6 + $0x218] sm:$0xff]   ;;  %v8084_v36 = vld [vmem:[#allocation6 + $0x268] sm:$0xff]  }
  0xc2   :  { %7846 = vmatprep.subr.bf16.mxu1 %v8015_v37  ;;  %v8079_v31 = vld [vmem:[#allocation6 + $0x298] sm:$0xff]   ;;  %v8085_v37 = vld [vmem:[#allocation6 + $0x2e8] sm:$0xff]  }
  0xc3   :  { %513 = vmatmul.mubr.bf16.vlgmr.msra.gmra.mrb[0].mxu0 %v8008_v32  ;;  %v8080_v32 = vld [vmem:[#allocation6 + $0x260] sm:$0xff]  }
  0xc4   :  { %678 = vmatmul.mubr.bf16.vlgmr.msra.gmra.mrb[0].mxu1 %v8011_v34  ;;  %7819 = vmatpush3.bf16.msra.mxu0 %v8016_v38  ;;  %v8082_v34 = vld [vmem:[#allocation6 + $0x220] sm:$0xff]   ;;  %v8086_v38 = vld [vmem:[#allocation6 + $0x228] sm:$0xff]  }
  0xc5   :  { %7847 = vmatpush3.bf16.msra.mxu1 %v8017_v39  ;;  %7820 = vmatprep.subr.bf16.mxu0 %v8018_v40  ;;  %v8087_v39 = vld [vmem:[#allocation6 + $0x2a8] sm:$0xff]   ;;  %v8088_v40 = vld [vmem:[#allocation6 + $0x270] sm:$0xff]  }
  0xc6   :  { %7848 = vmatprep.subr.bf16.mxu1 %v8019_v41  ;;  %685 = vmatprep.mubr.bf16.mxu1 %v8034_v56  ;;  %v8089_v41 = vld [vmem:[#allocation6 + $0x2f0] sm:$0xff]   ;;  %v8108_v56 = vld [vmem:[#allocation8 + $0x80] ss:$8 sps:$4 sm:$0xff]  }
  0xc7   :  { %520 = vmatprep.mubr.bf16.mxu0 %v8036_v57  ;;  %v8110_v57 = vld [vmem:[#allocation8 + $0x84] ss:$8 sps:$4 sm:$0xff]  }
  0xc8   :  { %7821 = vmatpush3.bf16.msra.mxu0 %v8020_v42  ;;  %v8090_v42 = vld [vmem:[#allocation6 + $0x230] sm:$0xff]  }
  0xc9   :  { %7849 = vmatpush3.bf16.msra.mxu1 %v8021_v43  ;;  %7822 = vmatprep.subr.bf16.mxu0 %v8022_v44  ;;  %v8091_v43 = vld [vmem:[#allocation6 + $0x2b0] sm:$0xff]   ;;  %v8092_v44 = vld [vmem:[#allocation6 + $0x278] sm:$0xff]  }
  0xca   :  { %7850 = vmatprep.subr.bf16.mxu1 %v8023_v45  ;;  %v8093_v45 = vld [vmem:[#allocation6 + $0x2f8] sm:$0xff]  }
  0xcb   :  { %521 = vmatmul.mubr.bf16.gmra.mrb[4].mxu0 %v8041_v61  ;;  %v8114_v61 = vld [vmem:[#allocation8 + $0x90] ss:$8 sps:$4 sm:$0xff]  }
  0xcc   :  { %7823 = vmatpush3.bf16.msra.mxu0 %v8024_v46  ;;  %686 = vmatmul.mubr.bf16.gmra.mrb[4].mxu1 %v8038_v58  ;;  %v8094_v46 = vld [vmem:[#allocation6 + $0x238] sm:$0xff]   ;;  %v8111_v58 = vld [vmem:[#allocation8] ss:$8 sps:$4 sm:$0xff]  }
  0xcd   :  { %7851 = vmatpush3.bf16.msra.mxu1 %v8025_v47  ;;  %7824 = vmatprep.subr.bf16.mxu0 %v8026_v48  ;;  %v8095_v47 = vld [vmem:[#allocation6 + $0x2b8] sm:$0xff]   ;;  %v8096_v48 = vld [vmem:[#allocation3 + $0x80] ss:$8 sps:$4 sm:$0xff]  }
  0xce   :  { %7852 = vmatprep.subr.bf16.mxu1 %v8027_v49  ;;  %842 = vmatprep.mubr.bf16.mxu0 %v8054_v9  ;;  %v8098_v49 = vld [vmem:[#allocation3 + $0x84] ss:$8 sps:$4 sm:$0xff]  }
  0xcf   :  { %1007 = vmatprep.mubr.bf16.mxu1 %v8057_v11  ;;  %v8137_v9 = vld [vmem:[#allocation8 + $0x44] ss:$8 sps:$4 sm:$0xff]   ;;  %v8135_v11 = vld [vmem:[#allocation8 + $0x40] ss:$8 sps:$4 sm:$0xff]  }
  0xd0   :  { %7825 = vmatpush3.bf16.msra.mxu0 %v8028_v50  ;;  %v8099_v50 = vld [vmem:[#allocation3 + $0xa0] ss:$8 sps:$4 sm:$0xff]  }
  0xd1   :  { %7853 = vmatpush3.bf16.msra.mxu1 %v8029_v51  ;;  %7826 = vmatprep.subr.bf16.mxu0 %v8030_v52  ;;  %v8101_v51 = vld [vmem:[#allocation3 + $0xa4] ss:$8 sps:$4 sm:$0xff]   ;;  %v8102_v52 = vld [vmem:[#allocation3 + $0x94] ss:$8 sps:$4 sm:$0xff]  }
  0xd2   :  { %7854 = vmatprep.subr.bf16.mxu1 %v8031_v53  ;;  %v8104_v53 = vld [vmem:[#allocation3 + $0xb4] ss:$8 sps:$4 sm:$0xff]  }
  0xd4   :  { %7827 = vmatpush3.bf16.msra.mxu0 %v8032_v54  ;;  %v8106_v54 = vld [vmem:[#allocation3 + $0x90] ss:$8 sps:$4 sm:$0xff]  }
  0xd5   :  { %7855 = vmatpush3.bf16.msra.mxu1 %v8033_v55  ;;  %7828 = vmatprep.subr.bf16.mxu0 %v8039_v59  ;;  %v8107_v55 = vld [vmem:[#allocation3 + $0xb0] ss:$8 sps:$4 sm:$0xff]   ;;  %v8113_v59 = vld [vmem:[#allocation8 + $0x4] ss:$8 sps:$4 sm:$0xff]  }
  0xd6   :  { %7856 = vmatprep.subr.bf16.mxu1 %v8040_v60  ;;  %v8116_v60 = vld [vmem:[#allocation8 + $0x94] ss:$8 sps:$4 sm:$0xff]  }
  0xd8   :  { %7829 = vmatpush3.bf16.msra.mxu0 %v8042_v62  ;;  %v8119_v62 = vld [vmem:[#allocation8 + $0x14] ss:$8 sps:$4 sm:$0xff]  }
  0xd9   :  { %7857 = vmatpush3.bf16.msra.mxu1 %v8043_v63  ;;  %7830 = vmatprep.subr.bf16.mxu0 %v8044_v0  ;;  %v8117_v63 = vld [vmem:[#allocation8 + $0x10] ss:$8 sps:$4 sm:$0xff]   ;;  %v8122_v0 = vld [vmem:[#allocation8 + $0xa4] ss:$8 sps:$4 sm:$0xff]  }
  0xda   :  { %7858 = vmatprep.subr.bf16.mxu1 %v8045_v1  ;;  %v8125_v1 = vld [vmem:[#allocation8 + $0x24] ss:$8 sps:$4 sm:$0xff]  }
  0xdc   :  { %7831 = vmatpush3.bf16.msra.mxu0 %v8046_v2  ;;  %v8120_v2 = vld [vmem:[#allocation8 + $0xa0] ss:$8 sps:$4 sm:$0xff]  }
  0xdd   :  { %7859 = vmatpush3.bf16.msra.mxu1 %v8047_v3  ;;  %7832 = vmatprep.subr.bf16.mxu0 %v8048_v4  ;;  %v8123_v3 = vld [vmem:[#allocation8 + $0x20] ss:$8 sps:$4 sm:$0xff]   ;;  %v8128_v4 = vld [vmem:[#allocation8 + $0xb4] ss:$8 sps:$4 sm:$0xff]  }
  0xde   :  { %7860 = vmatprep.subr.bf16.mxu1 %v8049_v5  ;;  %v8131_v5 = vld [vmem:[#allocation8 + $0x34] ss:$8 sps:$4 sm:$0xff]  }
  0xe0   :  { %7833 = vmatpush3.bf16.msra.mxu0 %v8050_v6  ;;  %v8126_v6 = vld [vmem:[#allocation8 + $0xb0] ss:$8 sps:$4 sm:$0xff]  }
  0xe1   :  { %7861 = vmatpush3.bf16.msra.mxu1 %v8051_v7  ;;  %7874 = vmatprep.subr.bf16.mxu0 %v8058_v12  ;;  %v8129_v7 = vld [vmem:[#allocation8 + $0x30] ss:$8 sps:$4 sm:$0xff]   ;;  %v8140_v12 = vld [vmem:[#allocation8 + $0xd4] ss:$8 sps:$4 sm:$0xff]  }
  0xe2   :  { %7902 = vmatprep.subr.bf16.mxu1 %v8059_v13  ;;  %v8143_v13 = vld [vmem:[#allocation8 + $0x54] ss:$8 sps:$4 sm:$0xff]  }
  0xe3   :  { %843 = vmatmul.mubr.bf16.vlgmr.msra.gmra.mrb[8].mxu0 %v8052_v8  ;;  %v8134_v8 = vld [vmem:[#allocation8 + $0xc4] ss:$8 sps:$4 sm:$0xff]  }
  0xe4   :  { %1008 = vmatmul.mubr.bf16.vlgmr.msra.gmra.mrb[8].mxu1 %v8055_v10  ;;  %7875 = vmatpush3.bf16.msra.mxu0 %v8060_v14  ;;  %v8132_v10 = vld [vmem:[#allocation8 + $0xc0] ss:$8 sps:$4 sm:$0xff]   ;;  %v8138_v14 = vld [vmem:[#allocation8 + $0xd0] ss:$8 sps:$4 sm:$0xff]  }
  0xe5   :  { %7903 = vmatpush3.bf16.msra.mxu1 %v8061_v15  ;;  %7876 = vmatprep.subr.bf16.mxu0 %v8062_v16  ;;  %v8141_v15 = vld [vmem:[#allocation8 + $0x50] ss:$8 sps:$4 sm:$0xff]   ;;  %v8146_v16 = vld [vmem:[#allocation8 + $0xe4] ss:$8 sps:$4 sm:$0xff]  }
  0xe6   :  { %7904 = vmatprep.subr.bf16.mxu1 %v8063_v17  ;;  %850 = vmatprep.mubr.bf16.mxu0 %v8066_v20  ;;  %v8149_v17 = vld [vmem:[#allocation8 + $0x64] ss:$8 sps:$4 sm:$0xff]   ;;  %v8150_v20 = vld [vmem:[#allocation8 + $0xf0] ss:$8 sps:$4 sm:$0xff]  }
  0xe7   :  { %1015 = vmatprep.mubr.bf16.mxu1 %v8068_v21  ;;  %v8152_v21 = vld [vmem:[#allocation8 + $0xf4] ss:$8 sps:$4 sm:$0xff]  }
  0xe8   :  { %7877 = vmatpush3.bf16.msra.mxu0 %v8064_v18  ;;  %v8144_v18 = vld [vmem:[#allocation8 + $0xe0] ss:$8 sps:$4 sm:$0xff]  }
  0xe9   :  { %7905 = vmatpush3.bf16.msra.mxu1 %v8065_v19  ;;  %7878 = vmatprep.subr.bf16.mxu0 %v8072_v24  ;;  %v8147_v19 = vld [vmem:[#allocation8 + $0x60] ss:$8 sps:$4 sm:$0xff]   ;;  %v9185_v24 = vmov 0  }
  0xea   :  { %7906 = vmatprep.subr.bf16.mxu1 %v8073_v25  ;;  %v8158_v25 = vld [vmem:[#allocation8 + $0x104] ss:$8 sps:$4 sm:$0xff]  }
  0xeb   :  { %851 = vmatmul.mubr.bf16.gmra.mrb[12].mxu0 %v8070_v22  ;;  %v8153_v22 = vld [vmem:[#allocation8 + $0x70] ss:$8 sps:$4 sm:$0xff]  }
  0xec   :  { %1016 = vmatmul.mubr.bf16.gmra.mrb[12].mxu1 %v8071_v23  ;;  %7879 = vmatpush3.bf16.msra.mxu0 %v8074_v26  ;;  %v8155_v23 = vld [vmem:[#allocation8 + $0x74] ss:$8 sps:$4 sm:$0xff]   ;;  %v8161_v26 = vld [vmem:[#allocation8 + $0x184] ss:$8 sps:$4 sm:$0xff]  }
  0xed   :  { %7907 = vmatpush3.bf16.msra.mxu1 %v8075_v27  ;;  %7880 = vmatprep.subr.bf16.mxu0 %v8076_v28 }
  0xee   :  { %7908 = vmatprep.subr.bf16.mxu1 %v8077_v29  ;;  %1172 = vmatprep.mubr.bf16.mxu0 %v8098_v49 }
  0xef   :  { %1337 = vmatprep.mubr.bf16.mxu1 %v8101_v51 }
  0xf0   :  { %7881 = vmatpush3.bf16.msra.mxu0 %v8078_v30 }
  0xf1   :  { %7909 = vmatpush3.bf16.msra.mxu1 %v8079_v31  ;;  %7882 = vmatprep.subr.bf16.mxu0 %v8080_v32 }
  0xf2   :  { %7910 = vmatprep.subr.bf16.mxu1 %v8081_v33 }
  0xf4   :  { %7883 = vmatpush3.bf16.msra.mxu0 %v8082_v34 }
  0xf5   :  { %7911 = vmatpush3.bf16.msra.mxu1 %v8083_v35  ;;  %7884 = vmatprep.subr.bf16.mxu0 %v8084_v36 }
  0xf6   :  { %7912 = vmatprep.subr.bf16.mxu1 %v8085_v37 }
  0xf8   :  { %7885 = vmatpush3.bf16.msra.mxu0 %v8086_v38 }
  0xf9   :  { %7913 = vmatpush3.bf16.msra.mxu1 %v8087_v39  ;;  %7886 = vmatprep.subr.bf16.mxu0 %v8088_v40 }
  0xfa   :  { %7914 = vmatprep.subr.bf16.mxu1 %v8089_v41 }
  0xfc   :  { %7887 = vmatpush3.bf16.msra.mxu0 %v8090_v42 }
  0xfd   :  { %7915 = vmatpush3.bf16.msra.mxu1 %v8091_v43  ;;  %7888 = vmatprep.subr.bf16.mxu0 %v8092_v44 }
  0xfe   :  { %7916 = vmatprep.subr.bf16.mxu1 %v8093_v45 }
 0x100   :  { %7889 = vmatpush3.bf16.msra.mxu0 %v8094_v46 }
 0x101   :  { %7917 = vmatpush3.bf16.msra.mxu1 %v8095_v47  ;;  %1526 = vmatprep.subr.bf16.mxu0 %v8110_v57 }
 0x102   :  { %1659 = vmatprep.subr.bf16.mxu1 %v8113_v59 }
 0x103   :  { %1173 = vmatmul.mubr.bf16.vlgmr.msra.gmra.mrb[16].mxu0 %v8096_v48 }
 0x104   :  { %1338 = vmatmul.mubr.bf16.vlgmr.msra.gmra.mrb[16].mxu1 %v8099_v50  ;;  %1180 = vmatprep.mubr.bf16.mxu0 %v8102_v52 }
 0x105   :  { %1345 = vmatprep.mubr.bf16.mxu1 %v8104_v53  ;;  %1527 = vmatpush1.bf16.msra.mxu0 %v8108_v56 }
 0x106   :  { %1660 = vmatpush1.bf16.msra.mxu1 %v8111_v58  ;;  %1528 = vmatprep.subr.bf16.mxu0 %v8116_v60 }
 0x107   :  { %1661 = vmatprep.subr.bf16.mxu1 %v8119_v62 }
 0x109   :  { %1529 = vmatpush1.bf16.msra.mxu0 %v8114_v61 }
 0x10a   :  { %1662 = vmatpush1.bf16.msra.mxu1 %v8117_v63  ;;  %1530 = vmatprep.subr.bf16.mxu0 %v8122_v0 }
 0x10b   :  { %1181 = vmatmul.mubr.bf16.gmra.mrb[20].mxu0 %v8106_v54  ;;  %1663 = vmatprep.subr.bf16.mxu1 %v8125_v1 }
 0x10c   :  { %1346 = vmatmul.mubr.bf16.gmra.mrb[20].mxu1 %v8107_v55  ;;  %1558 = vmatprep.mubr.bf16.mxu0 %v9185_v24 }
 0x10d   :  { %1531 = vmatpush1.bf16.msra.mxu0 %v8120_v2  ;;  %1691 = vmatprep.mubr.bf16.mxu1 %v9185_v24 }
 0x10e   :  { %1664 = vmatpush1.bf16.msra.mxu1 %v8123_v3  ;;  %1532 = vmatprep.subr.bf16.mxu0 %v8128_v4 }
 0x10f   :  { %1665 = vmatprep.subr.bf16.mxu1 %v8131_v5 }
 0x111   :  { %1533 = vmatpush1.bf16.msra.mxu0 %v8126_v6 }
 0x112   :  { %1666 = vmatpush1.bf16.msra.mxu1 %v8129_v7  ;;  %1534 = vmatprep.subr.bf16.mxu0 %v8134_v8 }
 0x113   :  { %1667 = vmatprep.subr.bf16.mxu1 %v8137_v9 }
 0x115   :  { %1535 = vmatpush1.bf16.msra.mxu0 %v8132_v10 }
 0x116   :  { %1668 = vmatpush1.bf16.msra.mxu1 %v8135_v11  ;;  %1536 = vmatprep.subr.bf16.mxu0 %v8140_v12 }
 0x117   :  { %1669 = vmatprep.subr.bf16.mxu1 %v8143_v13 }
 0x119   :  { %1537 = vmatpush1.bf16.msra.mxu0 %v8138_v14 }
 0x11a   :  { %1670 = vmatpush1.bf16.msra.mxu1 %v8141_v15  ;;  %1538 = vmatprep.subr.bf16.mxu0 %v8146_v16 }
 0x11b   :  { %1671 = vmatprep.subr.bf16.mxu1 %v8149_v17 }
 0x11d   :  { %1539 = vmatpush1.bf16.msra.mxu0 %v8144_v18 }
 0x11e   :  { %1672 = vmatpush1.bf16.msra.mxu1 %v8147_v19  ;;  %1540 = vmatprep.subr.bf16.mxu0 %v8152_v21 }
 0x11f   :  { %1673 = vmatprep.subr.bf16.mxu1 %v8155_v23 }
 0x121   :  { %1541 = vmatpush1.bf16.msra.mxu0 %v8150_v20 }
 0x122   :  { %1674 = vmatpush1.bf16.msra.mxu1 %v8153_v22  ;;  %1827 = vmatprep.subr.bf16.mxu0 %v8158_v25 }
 0x123   :  { %1979 = vmatprep.subr.bf16.mxu1 %v8161_v26 }
 0x196   :  { %v7778_v27 = vpop.f32.mrb[0].mxu0 }
 0x197   :  { %v7806_v28 = vpop.f32.mrb[0].mxu1  ;;  %v7779_v29 = vpop.f32.mrb[1].mxu0 }
 0x198   :  { %v7780_v30 = vadd.f32 %v7779_v29, %v7778_v27  ;;  %v7807_v31 = vpop.f32.mrb[1].mxu1  ;;  %v7781_v32 = vpop.f32.mrb[2].mxu0 }
 0x199   :  { %v7808_v33 = vadd.f32 %v7807_v31, %v7806_v28  ;;  %v7809_v34 = vpop.f32.mrb[2].mxu1  ;;  %v7782_v35 = vpop.f32.mrb[3].mxu0 }
 0x19a   :  { %v7783_v36 = vadd.f32 %v7782_v35, %v7781_v32  ;;  %v7810_v37 = vpop.f32.mrb[3].mxu1 }
 0x19b   :  { %v7811_v38 = vadd.f32 %v7810_v37, %v7809_v34 }
 0x19c   :  { %v1354_v39 = vpack.c.bf16 %v7783_v36, %v7780_v30 }
 0x19d   :  { %v1356_v40 = vpack.c.bf16 %v7811_v38, %v7808_v33 }
 0x19e   :  { %1366 = vst [vmem:[#allocation2] sm:$0xff] %v1354_v39  ;;  %v7784_v45 = vpop.f32.mrb[4].mxu0 }
 0x19f   :  { %1368 = vst [vmem:[#allocation2 + $0x10] sm:$0xff] %v1356_v40  ;;  %v7812_v41 = vpop.f32.mrb[4].mxu1  ;;  %v7785_v47 = vpop.f32.mrb[5].mxu0 }
 0x1a0   :  { %v7813_v42 = vpop.f32.mrb[5].mxu1  ;;  %v7786_v49 = vadd.f32 %v7785_v47, %v7784_v45  ;;  %v7787_v50 = vpop.f32.mrb[6].mxu0 }
 0x1a1   :  { %v7814_v43 = vadd.f32 %v7813_v42, %v7812_v41  ;;  %v7815_v44 = vpop.f32.mrb[6].mxu1  ;;  %v7788_v52 = vpop.f32.mrb[7].mxu0 }
 0x1a2   :  { %v7816_v46 = vpop.f32.mrb[7].mxu1  ;;  %v7789_v53 = vadd.f32 %v7788_v52, %v7787_v50 }
 0x1a3   :  { %v7817_v48 = vadd.f32 %v7816_v46, %v7815_v44 }
 0x1a4   :  { %v1355_v54 = vpack.c.bf16 %v7789_v53, %v7786_v49 }
 0x1a5   :  { %v1357_v51 = vpack.c.bf16 %v7817_v48, %v7814_v43  ;;  %v1378_v27 = vld [vmem:[#allocation2] sm:$0x1] }
 0x1a6   :  { %1367 = vst [vmem:[#allocation2 + $0x8] sm:$0xff] %v1355_v54  ;;  %v1379_v28 = vld [vmem:[#allocation2 + $0x10] sm:$0x1]  ;;  %v1423_v36 = vunpack.c.l.b16 %v1378_v27  ;;  %v8168_v27 = vld [vmem:[#allocation8 + $0x120] ss:$8 sps:$4 sm:$0xff]  }
 0x1a7   :  { %1369 = vst [vmem:[#allocation2 + $0x18] sm:$0xff] %v1357_v51  ;;  %v1424_v37 = vunpack.c.l.b16 %v1379_v28  ;;  %v8171_v28 = vld [vmem:[#allocation8 + $0x1a0] ss:$8 sps:$4 sm:$0xff]  }
 0x1a8   :  { %v1429_v49 = vrot.slane %v1423_v36, 1 }
 0x1a9   :  { %v1567_v50 = vrot.slane %v1424_v37, 7 }
 0x1b6   :  { %v7834_v55 = vpop.f32.mrb[8].mxu0 }
 0x1b7   :  { %v7862_v56 = vpop.f32.mrb[8].mxu1  ;;  %v7835_v57 = vpop.f32.mrb[9].mxu0 }
 0x1b8   :  { %v7836_v58 = vadd.f32 %v7835_v57, %v7834_v55  ;;  %v7863_v59 = vpop.f32.mrb[9].mxu1  ;;  %v7837_v60 = vpop.f32.mrb[10].mxu0 }
 0x1b9   :  { %v7864_v61 = vadd.f32 %v7863_v59, %v7862_v56  ;;  %v7865_v62 = vpop.f32.mrb[10].mxu1  ;;  %v7838_v63 = vpop.f32.mrb[11].mxu0 }
 0x1ba   :  { %v7839_v0 = vadd.f32 %v7838_v63, %v7837_v60  ;;  %v7866_v1 = vpop.f32.mrb[11].mxu1  ;;  %v1431_v60 = vsel %vm1430_vm0, %v1424_v37, %v1429_v49  ;;  %v8185_v37 = vld [vmem:[#allocation8 + $0x1c4] ss:$8 sps:$4 sm:$0xff]  }
 0x1bb   :  { %v7867_v2 = vadd.f32 %v7866_v1, %v7865_v62  ;;  %v1568_v62 = vsel %vm1430_vm0, %v1567_v50, %v1423_v36 }
 0x1bc   :  { %v1358_v3 = vpack.c.bf16 %v7839_v0, %v7836_v58 }
 0x1bd   :  { %v1360_v4 = vpack.c.bf16 %v7867_v2, %v7864_v61 }
 0x1be   :  { %1370 = vst [vmem:[#allocation2 + $0x20] sm:$0xff] %v1358_v3  ;;  %v7840_v5 = vpop.f32.mrb[12].mxu0 }
 0x1bf   :  { %1372 = vst [vmem:[#allocation2 + $0x30] sm:$0xff] %v1360_v4  ;;  %v7868_v6 = vpop.f32.mrb[12].mxu1  ;;  %v7841_v7 = vpop.f32.mrb[13].mxu0 }
 0x1c0   :  { %v7869_v8 = vpop.f32.mrb[13].mxu1  ;;  %v7842_v9 = vadd.f32 %v7841_v7, %v7840_v5  ;;  %v7843_v11 = vpop.f32.mrb[14].mxu0 }
 0x1c1   :  { %v7870_v10 = vadd.f32 %v7869_v8, %v7868_v6  ;;  %v7871_v12 = vpop.f32.mrb[14].mxu1  ;;  %v7844_v13 = vpop.f32.mrb[15].mxu0 }
 0x1c2   :  { %v7872_v14 = vpop.f32.mrb[15].mxu1  ;;  %v7845_v15 = vadd.f32 %v7844_v13, %v7843_v11 }
 0x1c3   :  { %v7873_v16 = vadd.f32 %v7872_v14, %v7871_v12  ;;  %v8156_v14 = vld [vmem:[#allocation8 + $0x100] ss:$8 sps:$4 sm:$0xff]  }
 0x1c4   :  { %v1359_v17 = vpack.c.bf16 %v7845_v15, %v7842_v9  ;;  %v8159_v15 = vld [vmem:[#allocation8 + $0x180] ss:$8 sps:$4 sm:$0xff]  }
 0x1c5   :  { %v1361_v18 = vpack.c.bf16 %v7873_v16, %v7870_v10  ;;  %v1380_v33 = vld [vmem:[#allocation2 + $0x20] sm:$0x1]  ;;  %v1702_v36 = vld [vmem:[#allocation2 + $0x20] sm:$0x2] }
 0x1c6   :  { %1371 = vst [vmem:[#allocation2 + $0x28] sm:$0xff] %v1359_v17  ;;  %v1381_v40 = vld [vmem:[#allocation2 + $0x30] sm:$0x1]  ;;  %v1425_v41 = vunpack.c.l.b16 %v1380_v33  ;;  %v1701_v33 = vld [vmem:[#allocation2 + $0x10] sm:$0x2] }
 0x1c7   :  { %1373 = vst [vmem:[#allocation2 + $0x38] sm:$0xff] %v1361_v18  ;;  %v1426_v48 = vunpack.c.l.b16 %v1381_v40  ;;  %v8180_v40 = vld [vmem:[#allocation8 + $0x140] ss:$8 sps:$4 sm:$0xff]  }
 0x1c8   :  { %v1432_v54 = vrot.slane %v1425_v41, 7  ;;  %v1569_v55 = vrot.slane %v1425_v41, 6  ;;  %v8183_v41 = vld [vmem:[#allocation8 + $0x1c0] ss:$8 sps:$4 sm:$0xff]  }
 0x1c9   :  { %v1435_v61 = vrot.slane %v1426_v48, 6  ;;  %v1571_v63 = vrot.slane %v1426_v48, 5 }
 0x1ca   :  { %v1434_v2 = vsel %vm1433_vm1, %v1432_v54, %v1431_v60  ;;  %v1570_v3 = vsel %vm1433_vm1, %v1569_v55, %v1568_v62  ;;  %v8186_v55 = vld [vmem:[#allocation8 + $0x150] ss:$8 sps:$4 sm:$0xff]  }
 0x1cb   :  { %v1437_v8 = vsel %vm1436_vm2, %v1435_v61, %v1434_v2  ;;  %v1572_v9 = vsel %vm1436_vm2, %v1571_v63, %v1570_v3  ;;  %v8192_v3 = vld [vmem:[#allocation8 + $0x160] ss:$8 sps:$4 sm:$0xff]  }
 0x1d6   :  { %v7890_v19 = vpop.f32.mrb[16].mxu0 }
 0x1d7   :  { %v7891_v20 = vpop.f32.mrb[17].mxu0  ;;  %v7918_v21 = vpop.f32.mrb[16].mxu1 }
 0x1d8   :  { %v7892_v22 = vadd.f32 %v7891_v20, %v7890_v19  ;;  %v7893_v23 = vpop.f32.mrb[18].mxu0  ;;  %v7919_v25 = vpop.f32.mrb[17].mxu1  ;;  %v8164_v20 = vld [vmem:[#allocation8 + $0x114] ss:$8 sps:$4 sm:$0xff]  }
 0x1d9   :  { %v7894_v26 = vpop.f32.mrb[19].mxu0  ;;  %v7920_v29 = vadd.f32 %v7919_v25, %v7918_v21  ;;  %v7921_v30 = vpop.f32.mrb[18].mxu1  ;;  %v8167_v21 = vld [vmem:[#allocation8 + $0x194] ss:$8 sps:$4 sm:$0xff]   ;;  %v8170_v25 = vld [vmem:[#allocation8 + $0x124] ss:$8 sps:$4 sm:$0xff]  }
 0x1da   :  { %v7895_v31 = vadd.f32 %v7894_v26, %v7893_v23  ;;  %v7922_v32 = vpop.f32.mrb[19].mxu1  ;;  %v8165_v23 = vld [vmem:[#allocation8 + $0x190] ss:$8 sps:$4 sm:$0xff]   ;;  %v8173_v26 = vld [vmem:[#allocation8 + $0x1a4] ss:$8 sps:$4 sm:$0xff]  }
 0x1db   :  { %v7923_v35 = vadd.f32 %v7922_v32, %v7921_v30  ;;  %v8179_v30 = vld [vmem:[#allocation8 + $0x1b4] ss:$8 sps:$4 sm:$0xff]   ;;  %v8174_v32 = vld [vmem:[#allocation8 + $0x130] ss:$8 sps:$4 sm:$0xff]  }
 0x1dc   :  { %v1362_v34 = vpack.c.bf16 %v7895_v31, %v7892_v22  ;;  %v8162_v22 = vld [vmem:[#allocation8 + $0x110] ss:$8 sps:$4 sm:$0xff]   ;;  %v1700_v31 = vld [vmem:[#allocation2] sm:$0x2] }
 0x1dd   :  { %v1364_v38 = vpack.c.bf16 %v7923_v35, %v7920_v29  ;;  %v8176_v29 = vld [vmem:[#allocation8 + $0x134] ss:$8 sps:$4 sm:$0xff]   ;;  %v8182_v35 = vld [vmem:[#allocation8 + $0x144] ss:$8 sps:$4 sm:$0xff]  }
 0x1de   :  { %1374 = vst [vmem:[#allocation2 + $0x40] sm:$0xff] %v1362_v34  ;;  %v7896_v39 = vpop.f32.mrb[20].mxu0  ;;  %v8177_v34 = vld [vmem:[#allocation8 + $0x1b0] ss:$8 sps:$4 sm:$0xff]  }
 0x1df   :  { %v7897_v42 = vpop.f32.mrb[21].mxu0  ;;  %1376 = vst [vmem:[#allocation2 + $0x50] sm:$0xff] %v1364_v38  ;;  %v7924_v43 = vpop.f32.mrb[20].mxu1  ;;  %v1703_v38 = vld [vmem:[#allocation2 + $0x30] sm:$0x2] }
 0x1e0   :  { %v7898_v44 = vadd.f32 %v7897_v42, %v7896_v39  ;;  %v7899_v45 = vpop.f32.mrb[22].mxu0  ;;  %v7925_v46 = vpop.f32.mrb[21].mxu1  ;;  %v1729_v39 = vunpack.c.l.b16 %v1700_v31  ;;  %v1730_v42 = vunpack.c.l.b16 %v1701_v33  ;;  %v1732_v49 = vunpack.c.l.b16 %v1703_v38  ;;  %v8219_v31 = vld [vmem:[#allocation8 + $0x2a0] ss:$8 sps:$4 sm:$0xff]   ;;  %v8227_v33 = vld [vmem:[#allocation8 + $0x2b4] ss:$8 sps:$4 sm:$0xff]  }
 0x1e1   :  { %v7900_v47 = vpop.f32.mrb[23].mxu0  ;;  %v7926_v51 = vadd.f32 %v7925_v46, %v7924_v43  ;;  %v7927_v52 = vpop.f32.mrb[22].mxu1  ;;  %v1731_v43 = vunpack.c.l.b16 %v1702_v36  ;;  %v8191_v46 = vld [vmem:[#allocation8 + $0x1d4] ss:$8 sps:$4 sm:$0xff]   ;;  %v8222_v36 = vld [vmem:[#allocation8 + $0x230] ss:$8 sps:$4 sm:$0xff]  }
 0x1e2   :  { %v7901_v53 = vadd.f32 %v7900_v47, %v7899_v45  ;;  %v7928_v56 = vpop.f32.mrb[23].mxu1  ;;  %v1735_v48 = vrot.slane %v1729_v39, 2  ;;  %v1736_v50 = vrot.slane %v1730_v42, 1  ;;  %v1739_v61 = vrot.slane %v1732_v49, 7  ;;  %v2024_v38 = vld [vmem:[#allocation2 + $0x20] sm:$0x4] }
 0x1e3   :  { %v7929_v58 = vadd.f32 %v7928_v56, %v7927_v52  ;;  %v1888_v52 = vrot.slane %v1730_v42, 2  ;;  %v1890_v54 = vrot.slane %v1731_v43, 1  ;;  %v8189_v56 = vld [vmem:[#allocation8 + $0x1d0] ss:$8 sps:$4 sm:$0xff]  }
 0x1e4   :  { %v1363_v57 = vpack.c.bf16 %v7901_v53, %v7898_v44  ;;  %v8188_v44 = vld [vmem:[#allocation8 + $0x154] ss:$8 sps:$4 sm:$0xff]   ;;  %v1737_v60 = vsel %vm1430_vm0, %v1736_v50, %v1735_v48 }
 0x1e5   :  { %v1382_v59 = vld [vmem:[#allocation2 + $0x40] sm:$0x1]  ;;  %v1365_v0 = vpack.c.bf16 %v7929_v58, %v7926_v51  ;;  %v1704_v45 = vld [vmem:[#allocation2 + $0x40] sm:$0x2]  ;;  %v1887_v51 = vrot.slane %v1729_v39, 3  ;;  %v1738_v63 = vsel %vm1433_vm1, %v1731_v43, %v1737_v60 }
 0x1e6   :  { %1375 = vst [vmem:[#allocation2 + $0x48] sm:$0xff] %v1363_v57  ;;  %v1427_v1 = vunpack.c.l.b16 %v1382_v59  ;;  %v1383_v4 = vld [vmem:[#allocation2 + $0x50] sm:$0x1]  ;;  %v1705_v47 = vld [vmem:[#allocation2 + $0x50] sm:$0x2]  ;;  %v1733_v53 = vunpack.c.l.b16 %v1704_v45  ;;  %v2053_v45 = vunpack.c.l.b16 %v2024_v38 }
 0x1e7   :  { %1377 = vst [vmem:[#allocation2 + $0x58] sm:$0xff] %v1365_v0  ;;  %v1428_v5 = vunpack.c.l.b16 %v1383_v4  ;;  %v8194_v57 = vld [vmem:[#allocation8 + $0x164] ss:$8 sps:$4 sm:$0xff]   ;;  %v1734_v59 = vunpack.c.l.b16 %v1705_v47  ;;  %v1889_v62 = vsel %vm1430_vm0, %v1888_v52, %v1887_v51  ;;  %v8195_v4 = vld [vmem:[#allocation8 + $0x1e0] ss:$8 sps:$4 sm:$0xff]  }
 0x1e8   :  { %v1438_v6 = vrot.slane %v1427_v1, 5  ;;  %v1573_v7 = vrot.slane %v1427_v1, 4  ;;  %v8197_v58 = vld [vmem:[#allocation8 + $0x1e4] ss:$8 sps:$4 sm:$0xff]   ;;  %v1741_v0 = vrot.slane %v1733_v53, 6  ;;  %v1891_v1 = vsel %vm1433_vm1, %v1890_v54, %v1889_v62 }
 0x1e9   :  { %v1441_v11 = vrot.slane %v1428_v5, 4  ;;  %v1575_v13 = vrot.slane %v1428_v5, 3  ;;  %v1893_v2 = vrot.slane %v1733_v53, 7  ;;  %v8200_v5 = vld [vmem:[#allocation8 + $0x174] ss:$8 sps:$4 sm:$0xff]  }
 0x1ea   :  { %v1440_v10 = vsel %vm1439_vm3, %v1438_v6, %v1437_v8  ;;  %v1574_v12 = vsel %vm1439_vm3, %v1573_v7, %v1572_v9  ;;  %v8203_v6 = vld [vmem:[#allocation8 + $0x1f4] ss:$8 sps:$4 sm:$0xff]   ;;  %v1740_v7 = vsel %vm1436_vm2, %v1739_v61, %v1738_v63  ;;  %v1743_v8 = vrot.slane %v1734_v59, 5  ;;  %v8230_v39 = vld [vmem:[#allocation8 + $0x244] ss:$8 sps:$4 sm:$0xff]  }
 0x1eb   :  { %v1443_v16 = vsel %vm1442_vm4, %v1441_v11, %v1440_v10  ;;  %v1576_v17 = vsel %vm1442_vm4, %v1575_v13, %v1574_v12  ;;  %v1892_v9 = vsel %vm1436_vm2, %v1732_v49, %v1891_v1  ;;  %v1895_v10 = vrot.slane %v1734_v59, 6  ;;  %v8198_v13 = vld [vmem:[#allocation8 + $0x170] ss:$8 sps:$4 sm:$0xff]   ;;  %v8228_v43 = vld [vmem:[#allocation8 + $0x240] ss:$8 sps:$4 sm:$0xff]  }
 0x1ec   :  { %v1444_v18 = vpack.c.b16 %v1443_v16, %v1443_v16  ;;  %v1577_v19 = vpack.c.b16 %v1576_v17, %v1576_v17  ;;  %v1742_v11 = vsel %vm1439_vm3, %v1741_v0, %v1740_v7  ;;  %v1894_v12 = vsel %vm1439_vm3, %v1893_v2, %v1892_v9  ;;  %v8209_v16 = vld [vmem:[#allocation8 + $0x284] ss:$8 sps:$4 sm:$0xff]   ;;  %v8236_v47 = vld [vmem:[#allocation8 + $0x254] ss:$8 sps:$4 sm:$0xff]   ;;  %v2026_v48 = vld [vmem:[#allocation2 + $0x40] sm:$0x4] }
 0x1ed   :  { %v1744_v17 = vsel %vm1442_vm4, %v1743_v8, %v1742_v11  ;;  %v8239_v49 = vld [vmem:[#allocation8 + $0x2d4] ss:$8 sps:$4 sm:$0xff]   ;;  %v2027_v50 = vld [vmem:[#allocation2 + $0x50] sm:$0x4]  ;;  %v8242_v61 = vld [vmem:[#allocation8 + $0x264] ss:$8 sps:$4 sm:$0xff]  }
 0x1ee   :  { %1559 = vmatmul.mubr.bf16.vlgmr.msra.gmra.mrb[24].mxu0 %v1444_v18  ;;  %1692 = vmatmul.mubr.bf16.vlgmr.msra.gmra.mrb[24].mxu1 %v1577_v19  ;;  %v1896_v18 = vsel %vm1442_vm4, %v1895_v10, %v1894_v12  ;;  %v8204_v19 = vld [vmem:[#allocation8 + $0x200] ss:$8 sps:$4 sm:$0xff]   ;;  %v8234_v59 = vld [vmem:[#allocation8 + $0x250] ss:$8 sps:$4 sm:$0xff]   ;;  %v8245_v62 = vld [vmem:[#allocation8 + $0x2e4] ss:$8 sps:$4 sm:$0xff]   ;;  %v2056_v0 = vunpack.c.l.b16 %v2027_v50 }
 0x1ef   :  { %1828 = vmatpush1.bf16.msra.mxu0 %v8156_v14  ;;  %1980 = vmatpush1.bf16.msra.mxu1 %v8159_v15  ;;  %v8201_v14 = vld [vmem:[#allocation8 + $0x1f0] ss:$8 sps:$4 sm:$0xff]   ;;  %v8206_v15 = vld [vmem:[#allocation8 + $0x204] ss:$8 sps:$4 sm:$0xff]   ;;  %v8240_v7 = vld [vmem:[#allocation8 + $0x260] ss:$8 sps:$4 sm:$0xff]  }
 0x1f0   :  { %1829 = vmatprep.subr.bf16.mxu0 %v8164_v20  ;;  %1981 = vmatprep.subr.bf16.mxu1 %v8167_v21  ;;  %v8207_v20 = vld [vmem:[#allocation8 + $0x280] ss:$8 sps:$4 sm:$0xff]   ;;  %v8212_v21 = vld [vmem:[#allocation8 + $0x214] ss:$8 sps:$4 sm:$0xff]   ;;  %v8237_v60 = vld [vmem:[#allocation8 + $0x2d0] ss:$8 sps:$4 sm:$0xff]  }
 0x1f1   :  { %1859 = vmatprep.mubr.bf16.mxu0 %v9185_v24  ;;  %2011 = vmatprep.mubr.bf16.mxu1 %v9185_v24  ;;  %v8243_v8 = vld [vmem:[#allocation8 + $0x2e0] ss:$8 sps:$4 sm:$0xff]   ;;  %v8248_v9 = vld [vmem:[#allocation8 + $0x274] ss:$8 sps:$4 sm:$0xff]   ;;  %v2065_v12 = vrot.slane %v2056_v0, 7 }
 0x1f2   :  { %v8251_v10 = vld [vmem:[#allocation8 + $0x2f4] ss:$8 sps:$4 sm:$0xff]  }
 0x1f3   :  { %1830 = vmatpush1.bf16.msra.mxu0 %v8162_v22  ;;  %1982 = vmatpush1.bf16.msra.mxu1 %v8165_v23  ;;  %v8215_v22 = vld [vmem:[#allocation8 + $0x294] ss:$8 sps:$4 sm:$0xff]   ;;  %v1745_v23 = vpack.c.b16 %v1744_v17, %v1744_v17  ;;  %v8249_v17 = vld [vmem:[#allocation8 + $0x2f0] ss:$8 sps:$4 sm:$0xff]  }
 0x1f4   :  { %1831 = vmatprep.subr.bf16.mxu0 %v8170_v25  ;;  %1983 = vmatprep.subr.bf16.mxu1 %v8173_v26  ;;  %v1897_v25 = vpack.c.b16 %v1896_v18, %v1896_v18  ;;  %v8210_v26 = vld [vmem:[#allocation8 + $0x210] ss:$8 sps:$4 sm:$0xff]   ;;  %v8254_v18 = vld [vmem:[#allocation8 + $0x304] ss:$8 sps:$4 sm:$0xff]   ;;  %v8275_v38 = vld [vmem:[#allocation8 + $0x3b4] ss:$8 sps:$4 sm:$0xff]  }
 0x1f7   :  { %1832 = vmatpush1.bf16.msra.mxu0 %v8168_v27  ;;  %1984 = vmatpush1.bf16.msra.mxu1 %v8171_v28  ;;  %v8213_v27 = vld [vmem:[#allocation8 + $0x290] ss:$8 sps:$4 sm:$0xff]   ;;  %v8218_v28 = vld [vmem:[#allocation8 + $0x224] ss:$8 sps:$4 sm:$0xff]  }
 0x1f8   :  { %1833 = vmatprep.subr.bf16.mxu0 %v8176_v29  ;;  %1985 = vmatprep.subr.bf16.mxu1 %v8179_v30  ;;  %v8221_v29 = vld [vmem:[#allocation8 + $0x2a4] ss:$8 sps:$4 sm:$0xff]   ;;  %v8216_v30 = vld [vmem:[#allocation8 + $0x220] ss:$8 sps:$4 sm:$0xff]  }
 0x1fb   :  { %1834 = vmatpush1.bf16.msra.mxu0 %v8174_v32  ;;  %1986 = vmatpush1.bf16.msra.mxu1 %v8177_v34  ;;  %v8224_v32 = vld [vmem:[#allocation8 + $0x234] ss:$8 sps:$4 sm:$0xff]   ;;  %v2022_v34 = vld [vmem:[#allocation2] sm:$0x4] }
 0x1fc   :  { %1835 = vmatprep.subr.bf16.mxu0 %v8182_v35  ;;  %1987 = vmatprep.subr.bf16.mxu1 %v8185_v37  ;;  %v2023_v35 = vld [vmem:[#allocation2 + $0x10] sm:$0x4] }
 0x1fd   :  { %v8225_v37 = vld [vmem:[#allocation8 + $0x2b0] ss:$8 sps:$4 sm:$0xff]   ;;  %v2052_v42 = vunpack.c.l.b16 %v2023_v35  ;;  %v2344_v35 = vld [vmem:[#allocation2] sm:$0x8] }
 0x1ff   :  { %1836 = vmatpush1.bf16.msra.mxu0 %v8180_v40  ;;  %1988 = vmatpush1.bf16.msra.mxu1 %v8183_v41  ;;  %v8233_v40 = vld [vmem:[#allocation8 + $0x2c4] ss:$8 sps:$4 sm:$0xff]   ;;  %v2051_v41 = vunpack.c.l.b16 %v2022_v34  ;;  %v2058_v52 = vrot.slane %v2052_v42, 3  ;;  %v8267_v34 = vld [vmem:[#allocation8 + $0x3a0] ss:$8 sps:$4 sm:$0xff]  }
 0x200   :  { %1837 = vmatprep.subr.bf16.mxu0 %v8188_v44  ;;  %1989 = vmatprep.subr.bf16.mxu1 %v8191_v46  ;;  %v2025_v44 = vld [vmem:[#allocation2 + $0x30] sm:$0x4]  ;;  %v8231_v46 = vld [vmem:[#allocation8 + $0x2c0] ss:$8 sps:$4 sm:$0xff]  }
 0x201   :  { %v2057_v51 = vrot.slane %v2051_v41, 4  ;;  %v2054_v53 = vunpack.c.l.b16 %v2025_v44  ;;  %v2209_v54 = vrot.slane %v2051_v41, 5  ;;  %v2373_v41 = vunpack.c.l.b16 %v2344_v35  ;;  %v8309_v35 = vld [vmem:[#allocation8 + $0x490] ss:$8 sps:$4 sm:$0xff]  }
 0x203   :  { %1838 = vmatpush1.bf16.msra.mxu0 %v8186_v55  ;;  %1990 = vmatpush1.bf16.msra.mxu1 %v8189_v56  ;;  %v2210_v55 = vrot.slane %v2052_v42, 4  ;;  %v2055_v56 = vunpack.c.l.b16 %v2026_v48  ;;  %v2059_v63 = vsel %vm1430_vm0, %v2058_v52, %v2057_v51  ;;  %v2062_v1 = vrot.slane %v2054_v53, 1  ;;  %v8270_v42 = vld [vmem:[#allocation8 + $0x330] ss:$8 sps:$4 sm:$0xff]   ;;  %v8279_v48 = vld [vmem:[#allocation8 + $0x3c0] ss:$8 sps:$4 sm:$0xff]  }
 0x204   :  { %1839 = vmatprep.subr.bf16.mxu0 %v8194_v57  ;;  %1991 = vmatprep.subr.bf16.mxu1 %v8197_v58  ;;  %v2060_v57 = vrot.slane %v2053_v45, 2  ;;  %v2212_v58 = vrot.slane %v2053_v45, 3  ;;  %v8278_v45 = vld [vmem:[#allocation8 + $0x344] ss:$8 sps:$4 sm:$0xff]   ;;  %v2379_v51 = vrot.slane %v2373_v41, 6  ;;  %v2532_v52 = vrot.slane %v2373_v41, 7 }
 0x205   :  { %v2211_v2 = vsel %vm1430_vm0, %v2210_v55, %v2209_v54  ;;  %v2348_v54 = vld [vmem:[#allocation2 + $0x40] sm:$0x8]  ;;  %v8323_v41 = vld [vmem:[#allocation8 + $0x4b4] ss:$8 sps:$4 sm:$0xff]  }
 0x207   :  { %1840 = vmatpush1.bf16.msra.mxu0 %v8192_v3  ;;  %1992 = vmatpush1.bf16.msra.mxu1 %v8195_v4  ;;  %v2214_v3 = vrot.slane %v2054_v53, 2  ;;  %v2061_v4 = vsel %vm1433_vm1, %v2060_v57, %v2059_v63  ;;  %v8284_v53 = vld [vmem:[#allocation8 + $0x354] ss:$8 sps:$4 sm:$0xff]   ;;  %v2349_v57 = vld [vmem:[#allocation2 + $0x50] sm:$0x8] }
 0x208   :  { %1841 = vmatprep.subr.bf16.mxu0 %v8200_v5  ;;  %1993 = vmatprep.subr.bf16.mxu1 %v8203_v6  ;;  %v2213_v5 = vsel %vm1433_vm1, %v2212_v58, %v2211_v2  ;;  %v2216_v6 = vrot.slane %v2055_v56, 1  ;;  %v2063_v11 = vsel %vm1436_vm2, %v2062_v1, %v2061_v4  ;;  %v8293_v1 = vld [vmem:[#allocation8 + $0x3e4] ss:$8 sps:$4 sm:$0xff]   ;;  %v2377_v2 = vunpack.c.l.b16 %v2348_v54  ;;  %v8327_v54 = vld [vmem:[#allocation8 + $0x4c0] ss:$8 sps:$4 sm:$0xff]  }
 0x209   :  { %v2378_v4 = vunpack.c.l.b16 %v2349_v57  ;;  %v8335_v57 = vld [vmem:[#allocation8 + $0x4d4] ss:$8 sps:$4 sm:$0xff]  }
 0x20b   :  { %1842 = vmatpush1.bf16.msra.mxu0 %v8198_v13  ;;  %1994 = vmatpush1.bf16.msra.mxu1 %v8201_v14  ;;  %v2215_v13 = vsel %vm1436_vm2, %v2214_v3, %v2213_v5  ;;  %v2064_v14 = vsel %vm1439_vm3, %v2055_v56, %v2063_v11  ;;  %v8287_v56 = vld [vmem:[#allocation8 + $0x3d4] ss:$8 sps:$4 sm:$0xff]   ;;  %v2539_v11 = vrot.slane %v2377_v2, 3 }
 0x20c   :  { %2149 = vmatprep.subr.bf16.mxu0 %v8206_v15  ;;  %2301 = vmatprep.subr.bf16.mxu1 %v8209_v16  ;;  %v2217_v15 = vsel %vm1439_vm3, %v2216_v6, %v2215_v13  ;;  %v8246_v16 = vld [vmem:[#allocation8 + $0x270] ss:$8 sps:$4 sm:$0xff]   ;;  %v8296_v13 = vld [vmem:[#allocation8 + $0x374] ss:$8 sps:$4 sm:$0xff]  }
 0x20e   :  { %1860 = vmatmul.mubr.bf16.vlgmr.msra.gmra.mrb[28].mxu0 %v1745_v23  ;;  %2012 = vmatmul.mubr.bf16.vlgmr.msra.gmra.mrb[28].mxu1 %v1897_v25  ;;  %v8255_v23 = vld [vmem:[#allocation8 + $0x380] ss:$8 sps:$4 sm:$0xff]   ;;  %v8260_v25 = vld [vmem:[#allocation8 + $0x314] ss:$8 sps:$4 sm:$0xff]  }
 0x20f   :  { %2150 = vmatpush1.bf16.msra.mxu0 %v8204_v19  ;;  %2302 = vmatpush1.bf16.msra.mxu1 %v8207_v20  ;;  %v8257_v19 = vld [vmem:[#allocation8 + $0x384] ss:$8 sps:$4 sm:$0xff]   ;;  %v2066_v20 = vsel %vm1442_vm4, %v2065_v12, %v2064_v14  ;;  %v8291_v12 = vld [vmem:[#allocation8 + $0x3e0] ss:$8 sps:$4 sm:$0xff]   ;;  %v8299_v14 = vld [vmem:[#allocation8 + $0x3f4] ss:$8 sps:$4 sm:$0xff]  }
 0x210   :  { %2151 = vmatprep.subr.bf16.mxu0 %v8212_v21  ;;  %2303 = vmatprep.subr.bf16.mxu1 %v8215_v22  ;;  %v2218_v21 = vsel %vm1442_vm4, %v2056_v0, %v2217_v15  ;;  %v8252_v22 = vld [vmem:[#allocation8 + $0x300] ss:$8 sps:$4 sm:$0xff]   ;;  %v8290_v0 = vld [vmem:[#allocation8 + $0x364] ss:$8 sps:$4 sm:$0xff]  }
 0x211   :  { %2181 = vmatprep.mubr.bf16.mxu0 %v9185_v24  ;;  %2333 = vmatprep.mubr.bf16.mxu1 %v9185_v24 }
 0x213   :  { %2152 = vmatpush1.bf16.msra.mxu0 %v8210_v26  ;;  %2304 = vmatpush1.bf16.msra.mxu1 %v8213_v27  ;;  %v2067_v26 = vpack.c.b16 %v2066_v20, %v2066_v20  ;;  %v2219_v27 = vpack.c.b16 %v2218_v21, %v2218_v21  ;;  %v8294_v21 = vld [vmem:[#allocation8 + $0x370] ss:$8 sps:$4 sm:$0xff]  }
 0x214   :  { %2153 = vmatprep.subr.bf16.mxu0 %v8218_v28  ;;  %2305 = vmatprep.subr.bf16.mxu1 %v8221_v29  ;;  %v8263_v28 = vld [vmem:[#allocation8 + $0x394] ss:$8 sps:$4 sm:$0xff]   ;;  %v8258_v29 = vld [vmem:[#allocation8 + $0x310] ss:$8 sps:$4 sm:$0xff]  }
 0x217   :  { %2154 = vmatpush1.bf16.msra.mxu0 %v8216_v30  ;;  %2306 = vmatpush1.bf16.msra.mxu1 %v8219_v31  ;;  %v8261_v30 = vld [vmem:[#allocation8 + $0x390] ss:$8 sps:$4 sm:$0xff]   ;;  %v8266_v31 = vld [vmem:[#allocation8 + $0x324] ss:$8 sps:$4 sm:$0xff]  }
 0x218   :  { %2155 = vmatprep.subr.bf16.mxu0 %v8224_v32  ;;  %2307 = vmatprep.subr.bf16.mxu1 %v8227_v33  ;;  %v8269_v32 = vld [vmem:[#allocation8 + $0x3a4] ss:$8 sps:$4 sm:$0xff]   ;;  %v8264_v33 = vld [vmem:[#allocation8 + $0x320] ss:$8 sps:$4 sm:$0xff]  }
 0x21b   :  { %2156 = vmatpush1.bf16.msra.mxu0 %v8222_v36  ;;  %2308 = vmatpush1.bf16.msra.mxu1 %v8225_v37  ;;  %v2345_v36 = vld [vmem:[#allocation2 + $0x10] sm:$0x8]  ;;  %v8272_v37 = vld [vmem:[#allocation8 + $0x334] ss:$8 sps:$4 sm:$0xff]  }
 0x21c   :  { %2157 = vmatprep.subr.bf16.mxu0 %v8230_v39  ;;  %2309 = vmatprep.subr.bf16.mxu1 %v8233_v40  ;;  %v2346_v39 = vld [vmem:[#allocation2 + $0x20] sm:$0x8]  ;;  %v2347_v40 = vld [vmem:[#allocation2 + $0x30] sm:$0x8]  ;;  %v2374_v44 = vunpack.c.l.b16 %v2345_v36  ;;  %v8314_v36 = vld [vmem:[#allocation8 + $0x424] ss:$8 sps:$4 sm:$0xff]  }
 0x21d   :  { %v2376_v50 = vunpack.c.l.b16 %v2347_v40  ;;  %v8320_v40 = vld [vmem:[#allocation8 + $0x434] ss:$8 sps:$4 sm:$0xff]  }
 0x21e   :  { %v2380_v55 = vrot.slane %v2374_v44, 5  ;;  %v2533_v58 = vrot.slane %v2374_v44, 6  ;;  %v8318_v44 = vld [vmem:[#allocation8 + $0x430] ss:$8 sps:$4 sm:$0xff]  }
 0x21f   :  { %2158 = vmatpush1.bf16.msra.mxu0 %v8228_v43  ;;  %2310 = vmatpush1.bf16.msra.mxu1 %v8231_v46  ;;  %v8273_v43 = vld [vmem:[#allocation8 + $0x3b0] ss:$8 sps:$4 sm:$0xff]   ;;  %v8281_v46 = vld [vmem:[#allocation8 + $0x3c4] ss:$8 sps:$4 sm:$0xff]   ;;  %v2537_v3 = vrot.slane %v2376_v50, 4 }
 0x220   :  { %2159 = vmatprep.subr.bf16.mxu0 %v8236_v47  ;;  %2311 = vmatprep.subr.bf16.mxu1 %v8239_v49  ;;  %v8276_v47 = vld [vmem:[#allocation8 + $0x340] ss:$8 sps:$4 sm:$0xff]   ;;  %v2375_v49 = vunpack.c.l.b16 %v2346_v39  ;;  %v2381_v5 = vsel %vm1430_vm0, %v2380_v55, %v2379_v51  ;;  %v2534_v6 = vsel %vm1430_vm0, %v2533_v58, %v2532_v52  ;;  %v2671_v51 = vld [vmem:[#allocation2 + $0x30] sm:$0x10]  ;;  %v2672_v55 = vld [vmem:[#allocation2 + $0x40] sm:$0x10] }
 0x221   :  { %v8315_v39 = vld [vmem:[#allocation8 + $0x4a0] ss:$8 sps:$4 sm:$0xff]  }
 0x222   :  { %v2535_v63 = vrot.slane %v2375_v49, 5 }
 0x223   :  { %2160 = vmatpush1.bf16.msra.mxu0 %v8234_v59  ;;  %2312 = vmatpush1.bf16.msra.mxu1 %v8237_v60  ;;  %v8282_v59 = vld [vmem:[#allocation8 + $0x350] ss:$8 sps:$4 sm:$0xff]  }
 0x224   :  { %2161 = vmatprep.subr.bf16.mxu0 %v8242_v61  ;;  %2313 = vmatprep.subr.bf16.mxu1 %v8245_v62  ;;  %v8285_v60 = vld [vmem:[#allocation8 + $0x3d0] ss:$8 sps:$4 sm:$0xff]   ;;  %v2382_v61 = vrot.slane %v2375_v49, 4  ;;  %v2384_v62 = vrot.slane %v2376_v50, 3 }
 0x227   :  { %2162 = vmatpush1.bf16.msra.mxu0 %v8240_v7  ;;  %2314 = vmatpush1.bf16.msra.mxu1 %v8243_v8  ;;  %v8288_v7 = vld [vmem:[#allocation8 + $0x360] ss:$8 sps:$4 sm:$0xff]   ;;  %v2383_v8 = vsel %vm1433_vm1, %v2382_v61, %v2381_v5  ;;  %v2673_v61 = vld [vmem:[#allocation2 + $0x50] sm:$0x10] }
 0x228   :  { %2163 = vmatprep.subr.bf16.mxu0 %v8248_v9  ;;  %2315 = vmatprep.subr.bf16.mxu1 %v8251_v10  ;;  %v2386_v9 = vrot.slane %v2377_v2, 2  ;;  %v2536_v10 = vsel %vm1433_vm1, %v2535_v63, %v2534_v6  ;;  %v2385_v15 = vsel %vm1436_vm2, %v2384_v62, %v2383_v8  ;;  %v2701_v62 = vunpack.c.h.b16 %v2672_v55  ;;  %v8333_v2 = vld [vmem:[#allocation8 + $0x4d0] ss:$8 sps:$4 sm:$0xff]  }
 0x229   :  { %v2702_v6 = vunpack.c.h.b16 %v2673_v61 }
 0x22b   :  { %2164 = vmatpush1.bf16.msra.mxu0 %v8246_v16  ;;  %2316 = vmatpush1.bf16.msra.mxu1 %v8249_v17  ;;  %v2388_v16 = vrot.slane %v2378_v4, 1  ;;  %v2538_v17 = vsel %vm1436_vm2, %v2537_v3, %v2536_v10  ;;  %v8338_v3 = vld [vmem:[#allocation8 + $0x464] ss:$8 sps:$4 sm:$0xff]  }
 0x22c   :  { %2472 = vmatprep.subr.bf16.mxu0 %v8254_v18  ;;  %2625 = vmatprep.subr.bf16.mxu1 %v8257_v19  ;;  %v2541_v18 = vrot.slane %v2378_v4, 2  ;;  %v2387_v19 = vsel %vm1439_vm3, %v2386_v9, %v2385_v15  ;;  %v2540_v20 = vsel %vm1439_vm3, %v2539_v11, %v2538_v17  ;;  %v8341_v4 = vld [vmem:[#allocation8 + $0x4e4] ss:$8 sps:$4 sm:$0xff]   ;;  %v2709_v11 = vrot.slane %v2701_v62, 4  ;;  %v8339_v15 = vld [vmem:[#allocation8 + $0x4e0] ss:$8 sps:$4 sm:$0xff]  }
 0x22d   :  { %v8347_v17 = vld [vmem:[#allocation8 + $0x4f4] ss:$8 sps:$4 sm:$0xff]  }
 0x22e   :  { %2182 = vmatmul.mubr.bf16.vlgmr.msra.gmra.mrb[32].mxu0 %v2067_v26  ;;  %2334 = vmatmul.mubr.bf16.vlgmr.msra.gmra.mrb[32].mxu1 %v2219_v27  ;;  %v2389_v26 = vsel %vm1442_vm4, %v2388_v16, %v2387_v19  ;;  %v2542_v27 = vsel %vm1442_vm4, %v2541_v18, %v2540_v20  ;;  %v8344_v16 = vld [vmem:[#allocation8 + $0x474] ss:$8 sps:$4 sm:$0xff]   ;;  %v2711_v19 = vrot.slane %v2702_v6, 3 }
 0x22f   :  { %2473 = vmatpush1.bf16.msra.mxu0 %v8252_v22  ;;  %2626 = vmatpush1.bf16.msra.mxu1 %v8255_v23  ;;  %v8297_v22 = vld [vmem:[#allocation8 + $0x3f0] ss:$8 sps:$4 sm:$0xff]   ;;  %v8302_v23 = vld [vmem:[#allocation8 + $0x404] ss:$8 sps:$4 sm:$0xff]  }
 0x230   :  { %2474 = vmatprep.subr.bf16.mxu0 %v8260_v25  ;;  %2627 = vmatprep.subr.bf16.mxu1 %v8263_v28  ;;  %v8305_v25 = vld [vmem:[#allocation8 + $0x484] ss:$8 sps:$4 sm:$0xff]   ;;  %v8300_v28 = vld [vmem:[#allocation8 + $0x400] ss:$8 sps:$4 sm:$0xff]  }
 0x231   :  { %2504 = vmatprep.mubr.bf16.mxu0 %v9185_v24  ;;  %2657 = vmatprep.mubr.bf16.mxu1 %v9185_v24 }
 0x233   :  { %2475 = vmatpush1.bf16.msra.mxu0 %v8258_v29  ;;  %2628 = vmatpush1.bf16.msra.mxu1 %v8261_v30  ;;  %v8303_v29 = vld [vmem:[#allocation8 + $0x480] ss:$8 sps:$4 sm:$0xff]   ;;  %v8308_v30 = vld [vmem:[#allocation8 + $0x414] ss:$8 sps:$4 sm:$0xff]  }
 0x234   :  { %2476 = vmatprep.subr.bf16.mxu0 %v8266_v31  ;;  %2629 = vmatprep.subr.bf16.mxu1 %v8269_v32  ;;  %v8311_v31 = vld [vmem:[#allocation8 + $0x494] ss:$8 sps:$4 sm:$0xff]   ;;  %v2390_v32 = vpack.c.b16 %v2389_v26, %v2389_v26  ;;  %v8345_v26 = vld [vmem:[#allocation8 + $0x4f0] ss:$8 sps:$4 sm:$0xff]  }
 0x237   :  { %2477 = vmatpush1.bf16.msra.mxu0 %v8264_v33  ;;  %2630 = vmatpush1.bf16.msra.mxu1 %v8267_v34  ;;  %v2543_v33 = vpack.c.b16 %v2542_v27, %v2542_v27  ;;  %v8306_v34 = vld [vmem:[#allocation8 + $0x410] ss:$8 sps:$4 sm:$0xff]   ;;  %v8350_v27 = vld [vmem:[#allocation8 + $0x504] ss:$8 sps:$4 sm:$0xff]  }
 0x238   :  { %2478 = vmatprep.subr.bf16.mxu0 %v8272_v37  ;;  %2631 = vmatprep.subr.bf16.mxu1 %v8275_v38  ;;  %v8317_v37 = vld [vmem:[#allocation8 + $0x4a4] ss:$8 sps:$4 sm:$0xff]   ;;  %v8312_v38 = vld [vmem:[#allocation8 + $0x420] ss:$8 sps:$4 sm:$0xff]  }
 0x23b   :  { %2479 = vmatpush1.bf16.msra.mxu0 %v8270_v42  ;;  %2632 = vmatpush1.bf16.msra.mxu1 %v8273_v43  ;;  %v2669_v42 = vld [vmem:[#allocation2 + $0x10] sm:$0x10]  ;;  %v2668_v43 = vld [vmem:[#allocation2] sm:$0x10] }
 0x23c   :  { %2480 = vmatprep.subr.bf16.mxu0 %v8278_v45  ;;  %2633 = vmatprep.subr.bf16.mxu1 %v8281_v46  ;;  %v8321_v45 = vld [vmem:[#allocation8 + $0x4b0] ss:$8 sps:$4 sm:$0xff]   ;;  %v2670_v46 = vld [vmem:[#allocation2 + $0x20] sm:$0x10]  ;;  %v2698_v49 = vunpack.c.h.b16 %v2669_v42  ;;  %v2697_v50 = vunpack.c.h.b16 %v2668_v43  ;;  %v8363_v42 = vld [vmem:[#allocation8 + $0x5a0] ss:$8 sps:$4 sm:$0xff]  }
 0x23d   :  { %v2699_v52 = vunpack.c.h.b16 %v2670_v46  ;;  %v8368_v43 = vld [vmem:[#allocation8 + $0x534] ss:$8 sps:$4 sm:$0xff]  }
 0x23e   :  { %v2703_v58 = vrot.slane %v2698_v49, 7  ;;  %v2991_v46 = vld [vmem:[#allocation2 + $0x10] sm:$0x20] }
 0x23f   :  { %2481 = vmatpush1.bf16.msra.mxu0 %v8276_v47  ;;  %2634 = vmatpush1.bf16.msra.mxu1 %v8279_v48  ;;  %v8326_v47 = vld [vmem:[#allocation8 + $0x444] ss:$8 sps:$4 sm:$0xff]   ;;  %v2705_v63 = vrot.slane %v2699_v52, 6 }
 0x240   :  { %2482 = vmatprep.subr.bf16.mxu0 %v8284_v53  ;;  %2635 = vmatprep.subr.bf16.mxu1 %v8287_v56  ;;  %v8329_v48 = vld [vmem:[#allocation8 + $0x4c4] ss:$8 sps:$4 sm:$0xff]   ;;  %v8324_v53 = vld [vmem:[#allocation8 + $0x440] ss:$8 sps:$4 sm:$0xff]   ;;  %v8332_v56 = vld [vmem:[#allocation8 + $0x454] ss:$8 sps:$4 sm:$0xff]   ;;  %v2704_v5 = vsel %vm1430_vm0, %v2703_v58, %v2697_v50 }
 0x241   :  { %v2706_v10 = vsel %vm1433_vm1, %v2705_v63, %v2704_v5  ;;  %v2994_v58 = vld [vmem:[#allocation2 + $0x40] sm:$0x20]  ;;  %v8378_v5 = vld [vmem:[#allocation8 + $0x550] ss:$8 sps:$4 sm:$0xff]  }
 0x243   :  { %2483 = vmatpush1.bf16.msra.mxu0 %v8282_v59  ;;  %2636 = vmatpush1.bf16.msra.mxu1 %v8285_v60  ;;  %v2700_v59 = vunpack.c.h.b16 %v2671_v51  ;;  %v2855_v60 = vrot.slane %v2697_v50, 1  ;;  %v8374_v50 = vld [vmem:[#allocation8 + $0x544] ss:$8 sps:$4 sm:$0xff]  }
 0x244   :  { %2484 = vmatprep.subr.bf16.mxu0 %v8290_v0  ;;  %2637 = vmatprep.subr.bf16.mxu1 %v8293_v1  ;;  %v2857_v0 = vrot.slane %v2699_v52, 7  ;;  %v8330_v1 = vld [vmem:[#allocation8 + $0x450] ss:$8 sps:$4 sm:$0xff]   ;;  %v8377_v51 = vld [vmem:[#allocation8 + $0x5c4] ss:$8 sps:$4 sm:$0xff]  }
 0x245   :  { %v2856_v8 = vsel %vm1430_vm0, %v2698_v49, %v2855_v60  ;;  %v2859_v9 = vrot.slane %v2700_v59, 6  ;;  %v2992_v49 = vld [vmem:[#allocation2 + $0x20] sm:$0x20]  ;;  %v8383_v60 = vld [vmem:[#allocation8 + $0x5d4] ss:$8 sps:$4 sm:$0xff]  }
 0x246   :  { %v3021_v55 = vunpack.c.h.b16 %v2992_v49  ;;  %v3313_v49 = vld [vmem:[#allocation2 + $0x10] sm:$0x40] }
 0x247   :  { %2485 = vmatpush1.bf16.msra.mxu0 %v8288_v7  ;;  %2638 = vmatpush1.bf16.msra.mxu1 %v8291_v12  ;;  %v2707_v7 = vrot.slane %v2700_v59, 5  ;;  %v2858_v12 = vsel %vm1433_vm1, %v2857_v0, %v2856_v8  ;;  %v8380_v59 = vld [vmem:[#allocation8 + $0x554] ss:$8 sps:$4 sm:$0xff]   ;;  %v8389_v8 = vld [vmem:[#allocation8 + $0x5e4] ss:$8 sps:$4 sm:$0xff]  }
 0x248   :  { %2486 = vmatprep.subr.bf16.mxu0 %v8296_v13  ;;  %2639 = vmatprep.subr.bf16.mxu1 %v8299_v14  ;;  %v2861_v13 = vrot.slane %v2701_v62, 5  ;;  %v8336_v14 = vld [vmem:[#allocation8 + $0x460] ss:$8 sps:$4 sm:$0xff]   ;;  %v2860_v20 = vsel %vm1436_vm2, %v2859_v9, %v2858_v12 }
 0x249   :  { %v2708_v18 = vsel %vm1436_vm2, %v2707_v7, %v2706_v10  ;;  %v8386_v7 = vld [vmem:[#allocation8 + $0x564] ss:$8 sps:$4 sm:$0xff]  }
 0x24b   :  { %2487 = vmatpush1.bf16.msra.mxu0 %v8294_v21  ;;  %2640 = vmatpush1.bf16.msra.mxu1 %v8297_v22  ;;  %v2863_v21 = vrot.slane %v2702_v6, 4  ;;  %v2710_v22 = vsel %vm1439_vm3, %v2709_v11, %v2708_v18  ;;  %v8381_v6 = vld [vmem:[#allocation8 + $0x5d0] ss:$8 sps:$4 sm:$0xff]   ;;  %v8387_v18 = vld [vmem:[#allocation8 + $0x5e0] ss:$8 sps:$4 sm:$0xff]  }
 0x24c   :  { %2795 = vmatprep.subr.bf16.mxu0 %v8302_v23  ;;  %2947 = vmatprep.subr.bf16.mxu1 %v8305_v25  ;;  %v2862_v23 = vsel %vm1439_vm3, %v2861_v13, %v2860_v20  ;;  %v8342_v25 = vld [vmem:[#allocation8 + $0x470] ss:$8 sps:$4 sm:$0xff]   ;;  %v8395_v20 = vld [vmem:[#allocation8 + $0x5f4] ss:$8 sps:$4 sm:$0xff]  }
 0x24e   :  { %2505 = vmatmul.mubr.bf16.vlgmr.msra.gmra.mrb[36].mxu0 %v2390_v32  ;;  %2658 = vmatmul.mubr.bf16.vlgmr.msra.gmra.mrb[36].mxu1 %v2543_v33  ;;  %v8351_v32 = vld [vmem:[#allocation8 + $0x580] ss:$8 sps:$4 sm:$0xff]  }
 0x24f   :  { %2796 = vmatpush1.bf16.msra.mxu0 %v8300_v28  ;;  %2948 = vmatpush1.bf16.msra.mxu1 %v8303_v29  ;;  %v8353_v28 = vld [vmem:[#allocation8 + $0x584] ss:$8 sps:$4 sm:$0xff]   ;;  %v2712_v29 = vsel %vm1442_vm4, %v2711_v19, %v2710_v22  ;;  %v8392_v19 = vld [vmem:[#allocation8 + $0x574] ss:$8 sps:$4 sm:$0xff]  }
 0x250   :  { %2797 = vmatprep.subr.bf16.mxu0 %v8308_v30  ;;  %2949 = vmatprep.subr.bf16.mxu1 %v8311_v31  ;;  %v2864_v30 = vsel %vm1442_vm4, %v2863_v21, %v2862_v23  ;;  %v8348_v31 = vld [vmem:[#allocation8 + $0x500] ss:$8 sps:$4 sm:$0xff]   ;;  %v2713_v33 = vpack.c.b16 %v2712_v29, %v2712_v29  ;;  %v8393_v29 = vld [vmem:[#allocation8 + $0x5f0] ss:$8 sps:$4 sm:$0xff]  }
 0x251   :  { %2827 = vmatprep.mubr.bf16.mxu0 %v9185_v24  ;;  %2979 = vmatprep.mubr.bf16.mxu1 %v9185_v24 }
 0x253   :  { %2798 = vmatpush1.bf16.msra.mxu0 %v8306_v34  ;;  %2950 = vmatpush1.bf16.msra.mxu1 %v8309_v35  ;;  %v2865_v34 = vpack.c.b16 %v2864_v30, %v2864_v30  ;;  %v8356_v35 = vld [vmem:[#allocation8 + $0x514] ss:$8 sps:$4 sm:$0xff]   ;;  %v8398_v30 = vld [vmem:[#allocation8 + $0x604] ss:$8 sps:$4 sm:$0xff]  }
 0x254   :  { %2799 = vmatprep.subr.bf16.mxu0 %v8314_v36  ;;  %2951 = vmatprep.subr.bf16.mxu1 %v8317_v37  ;;  %v8359_v36 = vld [vmem:[#allocation8 + $0x594] ss:$8 sps:$4 sm:$0xff]   ;;  %v8354_v37 = vld [vmem:[#allocation8 + $0x510] ss:$8 sps:$4 sm:$0xff]  }
 0x257   :  { %2800 = vmatpush1.bf16.msra.mxu0 %v8312_v38  ;;  %2952 = vmatpush1.bf16.msra.mxu1 %v8315_v39  ;;  %v8357_v38 = vld [vmem:[#allocation8 + $0x590] ss:$8 sps:$4 sm:$0xff]   ;;  %v8362_v39 = vld [vmem:[#allocation8 + $0x524] ss:$8 sps:$4 sm:$0xff]  }
 0x258   :  { %2801 = vmatprep.subr.bf16.mxu0 %v8320_v40  ;;  %2953 = vmatprep.subr.bf16.mxu1 %v8323_v41  ;;  %v8365_v40 = vld [vmem:[#allocation8 + $0x5a4] ss:$8 sps:$4 sm:$0xff]   ;;  %v8360_v41 = vld [vmem:[#allocation8 + $0x520] ss:$8 sps:$4 sm:$0xff]  }
 0x25b   :  { %2802 = vmatpush1.bf16.msra.mxu0 %v8318_v44  ;;  %2954 = vmatpush1.bf16.msra.mxu1 %v8321_v45  ;;  %v8371_v44 = vld [vmem:[#allocation8 + $0x5b4] ss:$8 sps:$4 sm:$0xff]   ;;  %v2990_v45 = vld [vmem:[#allocation2] sm:$0x20] }
 0x25c   :  { %2803 = vmatprep.subr.bf16.mxu0 %v8326_v47  ;;  %2955 = vmatprep.subr.bf16.mxu1 %v8329_v48  ;;  %v8366_v47 = vld [vmem:[#allocation8 + $0x530] ss:$8 sps:$4 sm:$0xff]   ;;  %v3019_v52 = vunpack.c.h.b16 %v2990_v45  ;;  %v8411_v45 = vld [vmem:[#allocation8 + $0x6a0] ss:$8 sps:$4 sm:$0xff]  }
 0x25d   :  { %v8369_v48 = vld [vmem:[#allocation8 + $0x5b0] ss:$8 sps:$4 sm:$0xff]  }
 0x25e   :  { %v3025_v61 = vrot.slane %v3019_v52, 2  ;;  %v3177_v0 = vrot.slane %v3019_v52, 3  ;;  %v3314_v52 = vld [vmem:[#allocation2 + $0x20] sm:$0x40] }
 0x25f   :  { %2804 = vmatpush1.bf16.msra.mxu0 %v8324_v53  ;;  %2956 = vmatpush1.bf16.msra.mxu1 %v8327_v54  ;;  %v3020_v53 = vunpack.c.h.b16 %v2991_v46  ;;  %v2993_v54 = vld [vmem:[#allocation2 + $0x30] sm:$0x20] }
 0x260   :  { %2805 = vmatprep.subr.bf16.mxu0 %v8332_v56  ;;  %2957 = vmatprep.subr.bf16.mxu1 %v8335_v57  ;;  %v8372_v56 = vld [vmem:[#allocation8 + $0x540] ss:$8 sps:$4 sm:$0xff]   ;;  %v3022_v62 = vunpack.c.h.b16 %v2993_v54  ;;  %v8416_v46 = vld [vmem:[#allocation8 + $0x634] ss:$8 sps:$4 sm:$0xff]   ;;  %v8425_v54 = vld [vmem:[#allocation8 + $0x6c4] ss:$8 sps:$4 sm:$0xff]  }
 0x261   :  { %v8375_v57 = vld [vmem:[#allocation8 + $0x5c0] ss:$8 sps:$4 sm:$0xff]   ;;  %v3026_v63 = vrot.slane %v3020_v53, 1 }
 0x262   :  { %v3029_v11 = vrot.slane %v3022_v62, 7 }
 0x263   :  { %2806 = vmatpush1.bf16.msra.mxu0 %v8330_v1  ;;  %2958 = vmatpush1.bf16.msra.mxu1 %v8333_v2  ;;  %v3178_v1 = vrot.slane %v3020_v53, 2  ;;  %v2995_v2 = vld [vmem:[#allocation2 + $0x50] sm:$0x20]  ;;  %v3027_v10 = vsel %vm1430_vm0, %v3026_v63, %v3025_v61  ;;  %v8422_v53 = vld [vmem:[#allocation8 + $0x644] ss:$8 sps:$4 sm:$0xff]  }
 0x264   :  { %2807 = vmatprep.subr.bf16.mxu0 %v8338_v3  ;;  %2959 = vmatprep.subr.bf16.mxu1 %v8341_v4  ;;  %v3023_v3 = vunpack.c.h.b16 %v2994_v58  ;;  %v3180_v4 = vrot.slane %v3021_v55, 1  ;;  %v3024_v9 = vunpack.c.h.b16 %v2995_v2  ;;  %v3028_v13 = vsel %vm1433_vm1, %v3021_v55, %v3027_v10  ;;  %v3316_v61 = vld [vmem:[#allocation2 + $0x40] sm:$0x40]  ;;  %v8431_v63 = vld [vmem:[#allocation8 + $0x6d4] ss:$8 sps:$4 sm:$0xff]  }
 0x265   :  { %v3179_v12 = vsel %vm1430_vm0, %v3178_v1, %v3177_v0  ;;  %v3030_v21 = vsel %vm1436_vm2, %v3029_v11, %v3028_v13  ;;  %v3343_v58 = vunpack.c.h.b16 %v3314_v52  ;;  %v8429_v10 = vld [vmem:[#allocation8 + $0x6d0] ss:$8 sps:$4 sm:$0xff]   ;;  %v8434_v11 = vld [vmem:[#allocation8 + $0x664] ss:$8 sps:$4 sm:$0xff]   ;;  %v8467_v52 = vld [vmem:[#allocation8 + $0x7b4] ss:$8 sps:$4 sm:$0xff]  }
 0x266   :  { %v3033_v22 = vrot.slane %v3024_v9, 5 }
 0x267   :  { %2808 = vmatpush1.bf16.msra.mxu0 %v8336_v14  ;;  %2960 = vmatpush1.bf16.msra.mxu1 %v8339_v15  ;;  %v3031_v14 = vrot.slane %v3023_v3, 6  ;;  %v3181_v15 = vsel %vm1433_vm1, %v3180_v4, %v3179_v12  ;;  %v8437_v12 = vld [vmem:[#allocation8 + $0x6e4] ss:$8 sps:$4 sm:$0xff]  }
 0x268   :  { %2809 = vmatprep.subr.bf16.mxu0 %v8344_v16  ;;  %2961 = vmatprep.subr.bf16.mxu1 %v8347_v17  ;;  %v3183_v16 = vrot.slane %v3023_v3, 7  ;;  %v8384_v17 = vld [vmem:[#allocation8 + $0x560] ss:$8 sps:$4 sm:$0xff]   ;;  %v3182_v23 = vsel %vm1436_vm2, %v3022_v62, %v3181_v15  ;;  %v8428_v62 = vld [vmem:[#allocation8 + $0x654] ss:$8 sps:$4 sm:$0xff]  }
 0x26b   :  { %2810 = vmatpush1.bf16.msra.mxu0 %v8342_v25  ;;  %2962 = vmatpush1.bf16.msra.mxu1 %v8345_v26  ;;  %v3185_v25 = vrot.slane %v3024_v9, 6  ;;  %v3032_v26 = vsel %vm1439_vm3, %v3031_v14, %v3030_v21  ;;  %v8426_v9 = vld [vmem:[#allocation8 + $0x650] ss:$8 sps:$4 sm:$0xff]   ;;  %v8432_v21 = vld [vmem:[#allocation8 + $0x660] ss:$8 sps:$4 sm:$0xff]  }
 0x26c   :  { %3117 = vmatprep.subr.bf16.mxu0 %v8350_v27  ;;  %3269 = vmatprep.subr.bf16.mxu1 %v8353_v28  ;;  %v3184_v27 = vsel %vm1439_vm3, %v3183_v16, %v3182_v23  ;;  %v8390_v28 = vld [vmem:[#allocation8 + $0x570] ss:$8 sps:$4 sm:$0xff]   ;;  %v8440_v23 = vld [vmem:[#allocation8 + $0x674] ss:$8 sps:$4 sm:$0xff]  }
 0x26e   :  { %2828 = vmatmul.mubr.bf16.vlgmr.msra.gmra.mrb[40].mxu0 %v2713_v33  ;;  %2980 = vmatmul.mubr.bf16.vlgmr.msra.gmra.mrb[40].mxu1 %v2865_v34  ;;  %v3186_v33 = vsel %vm1442_vm4, %v3185_v25, %v3184_v27  ;;  %v8396_v34 = vld [vmem:[#allocation8 + $0x600] ss:$8 sps:$4 sm:$0xff]   ;;  %v8443_v25 = vld [vmem:[#allocation8 + $0x6f4] ss:$8 sps:$4 sm:$0xff]  }
 0x26f   :  { %3118 = vmatpush1.bf16.msra.mxu0 %v8348_v31  ;;  %3270 = vmatpush1.bf16.msra.mxu1 %v8351_v32  ;;  %v8401_v31 = vld [vmem:[#allocation8 + $0x684] ss:$8 sps:$4 sm:$0xff]   ;;  %v3034_v32 = vsel %vm1442_vm4, %v3033_v22, %v3032_v26  ;;  %v8435_v22 = vld [vmem:[#allocation8 + $0x6e0] ss:$8 sps:$4 sm:$0xff]  }
 0x270   :  { %3119 = vmatprep.subr.bf16.mxu0 %v8356_v35  ;;  %3271 = vmatprep.subr.bf16.mxu1 %v8359_v36  ;;  %v8399_v35 = vld [vmem:[#allocation8 + $0x680] ss:$8 sps:$4 sm:$0xff]   ;;  %v3035_v36 = vpack.c.b16 %v3034_v32, %v3034_v32  ;;  %v8441_v32 = vld [vmem:[#allocation8 + $0x6f0] ss:$8 sps:$4 sm:$0xff]  }
 0x271   :  { %3149 = vmatprep.mubr.bf16.mxu0 %v9185_v24  ;;  %3301 = vmatprep.mubr.bf16.mxu1 %v9185_v24 }
 0x273   :  { %3120 = vmatpush1.bf16.msra.mxu0 %v8354_v37  ;;  %3272 = vmatpush1.bf16.msra.mxu1 %v8357_v38  ;;  %v3187_v37 = vpack.c.b16 %v3186_v33, %v3186_v33  ;;  %v8404_v38 = vld [vmem:[#allocation8 + $0x614] ss:$8 sps:$4 sm:$0xff]   ;;  %v8446_v33 = vld [vmem:[#allocation8 + $0x704] ss:$8 sps:$4 sm:$0xff]  }
 0x274   :  { %3121 = vmatprep.subr.bf16.mxu0 %v8362_v39  ;;  %3273 = vmatprep.subr.bf16.mxu1 %v8365_v40  ;;  %v8407_v39 = vld [vmem:[#allocation8 + $0x694] ss:$8 sps:$4 sm:$0xff]   ;;  %v8402_v40 = vld [vmem:[#allocation8 + $0x610] ss:$8 sps:$4 sm:$0xff]  }
 0x277   :  { %3122 = vmatpush1.bf16.msra.mxu0 %v8360_v41  ;;  %3274 = vmatpush1.bf16.msra.mxu1 %v8363_v42  ;;  %v8405_v41 = vld [vmem:[#allocation8 + $0x690] ss:$8 sps:$4 sm:$0xff]   ;;  %v8410_v42 = vld [vmem:[#allocation8 + $0x624] ss:$8 sps:$4 sm:$0xff]  }
 0x278   :  { %3123 = vmatprep.subr.bf16.mxu0 %v8368_v43  ;;  %3275 = vmatprep.subr.bf16.mxu1 %v8371_v44  ;;  %v8413_v43 = vld [vmem:[#allocation8 + $0x6a4] ss:$8 sps:$4 sm:$0xff]   ;;  %v8408_v44 = vld [vmem:[#allocation8 + $0x620] ss:$8 sps:$4 sm:$0xff]  }
 0x27b   :  { %3124 = vmatpush1.bf16.msra.mxu0 %v8366_v47  ;;  %3276 = vmatpush1.bf16.msra.mxu1 %v8369_v48  ;;  %v8419_v47 = vld [vmem:[#allocation8 + $0x6b4] ss:$8 sps:$4 sm:$0xff]   ;;  %v3312_v48 = vld [vmem:[#allocation2] sm:$0x40] }
 0x27c   :  { %3125 = vmatprep.subr.bf16.mxu0 %v8374_v50  ;;  %3277 = vmatprep.subr.bf16.mxu1 %v8377_v51  ;;  %v8414_v50 = vld [vmem:[#allocation8 + $0x630] ss:$8 sps:$4 sm:$0xff]   ;;  %v3341_v55 = vunpack.c.h.b16 %v3312_v48  ;;  %v8456_v48 = vld [vmem:[#allocation8 + $0x720] ss:$8 sps:$4 sm:$0xff]  }
 0x27d   :  { %v8417_v51 = vld [vmem:[#allocation8 + $0x6b0] ss:$8 sps:$4 sm:$0xff]  }
 0x27e   :  { %v3347_v0 = vrot.slane %v3341_v55, 4  ;;  %v3499_v3 = vrot.slane %v3341_v55, 5 }
 0x27f   :  { %3126 = vmatpush1.bf16.msra.mxu0 %v8372_v56  ;;  %3278 = vmatpush1.bf16.msra.mxu1 %v8375_v57  ;;  %v3342_v56 = vunpack.c.h.b16 %v3313_v49  ;;  %v3315_v57 = vld [vmem:[#allocation2 + $0x30] sm:$0x40]  ;;  %v8459_v49 = vld [vmem:[#allocation8 + $0x7a0] ss:$8 sps:$4 sm:$0xff]  }
 0x280   :  { %3127 = vmatprep.subr.bf16.mxu0 %v8380_v59  ;;  %3279 = vmatprep.subr.bf16.mxu1 %v8383_v60  ;;  %v8420_v59 = vld [vmem:[#allocation8 + $0x640] ss:$8 sps:$4 sm:$0xff]   ;;  %v3344_v2 = vunpack.c.h.b16 %v3315_v57  ;;  %v8465_v57 = vld [vmem:[#allocation8 + $0x7b0] ss:$8 sps:$4 sm:$0xff]  }
 0x281   :  { %v8423_v60 = vld [vmem:[#allocation8 + $0x6c0] ss:$8 sps:$4 sm:$0xff]   ;;  %v3348_v1 = vrot.slane %v3342_v56, 3  ;;  %v3500_v4 = vrot.slane %v3342_v56, 4  ;;  %v8462_v56 = vld [vmem:[#allocation8 + $0x730] ss:$8 sps:$4 sm:$0xff]  }
 0x282   :  { %v3352_v15 = vrot.slane %v3344_v2, 1 }
 0x283   :  { %3128 = vmatpush1.bf16.msra.mxu0 %v8378_v5  ;;  %3280 = vmatpush1.bf16.msra.mxu1 %v8381_v6  ;;  %v3317_v5 = vld [vmem:[#allocation2 + $0x50] sm:$0x40]  ;;  %v3345_v6 = vunpack.c.h.b16 %v3316_v61  ;;  %v3349_v13 = vsel %vm1430_vm0, %v3348_v1, %v3347_v0  ;;  %v3501_v16 = vsel %vm1430_vm0, %v3500_v4, %v3499_v3  ;;  %v3637_v61 = vld [vmem:[#allocation2 + $0x30] sm:$0x80]  ;;  %v8468_v0 = vld [vmem:[#allocation8 + $0x740] ss:$8 sps:$4 sm:$0xff]  }
 0x284   :  { %3129 = vmatprep.subr.bf16.mxu0 %v8386_v7  ;;  %3281 = vmatprep.subr.bf16.mxu1 %v8389_v8  ;;  %v3350_v7 = vrot.slane %v3343_v58, 2  ;;  %v3502_v8 = vrot.slane %v3343_v58, 3  ;;  %v3346_v14 = vunpack.c.h.b16 %v3317_v5  ;;  %v8470_v58 = vld [vmem:[#allocation8 + $0x744] ss:$8 sps:$4 sm:$0xff]   ;;  %v8471_v1 = vld [vmem:[#allocation8 + $0x7c0] ss:$8 sps:$4 sm:$0xff]  }
 0x285   :  { %v8476_v3 = vld [vmem:[#allocation8 + $0x754] ss:$8 sps:$4 sm:$0xff]  }
 0x286   :  { %v3355_v27 = vrot.slane %v3346_v14, 7  ;;  %v8479_v4 = vld [vmem:[#allocation8 + $0x7d4] ss:$8 sps:$4 sm:$0xff]  }
 0x287   :  { %3130 = vmatpush1.bf16.msra.mxu0 %v8384_v17  ;;  %3282 = vmatpush1.bf16.msra.mxu1 %v8387_v18  ;;  %v3504_v17 = vrot.slane %v3344_v2, 2  ;;  %v3351_v18 = vsel %vm1433_vm1, %v3350_v7, %v3349_v13  ;;  %v3638_v2 = vld [vmem:[#allocation2 + $0x40] sm:$0x80]  ;;  %v3666_v7 = vunpack.c.h.b16 %v3637_v61  ;;  %v8477_v13 = vld [vmem:[#allocation8 + $0x7d0] ss:$8 sps:$4 sm:$0xff]  }
 0x288   :  { %3131 = vmatprep.subr.bf16.mxu0 %v8392_v19  ;;  %3283 = vmatprep.subr.bf16.mxu1 %v8395_v20  ;;  %v3503_v19 = vsel %vm1433_vm1, %v3502_v8, %v3501_v16  ;;  %v3506_v20 = vrot.slane %v3345_v6, 1  ;;  %v3353_v26 = vsel %vm1436_vm2, %v3352_v15, %v3351_v18  ;;  %v8485_v15 = vld [vmem:[#allocation8 + $0x7e4] ss:$8 sps:$4 sm:$0xff]  }
 0x289   :  { %v8509_v61 = vld [vmem:[#allocation8 + $0x8a4] ss:$8 sps:$4 sm:$0xff]  }
 0x28b   :  { %3132 = vmatpush1.bf16.msra.mxu0 %v8390_v28  ;;  %3284 = vmatpush1.bf16.msra.mxu1 %v8393_v29  ;;  %v3505_v28 = vsel %vm1436_vm2, %v3504_v17, %v3503_v19  ;;  %v3354_v29 = vsel %vm1439_vm3, %v3345_v6, %v3353_v26 }
 0x28c   :  { %3439 = vmatprep.subr.bf16.mxu0 %v8398_v30  ;;  %3591 = vmatprep.subr.bf16.mxu1 %v8401_v31  ;;  %v3507_v30 = vsel %vm1439_vm3, %v3506_v20, %v3505_v28  ;;  %v8438_v31 = vld [vmem:[#allocation8 + $0x670] ss:$8 sps:$4 sm:$0xff]  }
 0x28e   :  { %3150 = vmatmul.mubr.bf16.vlgmr.msra.gmra.mrb[44].mxu0 %v3035_v36  ;;  %3302 = vmatmul.mubr.bf16.vlgmr.msra.gmra.mrb[44].mxu1 %v3187_v37  ;;  %v3508_v36 = vsel %vm1442_vm4, %v3346_v14, %v3507_v30  ;;  %v8444_v37 = vld [vmem:[#allocation8 + $0x700] ss:$8 sps:$4 sm:$0xff]   ;;  %v8482_v14 = vld [vmem:[#allocation8 + $0x764] ss:$8 sps:$4 sm:$0xff]  }
 0x28f   :  { %3440 = vmatpush1.bf16.msra.mxu0 %v8396_v34  ;;  %3592 = vmatpush1.bf16.msra.mxu1 %v8399_v35  ;;  %v8449_v34 = vld [vmem:[#allocation8 + $0x784] ss:$8 sps:$4 sm:$0xff]   ;;  %v3356_v35 = vsel %vm1442_vm4, %v3355_v27, %v3354_v29 }
 0x290   :  { %3441 = vmatprep.subr.bf16.mxu0 %v8404_v38  ;;  %3593 = vmatprep.subr.bf16.mxu1 %v8407_v39  ;;  %v8447_v38 = vld [vmem:[#allocation8 + $0x780] ss:$8 sps:$4 sm:$0xff]   ;;  %v3357_v39 = vpack.c.b16 %v3356_v35, %v3356_v35 }
 0x291   :  { %3471 = vmatprep.mubr.bf16.mxu0 %v9185_v24  ;;  %3623 = vmatprep.mubr.bf16.mxu1 %v9185_v24  ;;  %v8483_v35 = vld [vmem:[#allocation8 + $0x7e0] ss:$8 sps:$4 sm:$0xff]  }
 0x293   :  { %3442 = vmatpush1.bf16.msra.mxu0 %v8402_v40  ;;  %3594 = vmatpush1.bf16.msra.mxu1 %v8405_v41  ;;  %v3509_v40 = vpack.c.b16 %v3508_v36, %v3508_v36  ;;  %v8452_v41 = vld [vmem:[#allocation8 + $0x714] ss:$8 sps:$4 sm:$0xff]  }
 0x294   :  { %3443 = vmatprep.subr.bf16.mxu0 %v8410_v42  ;;  %3595 = vmatprep.subr.bf16.mxu1 %v8413_v43  ;;  %v8455_v42 = vld [vmem:[#allocation8 + $0x794] ss:$8 sps:$4 sm:$0xff]   ;;  %v8450_v43 = vld [vmem:[#allocation8 + $0x710] ss:$8 sps:$4 sm:$0xff]  }
 0x297   :  { %3444 = vmatpush1.bf16.msra.mxu0 %v8408_v44  ;;  %3596 = vmatpush1.bf16.msra.mxu1 %v8411_v45  ;;  %v8453_v44 = vld [vmem:[#allocation8 + $0x790] ss:$8 sps:$4 sm:$0xff]   ;;  %v8458_v45 = vld [vmem:[#allocation8 + $0x724] ss:$8 sps:$4 sm:$0xff]  }
 0x298   :  { %3445 = vmatprep.subr.bf16.mxu0 %v8416_v46  ;;  %3597 = vmatprep.subr.bf16.mxu1 %v8419_v47  ;;  %v8461_v46 = vld [vmem:[#allocation8 + $0x7a4] ss:$8 sps:$4 sm:$0xff]  }
 0x299   :  { %v3634_v47 = vld [vmem:[#allocation2] sm:$0x80] }
 0x29b   :  { %3446 = vmatpush1.bf16.msra.mxu0 %v8414_v50  ;;  %3598 = vmatpush1.bf16.msra.mxu1 %v8417_v51  ;;  %v3635_v50 = vld [vmem:[#allocation2 + $0x10] sm:$0x80] }
 0x29c   :  { %3447 = vmatprep.subr.bf16.mxu0 %v8422_v53  ;;  %3599 = vmatprep.subr.bf16.mxu1 %v8425_v54  ;;  %v8464_v51 = vld [vmem:[#allocation8 + $0x734] ss:$8 sps:$4 sm:$0xff]   ;;  %v3636_v53 = vld [vmem:[#allocation2 + $0x20] sm:$0x80]  ;;  %v3663_v54 = vunpack.c.h.b16 %v3634_v47  ;;  %v3664_v55 = vunpack.c.h.b16 %v3635_v50  ;;  %v8489_v47 = vld [vmem:[#allocation8 + $0x7f0] ss:$8 sps:$4 sm:$0xff]  }
 0x29e   :  { %v3822_v5 = vrot.slane %v3663_v54, 7  ;;  %v3823_v6 = vrot.slane %v3664_v55, 6 }
 0x29f   :  { %3448 = vmatpush1.bf16.msra.mxu0 %v8420_v59  ;;  %3600 = vmatpush1.bf16.msra.mxu1 %v8423_v60  ;;  %v8473_v59 = vld [vmem:[#allocation8 + $0x7c4] ss:$8 sps:$4 sm:$0xff]   ;;  %v3665_v60 = vunpack.c.h.b16 %v3636_v53  ;;  %v8495_v53 = vld [vmem:[#allocation8 + $0x880] ss:$8 sps:$4 sm:$0xff]  }
 0x2a0   :  { %3449 = vmatprep.subr.bf16.mxu0 %v8428_v62  ;;  %3601 = vmatprep.subr.bf16.mxu1 %v8431_v63  ;;  %v3669_v62 = vrot.slane %v3663_v54, 6  ;;  %v3670_v63 = vrot.slane %v3664_v55, 5  ;;  %v3824_v17 = vsel %vm1430_vm0, %v3823_v6, %v3822_v5  ;;  %v8510_v5 = vld [vmem:[#allocation8 + $0x830] ss:$8 sps:$4 sm:$0xff]  }
 0x2a1   :  { %v3672_v8 = vrot.slane %v3665_v60, 4  ;;  %v8513_v6 = vld [vmem:[#allocation8 + $0x8b0] ss:$8 sps:$4 sm:$0xff]  }
 0x2a2   :  { %v3671_v16 = vsel %vm1430_vm0, %v3670_v63, %v3669_v62  ;;  %v8504_v62 = vld [vmem:[#allocation8 + $0x820] ss:$8 sps:$4 sm:$0xff]  }
 0x2a3   :  { %3450 = vmatpush1.bf16.msra.mxu0 %v8426_v9  ;;  %3602 = vmatpush1.bf16.msra.mxu1 %v8429_v10  ;;  %v3639_v9 = vld [vmem:[#allocation2 + $0x50] sm:$0x80]  ;;  %v3667_v10 = vunpack.c.h.b16 %v3638_v2  ;;  %v8507_v63 = vld [vmem:[#allocation8 + $0x8a0] ss:$8 sps:$4 sm:$0xff]   ;;  %v3959_v2 = vld [vmem:[#allocation2 + $0x18] sm:$0x1] }
 0x2a4   :  { %3451 = vmatprep.subr.bf16.mxu0 %v8434_v11  ;;  %3603 = vmatprep.subr.bf16.mxu1 %v8437_v12  ;;  %v3825_v11 = vrot.slane %v3665_v60, 5  ;;  %v8474_v12 = vld [vmem:[#allocation8 + $0x750] ss:$8 sps:$4 sm:$0xff]   ;;  %v3668_v20 = vunpack.c.h.b16 %v3639_v9  ;;  %v8506_v60 = vld [vmem:[#allocation8 + $0x824] ss:$8 sps:$4 sm:$0xff]   ;;  %v3988_v9 = vunpack.c.l.b16 %v3959_v2 }
 0x2a5   :  { %v3676_v28 = vrot.slane %v3667_v10, 2  ;;  %v3829_v30 = vrot.slane %v3667_v10, 3  ;;  %v3961_v10 = vld [vmem:[#allocation2 + $0x38] sm:$0x1] }
 0x2a6   :  { %v3826_v29 = vsel %vm1433_vm1, %v3825_v11, %v3824_v17  ;;  %v8527_v17 = vld [vmem:[#allocation8 + $0x8d4] ss:$8 sps:$4 sm:$0xff]  }
 0x2a7   :  { %3452 = vmatpush1.bf16.msra.mxu0 %v8432_v21  ;;  %3604 = vmatpush1.bf16.msra.mxu1 %v8435_v22  ;;  %v3673_v21 = vsel %vm1433_vm1, %v3672_v8, %v3671_v16  ;;  %v3674_v22 = vrot.slane %v3666_v7, 3  ;;  %v8521_v8 = vld [vmem:[#allocation8 + $0x8c4] ss:$8 sps:$4 sm:$0xff]   ;;  %v8524_v16 = vld [vmem:[#allocation8 + $0x854] ss:$8 sps:$4 sm:$0xff]  }
 0x2a8   :  { %3453 = vmatprep.subr.bf16.mxu0 %v8440_v23  ;;  %3605 = vmatprep.subr.bf16.mxu1 %v8443_v25  ;;  %v3827_v23 = vrot.slane %v3666_v7, 4  ;;  %v8518_v7 = vld [vmem:[#allocation8 + $0x844] ss:$8 sps:$4 sm:$0xff]  }
 0x2ab   :  { %3454 = vmatpush1.bf16.msra.mxu0 %v8438_v31  ;;  %3606 = vmatpush1.bf16.msra.mxu1 %v8441_v32 }
 0x2ac   :  { %3762 = vmatprep.subr.bf16.mxu0 %v8446_v33  ;;  %3915 = vmatprep.subr.bf16.mxu1 %v8449_v34  ;;  %v8480_v34 = vld [vmem:[#allocation8 + $0x760] ss:$8 sps:$4 sm:$0xff]  }
 0x2ae   :  { %3472 = vmatmul.mubr.bf16.vlgmr.msra.gmra.mrb[48].mxu0 %v3357_v39  ;;  %3624 = vmatmul.mubr.bf16.vlgmr.msra.gmra.mrb[48].mxu1 %v3509_v40  ;;  %v8491_v39 = vld [vmem:[#allocation8 + $0x7f4] ss:$8 sps:$4 sm:$0xff]   ;;  %v3675_v40 = vsel %vm1436_vm2, %v3674_v22, %v3673_v21  ;;  %v3963_v22 = vld [vmem:[#allocation2 + $0x58] sm:$0x1] }
 0x2af   :  { %3763 = vmatpush1.bf16.msra.mxu0 %v8444_v37  ;;  %3916 = vmatpush1.bf16.msra.mxu1 %v8447_v38  ;;  %v8488_v38 = vld [vmem:[#allocation8 + $0x774] ss:$8 sps:$4 sm:$0xff]  }
 0x2b0   :  { %3764 = vmatprep.subr.bf16.mxu0 %v8452_v41  ;;  %3917 = vmatprep.subr.bf16.mxu1 %v8455_v42  ;;  %v3678_v41 = vrot.slane %v3668_v20, 1  ;;  %v3828_v42 = vsel %vm1436_vm2, %v3827_v23, %v3826_v29  ;;  %v8530_v29 = vld [vmem:[#allocation8 + $0x864] ss:$8 sps:$4 sm:$0xff]  }
 0x2b1   :  { %3794 = vmatprep.mubr.bf16.mxu0 %v9185_v24  ;;  %3947 = vmatprep.mubr.bf16.mxu1 %v9185_v24 }
 0x2b3   :  { %3765 = vmatpush1.bf16.msra.mxu0 %v8450_v43  ;;  %3918 = vmatpush1.bf16.msra.mxu1 %v8453_v44  ;;  %v3831_v43 = vrot.slane %v3668_v20, 2  ;;  %v3677_v44 = vsel %vm1439_vm3, %v3676_v28, %v3675_v40  ;;  %v8525_v28 = vld [vmem:[#allocation8 + $0x8d0] ss:$8 sps:$4 sm:$0xff]  }
 0x2b4   :  { %3766 = vmatprep.subr.bf16.mxu0 %v8458_v45  ;;  %3919 = vmatprep.subr.bf16.mxu1 %v8461_v46  ;;  %v3830_v45 = vsel %vm1439_vm3, %v3829_v30, %v3828_v42  ;;  %v8486_v46 = vld [vmem:[#allocation8 + $0x770] ss:$8 sps:$4 sm:$0xff]   ;;  %v3679_v50 = vsel %vm1442_vm4, %v3678_v41, %v3677_v44  ;;  %v8533_v30 = vld [vmem:[#allocation8 + $0x8e4] ss:$8 sps:$4 sm:$0xff]  }
 0x2b5   :  { %v3680_v54 = vpack.c.b16 %v3679_v50, %v3679_v50  ;;  %v8531_v50 = vld [vmem:[#allocation8 + $0x8e0] ss:$8 sps:$4 sm:$0xff]  }
 0x2b7   :  { %3767 = vmatpush1.bf16.msra.mxu0 %v8456_v48  ;;  %3920 = vmatpush1.bf16.msra.mxu1 %v8459_v49  ;;  %v8494_v48 = vld [vmem:[#allocation8 + $0x804] ss:$8 sps:$4 sm:$0xff]  }
 0x2b8   :  { %3768 = vmatprep.subr.bf16.mxu0 %v8464_v51  ;;  %3921 = vmatprep.subr.bf16.mxu1 %v8467_v52  ;;  %v8497_v49 = vld [vmem:[#allocation8 + $0x884] ss:$8 sps:$4 sm:$0xff]   ;;  %v3832_v51 = vsel %vm1442_vm4, %v3831_v43, %v3830_v45  ;;  %v8492_v52 = vld [vmem:[#allocation8 + $0x800] ss:$8 sps:$4 sm:$0xff]  }
 0x2b9   :  { %v3833_v55 = vpack.c.b16 %v3832_v51, %v3832_v51 }
 0x2bb   :  { %3769 = vmatpush1.bf16.msra.mxu0 %v8462_v56  ;;  %3922 = vmatpush1.bf16.msra.mxu1 %v8465_v57  ;;  %v8500_v56 = vld [vmem:[#allocation8 + $0x814] ss:$8 sps:$4 sm:$0xff]  }
 0x2bc   :  { %3770 = vmatprep.subr.bf16.mxu0 %v8470_v58  ;;  %3923 = vmatprep.subr.bf16.mxu1 %v8473_v59  ;;  %v8503_v57 = vld [vmem:[#allocation8 + $0x894] ss:$8 sps:$4 sm:$0xff]   ;;  %v8498_v58 = vld [vmem:[#allocation8 + $0x810] ss:$8 sps:$4 sm:$0xff]  }
 0x2bd   :  { %v8501_v59 = vld [vmem:[#allocation8 + $0x890] ss:$8 sps:$4 sm:$0xff]  }
 0x2bf   :  { %3771 = vmatpush1.bf16.msra.mxu0 %v8468_v0  ;;  %3924 = vmatpush1.bf16.msra.mxu1 %v8471_v1  ;;  %v8512_v0 = vld [vmem:[#allocation8 + $0x834] ss:$8 sps:$4 sm:$0xff]  }
 0x2c0   :  { %3772 = vmatprep.subr.bf16.mxu0 %v8476_v3  ;;  %3925 = vmatprep.subr.bf16.mxu1 %v8479_v4  ;;  %v8515_v1 = vld [vmem:[#allocation8 + $0x8b4] ss:$8 sps:$4 sm:$0xff]   ;;  %v3958_v3 = vld [vmem:[#allocation2 + $0x8] sm:$0x1] }
 0x2c1   :  { %v1560_v18 = vpop.f32.mrb[24].mxu0  ;;  %v1693_v19 = vpop.f32.mrb[24].mxu1  ;;  %v3960_v4 = vld [vmem:[#allocation2 + $0x28] sm:$0x1]  ;;  %v3987_v11 = vunpack.c.l.b16 %v3958_v3 }
 0x2c2   :  { %v9451_v25 = vadd.f32 %v1693_v19, %v1560_v18  ;;  %v1562_v26 = vpop.f32.mrb[25].mxu0  ;;  %v1695_v27 = vpop.f32.mrb[25].mxu1  ;;  %v3990_v18 = vunpack.c.l.b16 %v3961_v10  ;;  %v3993_v19 = vrot.slane %v3988_v9, 7  ;;  %v8540_v3 = vld [vmem:[#allocation8 + $0x900] ss:$8 sps:$4 sm:$0xff]  }
 0x2c3   :  { %v9454_v31 = vadd.f32 %v1695_v27, %v1562_v26  ;;  %3773 = vmatpush1.bf16.msra.mxu0 %v8474_v12  ;;  %3926 = vmatpush1.bf16.msra.mxu1 %v8477_v13  ;;  %v1564_v32 = vpop.f32.mrb[26].mxu0  ;;  %v1697_v33 = vpop.f32.mrb[26].mxu1  ;;  %v3989_v12 = vunpack.c.l.b16 %v3960_v4  ;;  %v8516_v13 = vld [vmem:[#allocation8 + $0x840] ss:$8 sps:$4 sm:$0xff]   ;;  %v4145_v21 = vrot.slane %v3987_v11, 1 }
 0x2c4   :  { %v1565_v36 = vpop.f32.mrb[27].mxu0  ;;  %v1698_v37 = vpop.f32.mrb[27].mxu1  ;;  %3774 = vmatprep.subr.bf16.mxu0 %v8482_v14  ;;  %3927 = vmatprep.subr.bf16.mxu1 %v8485_v15  ;;  %v8519_v14 = vld [vmem:[#allocation8 + $0x8c0] ss:$8 sps:$4 sm:$0xff]   ;;  %v8522_v27 = vld [vmem:[#allocation8 + $0x850] ss:$8 sps:$4 sm:$0xff]   ;;  %v3994_v32 = vsel %vm1430_vm0, %v3993_v19, %v3987_v11 }
 0x2c5   :  { %v3962_v15 = vld [vmem:[#allocation2 + $0x48] sm:$0x1]  ;;  %v3995_v20 = vrot.slane %v3989_v12, 6  ;;  %v4147_v26 = vrot.slane %v3989_v12, 7  ;;  %v3997_v33 = vrot.slane %v3990_v18, 5  ;;  %v3992_v36 = vunpack.c.l.b16 %v3963_v22 }
 0x2c6   :  { %v3991_v23 = vunpack.c.l.b16 %v3962_v15  ;;  %v8543_v4 = vld [vmem:[#allocation8 + $0x980] ss:$8 sps:$4 sm:$0xff]   ;;  %v8549_v10 = vld [vmem:[#allocation8 + $0x990] ss:$8 sps:$4 sm:$0xff]   ;;  %v8554_v11 = vld [vmem:[#allocation8 + $0x924] ss:$8 sps:$4 sm:$0xff]  }
 0x2c7   :  { %3775 = vmatpush1.bf16.msra.mxu0 %v8480_v34  ;;  %3928 = vmatpush1.bf16.msra.mxu1 %v8483_v35  ;;  %v3996_v37 = vsel %vm1433_vm1, %v3995_v20, %v3994_v32  ;;  %v8557_v12 = vld [vmem:[#allocation8 + $0x9a4] ss:$8 sps:$4 sm:$0xff]   ;;  %v8560_v15 = vld [vmem:[#allocation8 + $0x934] ss:$8 sps:$4 sm:$0xff]   ;;  %v8558_v19 = vld [vmem:[#allocation8 + $0x930] ss:$8 sps:$4 sm:$0xff]  }
 0x2c8   :  { %3776 = vmatprep.subr.bf16.mxu0 %v8488_v38  ;;  %3929 = vmatprep.subr.bf16.mxu1 %v8491_v39  ;;  %v4146_v38 = vsel %vm1430_vm0, %v3988_v9, %v4145_v21  ;;  %v4149_v39 = vrot.slane %v3990_v18, 6  ;;  %v3999_v43 = vrot.slane %v3991_v23, 4  ;;  %v4151_v45 = vrot.slane %v3991_v23, 5  ;;  %v8546_v9 = vld [vmem:[#allocation8 + $0x910] ss:$8 sps:$4 sm:$0xff]  }
 0x2c9   :  { %v4148_v44 = vsel %vm1433_vm1, %v4147_v26, %v4146_v38  ;;  %v4281_v18 = vld [vmem:[#allocation2 + $0x18] sm:$0x2]  ;;  %v4282_v21 = vld [vmem:[#allocation2 + $0x28] sm:$0x2]  ;;  %v8566_v22 = vld [vmem:[#allocation8 + $0x944] ss:$8 sps:$4 sm:$0xff]  }
 0x2ca   :  { %v8561_v20 = vld [vmem:[#allocation8 + $0x9b0] ss:$8 sps:$4 sm:$0xff]   ;;  %v8569_v23 = vld [vmem:[#allocation8 + $0x9c4] ss:$8 sps:$4 sm:$0xff]   ;;  %v8567_v32 = vld [vmem:[#allocation8 + $0x9c0] ss:$8 sps:$4 sm:$0xff]  }
 0x2cb   :  { %3777 = vmatpush1.bf16.msra.mxu0 %v8486_v46  ;;  %3930 = vmatpush1.bf16.msra.mxu1 %v8489_v47 }
 0x2cc   :  { %4085 = vmatprep.subr.bf16.mxu0 %v8494_v48  ;;  %4237 = vmatprep.subr.bf16.mxu1 %v8497_v49  ;;  %v8528_v49 = vld [vmem:[#allocation8 + $0x860] ss:$8 sps:$4 sm:$0xff]  }
 0x2ce   :  { %3795 = vmatmul.mubr.bf16.vlgmr.msra.gmra.mrb[52].mxu0 %v3680_v54  ;;  %3948 = vmatmul.mubr.bf16.vlgmr.msra.gmra.mrb[52].mxu1 %v3833_v55  ;;  %v8539_v54 = vld [vmem:[#allocation8 + $0x8f4] ss:$8 sps:$4 sm:$0xff]   ;;  %v3998_v55 = vsel %vm1436_vm2, %v3997_v33, %v3996_v37  ;;  %v4284_v33 = vld [vmem:[#allocation2 + $0x48] sm:$0x2] }
 0x2cf   :  { %4086 = vmatpush1.bf16.msra.mxu0 %v8492_v52  ;;  %4238 = vmatpush1.bf16.msra.mxu1 %v8495_v53 }
 0x2d0   :  { %4087 = vmatprep.subr.bf16.mxu0 %v8500_v56  ;;  %4239 = vmatprep.subr.bf16.mxu1 %v8503_v57  ;;  %v4001_v57 = vrot.slane %v3992_v36, 3 }
 0x2d1   :  { %4117 = vmatprep.mubr.bf16.mxu0 %v9185_v24  ;;  %4269 = vmatprep.mubr.bf16.mxu1 %v9185_v24 }
 0x2d3   :  { %4088 = vmatpush1.bf16.msra.mxu0 %v8498_v58  ;;  %4240 = vmatpush1.bf16.msra.mxu1 %v8501_v59  ;;  %v4153_v58 = vrot.slane %v3992_v36, 4  ;;  %v4000_v59 = vsel %vm1439_vm3, %v3999_v43, %v3998_v55 }
 0x2d4   :  { %4089 = vmatprep.subr.bf16.mxu0 %v8506_v60  ;;  %4241 = vmatprep.subr.bf16.mxu1 %v8509_v61  ;;  %v8534_v61 = vld [vmem:[#allocation8 + $0x870] ss:$8 sps:$4 sm:$0xff]  }
 0x2d7   :  { %4090 = vmatpush1.bf16.msra.mxu0 %v8504_v62  ;;  %4242 = vmatpush1.bf16.msra.mxu1 %v8507_v63  ;;  %v8537_v62 = vld [vmem:[#allocation8 + $0x8f0] ss:$8 sps:$4 sm:$0xff]   ;;  %v8542_v63 = vld [vmem:[#allocation8 + $0x904] ss:$8 sps:$4 sm:$0xff]  }
 0x2d8   :  { %4091 = vmatprep.subr.bf16.mxu0 %v8512_v0  ;;  %4243 = vmatprep.subr.bf16.mxu1 %v8515_v1  ;;  %v8545_v0 = vld [vmem:[#allocation8 + $0x984] ss:$8 sps:$4 sm:$0xff]   ;;  %v4002_v1 = vsel %vm1442_vm4, %v4001_v57, %v4000_v59 }
 0x2db   :  { %4092 = vmatpush1.bf16.msra.mxu0 %v8510_v5  ;;  %4244 = vmatpush1.bf16.msra.mxu1 %v8513_v6  ;;  %v4003_v5 = vpack.c.b16 %v4002_v1, %v4002_v1  ;;  %v8579_v1 = vld [vmem:[#allocation8 + $0x9e0] ss:$8 sps:$4 sm:$0xff]  }
 0x2dc   :  { %4093 = vmatprep.subr.bf16.mxu0 %v8518_v7  ;;  %4245 = vmatprep.subr.bf16.mxu1 %v8521_v8  ;;  %v8548_v7 = vld [vmem:[#allocation8 + $0x914] ss:$8 sps:$4 sm:$0xff]  }
 0x2dd   :  { %v8551_v8 = vld [vmem:[#allocation8 + $0x994] ss:$8 sps:$4 sm:$0xff]  }
 0x2df   :  { %4094 = vmatpush1.bf16.msra.mxu0 %v8516_v13  ;;  %4246 = vmatpush1.bf16.msra.mxu1 %v8519_v14  ;;  %v8552_v13 = vld [vmem:[#allocation8 + $0x920] ss:$8 sps:$4 sm:$0xff]  }
 0x2e0   :  { %4095 = vmatprep.subr.bf16.mxu0 %v8524_v16  ;;  %4247 = vmatprep.subr.bf16.mxu1 %v8527_v17  ;;  %v8555_v14 = vld [vmem:[#allocation8 + $0x9a0] ss:$8 sps:$4 sm:$0xff]   ;;  %v8563_v16 = vld [vmem:[#allocation8 + $0x9b4] ss:$8 sps:$4 sm:$0xff]  }
 0x2e1   :  { %v1861_v34 = vpop.f32.mrb[28].mxu0  ;;  %v2013_v35 = vpop.f32.mrb[28].mxu1  ;;  %v4280_v17 = vld [vmem:[#allocation2 + $0x8] sm:$0x2] }
 0x2e2   :  { %v1868_v40 = vadd.f32 %v1861_v34, %v9451_v25  ;;  %v1863_v41 = vpop.f32.mrb[29].mxu0  ;;  %v2015_v42 = vpop.f32.mrb[29].mxu1  ;;  %v8536_v25 = vld [vmem:[#allocation8 + $0x874] ss:$8 sps:$4 sm:$0xff]   ;;  %v4309_v26 = vunpack.c.l.b16 %v4280_v17 }
 0x2e3   :  { %v1869_v46 = vadd.f32 %v1863_v41, %v9454_v31  ;;  %v1865_v47 = vpop.f32.mrb[30].mxu0  ;;  %v2017_v48 = vpop.f32.mrb[30].mxu1  ;;  %4096 = vmatpush1.bf16.msra.mxu0 %v8522_v27  ;;  %4248 = vmatpush1.bf16.msra.mxu1 %v8525_v28  ;;  %v4150_v31 = vsel %vm1436_vm2, %v4149_v39, %v4148_v44  ;;  %v4310_v27 = vunpack.c.l.b16 %v4281_v18  ;;  %v4283_v28 = vld [vmem:[#allocation2 + $0x38] sm:$0x2]  ;;  %v8572_v34 = vld [vmem:[#allocation8 + $0x954] ss:$8 sps:$4 sm:$0xff]  }
 0x2e4   :  { %v9470_v51 = vadd.f32 %v2013_v35, %v1868_v40  ;;  %v1866_v52 = vpop.f32.mrb[31].mxu0  ;;  %v2018_v53 = vpop.f32.mrb[31].mxu1  ;;  %4097 = vmatprep.subr.bf16.mxu0 %v8530_v29  ;;  %4249 = vmatprep.subr.bf16.mxu1 %v8533_v30  ;;  %v4152_v60 = vsel %vm1439_vm3, %v4151_v45, %v4150_v31  ;;  %v4311_v29 = vunpack.c.l.b16 %v4282_v21  ;;  %v8564_v30 = vld [vmem:[#allocation8 + $0x940] ss:$8 sps:$4 sm:$0xff]   ;;  %v8575_v35 = vld [vmem:[#allocation8 + $0x9d4] ss:$8 sps:$4 sm:$0xff]   ;;  %v4312_v36 = vunpack.c.l.b16 %v4283_v28 }
 0x2e5   :  { %v9473_v56 = vadd.f32 %v2015_v42, %v1869_v46  ;;  %v4154_v2 = vsel %vm1442_vm4, %v4153_v58, %v4152_v60  ;;  %v4315_v37 = vrot.slane %v4309_v26, 2  ;;  %v4316_v38 = vrot.slane %v4310_v27, 1  ;;  %v4285_v41 = vld [vmem:[#allocation2 + $0x58] sm:$0x2]  ;;  %v8578_v46 = vld [vmem:[#allocation8 + $0x964] ss:$8 sps:$4 sm:$0xff]  }
 0x2e6   :  { %v4155_v6 = vpack.c.b16 %v4154_v2, %v4154_v2  ;;  %v4467_v39 = vrot.slane %v4309_v26, 3  ;;  %v4468_v40 = vrot.slane %v4310_v27, 2  ;;  %v4313_v42 = vunpack.c.l.b16 %v4284_v33  ;;  %v8570_v44 = vld [vmem:[#allocation8 + $0x950] ss:$8 sps:$4 sm:$0xff]   ;;  %v8581_v47 = vld [vmem:[#allocation8 + $0x9e4] ss:$8 sps:$4 sm:$0xff]  }
 0x2e7   :  { %4098 = vmatpush1.bf16.msra.mxu0 %v8528_v49  ;;  %4250 = vmatpush1.bf16.msra.mxu1 %v8531_v50  ;;  %v4470_v43 = vrot.slane %v4311_v29, 1  ;;  %v8573_v45 = vld [vmem:[#allocation8 + $0x9d0] ss:$8 sps:$4 sm:$0xff]   ;;  %v4317_v48 = vsel %vm1430_vm0, %v4316_v38, %v4315_v37  ;;  %v4319_v49 = vrot.slane %v4312_v36, 7  ;;  %v4314_v53 = vunpack.c.l.b16 %v4285_v41  ;;  %v8588_v18 = vld [vmem:[#allocation8 + $0xa00] ss:$8 sps:$4 sm:$0xff]  }
 0x2e8   :  { %4099 = vmatprep.subr.bf16.mxu0 %v8536_v25  ;;  %4251 = vmatprep.subr.bf16.mxu1 %v8539_v54  ;;  %v4318_v25 = vsel %vm1433_vm1, %v4311_v29, %v4317_v48  ;;  %v4469_v54 = vsel %vm1430_vm0, %v4468_v40, %v4467_v39  ;;  %v4321_v58 = vrot.slane %v4313_v42, 6  ;;  %v4473_v60 = vrot.slane %v4313_v42, 7  ;;  %v8594_v26 = vld [vmem:[#allocation8 + $0xa10] ss:$8 sps:$4 sm:$0xff]   ;;  %v8602_v28 = vld [vmem:[#allocation8 + $0xa24] ss:$8 sps:$4 sm:$0xff]  }
 0x2e9   :  { %v4471_v59 = vsel %vm1433_vm1, %v4470_v43, %v4469_v54  ;;  %v8597_v27 = vld [vmem:[#allocation8 + $0xa90] ss:$8 sps:$4 sm:$0xff]   ;;  %v8605_v29 = vld [vmem:[#allocation8 + $0xaa4] ss:$8 sps:$4 sm:$0xff]   ;;  %v8608_v33 = vld [vmem:[#allocation8 + $0xa34] ss:$8 sps:$4 sm:$0xff]  }
 0x2ea   :  { %v8606_v37 = vld [vmem:[#allocation8 + $0xa30] ss:$8 sps:$4 sm:$0xff]   ;;  %v4604_v39 = vld [vmem:[#allocation2 + $0x28] sm:$0x4]  ;;  %v8614_v40 = vld [vmem:[#allocation8 + $0xa44] ss:$8 sps:$4 sm:$0xff]  }
 0x2eb   :  { %4100 = vmatpush1.bf16.msra.mxu0 %v8534_v61  ;;  %4252 = vmatpush1.bf16.msra.mxu1 %v8537_v62  ;;  %v8609_v38 = vld [vmem:[#allocation8 + $0xab0] ss:$8 sps:$4 sm:$0xff]   ;;  %v8617_v41 = vld [vmem:[#allocation8 + $0xac4] ss:$8 sps:$4 sm:$0xff]   ;;  %v4606_v48 = vld [vmem:[#allocation2 + $0x48] sm:$0x4] }
 0x2ec   :  { %4407 = vmatprep.subr.bf16.mxu0 %v8542_v63  ;;  %4559 = vmatprep.subr.bf16.mxu1 %v8545_v0  ;;  %v8576_v0 = vld [vmem:[#allocation8 + $0x960] ss:$8 sps:$4 sm:$0xff]  }
 0x2ee   :  { %4118 = vmatmul.mubr.bf16.vlgmr.msra.gmra.mrb[56].mxu0 %v4003_v5  ;;  %4270 = vmatmul.mubr.bf16.vlgmr.msra.gmra.mrb[56].mxu1 %v4155_v6  ;;  %v8587_v5 = vld [vmem:[#allocation8 + $0x9f4] ss:$8 sps:$4 sm:$0xff]   ;;  %v4320_v6 = vsel %vm1436_vm2, %v4319_v49, %v4318_v25 }
 0x2ef   :  { %4408 = vmatpush1.bf16.msra.mxu0 %v8540_v3  ;;  %4560 = vmatpush1.bf16.msra.mxu1 %v8543_v4  ;;  %v8620_v49 = vld [vmem:[#allocation8 + $0xa54] ss:$8 sps:$4 sm:$0xff]  }
 0x2f0   :  { %4409 = vmatprep.subr.bf16.mxu0 %v8548_v7  ;;  %4561 = vmatprep.subr.bf16.mxu1 %v8551_v8  ;;  %v4323_v8 = vrot.slane %v4314_v53, 5 }
 0x2f1   :  { %4439 = vmatprep.mubr.bf16.mxu0 %v9185_v24  ;;  %4591 = vmatprep.mubr.bf16.mxu1 %v9185_v24 }
 0x2f3   :  { %4410 = vmatpush1.bf16.msra.mxu0 %v8546_v9  ;;  %4562 = vmatpush1.bf16.msra.mxu1 %v8549_v10  ;;  %v4475_v9 = vrot.slane %v4314_v53, 6  ;;  %v4322_v10 = vsel %vm1439_vm3, %v4321_v58, %v4320_v6 }
 0x2f4   :  { %4411 = vmatprep.subr.bf16.mxu0 %v8554_v11  ;;  %4563 = vmatprep.subr.bf16.mxu1 %v8557_v12  ;;  %v8582_v12 = vld [vmem:[#allocation8 + $0x970] ss:$8 sps:$4 sm:$0xff]  }
 0x2f7   :  { %4412 = vmatpush1.bf16.msra.mxu0 %v8552_v13  ;;  %4564 = vmatpush1.bf16.msra.mxu1 %v8555_v14  ;;  %v8585_v13 = vld [vmem:[#allocation8 + $0x9f0] ss:$8 sps:$4 sm:$0xff]   ;;  %v8590_v14 = vld [vmem:[#allocation8 + $0xa04] ss:$8 sps:$4 sm:$0xff]  }
 0x2f8   :  { %4413 = vmatprep.subr.bf16.mxu0 %v8560_v15  ;;  %4565 = vmatprep.subr.bf16.mxu1 %v8563_v16  ;;  %v8593_v15 = vld [vmem:[#allocation8 + $0xa84] ss:$8 sps:$4 sm:$0xff]   ;;  %v4324_v16 = vsel %vm1442_vm4, %v4323_v8, %v4322_v10 }
 0x2fb   :  { %4414 = vmatpush1.bf16.msra.mxu0 %v8558_v19  ;;  %4566 = vmatpush1.bf16.msra.mxu1 %v8561_v20  ;;  %v8591_v19 = vld [vmem:[#allocation8 + $0xa80] ss:$8 sps:$4 sm:$0xff]   ;;  %v4325_v20 = vpack.c.b16 %v4324_v16, %v4324_v16 }
 0x2fc   :  { %4415 = vmatprep.subr.bf16.mxu0 %v8566_v22  ;;  %4567 = vmatprep.subr.bf16.mxu1 %v8569_v23  ;;  %v8596_v22 = vld [vmem:[#allocation8 + $0xa14] ss:$8 sps:$4 sm:$0xff]   ;;  %v8624_v16 = vld [vmem:[#allocation8 + $0xa60] ss:$8 sps:$4 sm:$0xff]  }
 0x2fd   :  { %v8599_v23 = vld [vmem:[#allocation8 + $0xa94] ss:$8 sps:$4 sm:$0xff]  }
 0x2ff   :  { %4416 = vmatpush1.bf16.msra.mxu0 %v8564_v30  ;;  %4568 = vmatpush1.bf16.msra.mxu1 %v8567_v32  ;;  %v8600_v30 = vld [vmem:[#allocation8 + $0xa20] ss:$8 sps:$4 sm:$0xff]  }
 0x300   :  { %4417 = vmatprep.subr.bf16.mxu0 %v8572_v34  ;;  %4569 = vmatprep.subr.bf16.mxu1 %v8575_v35  ;;  %v8603_v32 = vld [vmem:[#allocation8 + $0xaa0] ss:$8 sps:$4 sm:$0xff]   ;;  %v8611_v34 = vld [vmem:[#allocation8 + $0xab4] ss:$8 sps:$4 sm:$0xff]  }
 0x301   :  { %v2183_v50 = vpop.f32.mrb[32].mxu0  ;;  %v2335_v52 = vpop.f32.mrb[32].mxu1  ;;  %v4602_v35 = vld [vmem:[#allocation2 + $0x8] sm:$0x4] }
 0x302   :  { %v2190_v55 = vadd.f32 %v2183_v50, %v9470_v51  ;;  %v2185_v57 = vpop.f32.mrb[33].mxu0  ;;  %v2337_v31 = vpop.f32.mrb[33].mxu1  ;;  %v8584_v51 = vld [vmem:[#allocation8 + $0x974] ss:$8 sps:$4 sm:$0xff]   ;;  %v4631_v42 = vunpack.c.l.b16 %v4602_v35 }
 0x303   :  { %v2191_v61 = vadd.f32 %v2185_v57, %v9473_v56  ;;  %v2187_v62 = vpop.f32.mrb[34].mxu0  ;;  %v2339_v63 = vpop.f32.mrb[34].mxu1  ;;  %4418 = vmatpush1.bf16.msra.mxu0 %v8570_v44  ;;  %4570 = vmatpush1.bf16.msra.mxu1 %v8573_v45  ;;  %v4472_v56 = vsel %vm1436_vm2, %v4312_v36, %v4471_v59  ;;  %v4603_v36 = vld [vmem:[#allocation2 + $0x18] sm:$0x4]  ;;  %v4633_v45 = vunpack.c.l.b16 %v4604_v39  ;;  %v8623_v50 = vld [vmem:[#allocation8 + $0xad4] ss:$8 sps:$4 sm:$0xff]  }
 0x304   :  { %v9488_v2 = vadd.f32 %v2335_v52, %v2190_v55  ;;  %v2188_v3 = vpop.f32.mrb[35].mxu0  ;;  %v2340_v4 = vpop.f32.mrb[35].mxu1  ;;  %4419 = vmatprep.subr.bf16.mxu0 %v8578_v46  ;;  %4571 = vmatprep.subr.bf16.mxu1 %v8581_v47  ;;  %v4474_v11 = vsel %vm1439_vm3, %v4473_v60, %v4472_v56  ;;  %v4632_v43 = vunpack.c.l.b16 %v4603_v36  ;;  %v4605_v44 = vld [vmem:[#allocation2 + $0x38] sm:$0x4]  ;;  %v8612_v46 = vld [vmem:[#allocation8 + $0xa40] ss:$8 sps:$4 sm:$0xff]  }
 0x305   :  { %v9491_v7 = vadd.f32 %v2337_v31, %v2191_v61  ;;  %v4476_v17 = vsel %vm1442_vm4, %v4475_v9, %v4474_v11  ;;  %v8615_v47 = vld [vmem:[#allocation8 + $0xac0] ss:$8 sps:$4 sm:$0xff]   ;;  %v4637_v52 = vrot.slane %v4631_v42, 4  ;;  %v4634_v25 = vunpack.c.l.b16 %v4605_v44  ;;  %v4607_v57 = vld [vmem:[#allocation2 + $0x58] sm:$0x4] }
 0x306   :  { %v4477_v21 = vpack.c.b16 %v4476_v17, %v4476_v17  ;;  %v4638_v53 = vrot.slane %v4632_v43, 3  ;;  %v4789_v54 = vrot.slane %v4631_v42, 5  ;;  %v4790_v55 = vrot.slane %v4632_v43, 4  ;;  %v8618_v60 = vld [vmem:[#allocation8 + $0xa50] ss:$8 sps:$4 sm:$0xff]  }
 0x307   :  { %4420 = vmatpush1.bf16.msra.mxu0 %v8576_v0  ;;  %4572 = vmatpush1.bf16.msra.mxu1 %v8579_v1  ;;  %v4635_v31 = vunpack.c.l.b16 %v4606_v48  ;;  %v4640_v58 = vrot.slane %v4633_v45, 2  ;;  %v4792_v59 = vrot.slane %v4633_v45, 3  ;;  %v8621_v61 = vld [vmem:[#allocation8 + $0xad0] ss:$8 sps:$4 sm:$0xff]   ;;  %v8626_v62 = vld [vmem:[#allocation8 + $0xa64] ss:$8 sps:$4 sm:$0xff]   ;;  %v4636_v4 = vunpack.c.l.b16 %v4607_v57 }
 0x308   :  { %4421 = vmatprep.subr.bf16.mxu0 %v8584_v51  ;;  %4573 = vmatprep.subr.bf16.mxu1 %v8587_v5  ;;  %v8629_v63 = vld [vmem:[#allocation8 + $0xae4] ss:$8 sps:$4 sm:$0xff]   ;;  %v4639_v0 = vsel %vm1430_vm0, %v4638_v53, %v4637_v52  ;;  %v4642_v51 = vrot.slane %v4634_v25, 1  ;;  %v4791_v5 = vsel %vm1430_vm0, %v4790_v55, %v4789_v54  ;;  %v4794_v6 = vrot.slane %v4634_v25, 2  ;;  %v8627_v17 = vld [vmem:[#allocation8 + $0xae0] ss:$8 sps:$4 sm:$0xff]  }
 0x309   :  { %v4641_v10 = vsel %vm1433_vm1, %v4640_v58, %v4639_v0  ;;  %v4793_v11 = vsel %vm1433_vm1, %v4792_v59, %v4791_v5  ;;  %v8636_v36 = vld [vmem:[#allocation8 + $0xb00] ss:$8 sps:$4 sm:$0xff]   ;;  %v8642_v42 = vld [vmem:[#allocation8 + $0xb10] ss:$8 sps:$4 sm:$0xff]   ;;  %v8650_v44 = vld [vmem:[#allocation8 + $0xb24] ss:$8 sps:$4 sm:$0xff]  }
 0x30a   :  { %v8645_v43 = vld [vmem:[#allocation8 + $0xb90] ss:$8 sps:$4 sm:$0xff]   ;;  %v8653_v45 = vld [vmem:[#allocation8 + $0xba4] ss:$8 sps:$4 sm:$0xff]   ;;  %v8656_v48 = vld [vmem:[#allocation8 + $0xb34] ss:$8 sps:$4 sm:$0xff]  }
 0x30b   :  { %4422 = vmatpush1.bf16.msra.mxu0 %v8582_v12  ;;  %4574 = vmatpush1.bf16.msra.mxu1 %v8585_v13  ;;  %v4796_v12 = vrot.slane %v4635_v31, 1  ;;  %v4925_v52 = vld [vmem:[#allocation2 + $0x18] sm:$0x8]  ;;  %v4926_v53 = vld [vmem:[#allocation2 + $0x28] sm:$0x8] }
 0x30c   :  { %4729 = vmatprep.subr.bf16.mxu0 %v8590_v14  ;;  %4881 = vmatprep.subr.bf16.mxu1 %v8593_v15  ;;  %v8654_v25 = vld [vmem:[#allocation8 + $0xb30] ss:$8 sps:$4 sm:$0xff]   ;;  %v8662_v55 = vld [vmem:[#allocation8 + $0xb44] ss:$8 sps:$4 sm:$0xff]   ;;  %v4954_v58 = vunpack.c.l.b16 %v4925_v52  ;;  %v8668_v0 = vld [vmem:[#allocation8 + $0xb54] ss:$8 sps:$4 sm:$0xff]  }
 0x30d   :  { %v8657_v54 = vld [vmem:[#allocation8 + $0xbb0] ss:$8 sps:$4 sm:$0xff]   ;;  %v8665_v57 = vld [vmem:[#allocation8 + $0xbc4] ss:$8 sps:$4 sm:$0xff]  }
 0x30e   :  { %4440 = vmatmul.mubr.bf16.vlgmr.msra.gmra.mrb[60].mxu0 %v4325_v20  ;;  %4592 = vmatmul.mubr.bf16.vlgmr.msra.gmra.mrb[60].mxu1 %v4477_v21  ;;  %v8635_v21 = vld [vmem:[#allocation8 + $0xaf4] ss:$8 sps:$4 sm:$0xff]   ;;  %v4927_v59 = vld [vmem:[#allocation2 + $0x38] sm:$0x8] }
 0x30f   :  { %4730 = vmatpush1.bf16.msra.mxu0 %v8588_v18  ;;  %4882 = vmatpush1.bf16.msra.mxu1 %v8591_v19 }
 0x310   :  { %4731 = vmatprep.subr.bf16.mxu0 %v8596_v22  ;;  %4883 = vmatprep.subr.bf16.mxu1 %v8599_v23  ;;  %v4643_v23 = vsel %vm1436_vm2, %v4642_v51, %v4641_v10  ;;  %v4960_v51 = vrot.slane %v4954_v58, 5 }
 0x311   :  { %4761 = vmatprep.mubr.bf16.mxu0 %v9185_v24  ;;  %4913 = vmatprep.mubr.bf16.mxu1 %v9185_v24 }
 0x313   :  { %4732 = vmatpush1.bf16.msra.mxu0 %v8594_v26  ;;  %4884 = vmatpush1.bf16.msra.mxu1 %v8597_v27  ;;  %v4645_v26 = vrot.slane %v4636_v4, 7  ;;  %v4644_v27 = vsel %vm1439_vm3, %v4635_v31, %v4643_v23 }
 0x314   :  { %4733 = vmatprep.subr.bf16.mxu0 %v8602_v28  ;;  %4885 = vmatprep.subr.bf16.mxu1 %v8605_v29  ;;  %v8630_v29 = vld [vmem:[#allocation8 + $0xa70] ss:$8 sps:$4 sm:$0xff]  }
 0x317   :  { %4734 = vmatpush1.bf16.msra.mxu0 %v8600_v30  ;;  %4886 = vmatpush1.bf16.msra.mxu1 %v8603_v32  ;;  %v8633_v30 = vld [vmem:[#allocation8 + $0xaf0] ss:$8 sps:$4 sm:$0xff]   ;;  %v8638_v32 = vld [vmem:[#allocation8 + $0xb04] ss:$8 sps:$4 sm:$0xff]  }
 0x318   :  { %4735 = vmatprep.subr.bf16.mxu0 %v8608_v33  ;;  %4887 = vmatprep.subr.bf16.mxu1 %v8611_v34  ;;  %v8641_v33 = vld [vmem:[#allocation8 + $0xb84] ss:$8 sps:$4 sm:$0xff]   ;;  %v4646_v34 = vsel %vm1442_vm4, %v4645_v26, %v4644_v27 }
 0x31b   :  { %4736 = vmatpush1.bf16.msra.mxu0 %v8606_v37  ;;  %4888 = vmatpush1.bf16.msra.mxu1 %v8609_v38  ;;  %v8639_v37 = vld [vmem:[#allocation8 + $0xb80] ss:$8 sps:$4 sm:$0xff]   ;;  %v4647_v38 = vpack.c.b16 %v4646_v34, %v4646_v34 }
 0x31c   :  { %4737 = vmatprep.subr.bf16.mxu0 %v8614_v40  ;;  %4889 = vmatprep.subr.bf16.mxu1 %v8617_v41  ;;  %v8644_v40 = vld [vmem:[#allocation8 + $0xb14] ss:$8 sps:$4 sm:$0xff]  }
 0x31d   :  { %v8647_v41 = vld [vmem:[#allocation8 + $0xb94] ss:$8 sps:$4 sm:$0xff]  }
 0x31f   :  { %4738 = vmatpush1.bf16.msra.mxu0 %v8612_v46  ;;  %4890 = vmatpush1.bf16.msra.mxu1 %v8615_v47  ;;  %v8648_v46 = vld [vmem:[#allocation8 + $0xb20] ss:$8 sps:$4 sm:$0xff]  }
 0x320   :  { %4739 = vmatprep.subr.bf16.mxu0 %v8620_v49  ;;  %4891 = vmatprep.subr.bf16.mxu1 %v8623_v50  ;;  %v8651_v47 = vld [vmem:[#allocation8 + $0xba0] ss:$8 sps:$4 sm:$0xff]   ;;  %v8659_v49 = vld [vmem:[#allocation8 + $0xbb4] ss:$8 sps:$4 sm:$0xff]  }
 0x321   :  { %v2506_v1 = vpop.f32.mrb[36].mxu0  ;;  %v2659_v3 = vpop.f32.mrb[36].mxu1  ;;  %v4924_v50 = vld [vmem:[#allocation2 + $0x8] sm:$0x8] }
 0x322   :  { %v2513_v8 = vadd.f32 %v2506_v1, %v9488_v2  ;;  %v2508_v56 = vpop.f32.mrb[37].mxu0  ;;  %v2661_v9 = vpop.f32.mrb[37].mxu1  ;;  %v8632_v2 = vld [vmem:[#allocation8 + $0xa74] ss:$8 sps:$4 sm:$0xff]   ;;  %v4953_v31 = vunpack.c.l.b16 %v4924_v50  ;;  %v8689_v50 = vld [vmem:[#allocation8 + $0xc84] ss:$8 sps:$4 sm:$0xff]  }
 0x323   :  { %v2514_v13 = vadd.f32 %v2508_v56, %v9491_v7  ;;  %v2510_v14 = vpop.f32.mrb[38].mxu0  ;;  %v2663_v15 = vpop.f32.mrb[38].mxu1  ;;  %4740 = vmatpush1.bf16.msra.mxu0 %v8618_v60  ;;  %4892 = vmatpush1.bf16.msra.mxu1 %v8621_v61  ;;  %v4795_v7 = vsel %vm1436_vm2, %v4794_v6, %v4793_v11  ;;  %v4955_v60 = vunpack.c.l.b16 %v4926_v53  ;;  %v8660_v61 = vld [vmem:[#allocation8 + $0xb40] ss:$8 sps:$4 sm:$0xff]   ;;  %v8671_v1 = vld [vmem:[#allocation8 + $0xbd4] ss:$8 sps:$4 sm:$0xff]  }
 0x324   :  { %v9506_v18 = vadd.f32 %v2659_v3, %v2513_v8  ;;  %v2511_v19 = vpop.f32.mrb[39].mxu0  ;;  %v2664_v20 = vpop.f32.mrb[39].mxu1  ;;  %4741 = vmatprep.subr.bf16.mxu0 %v8626_v62  ;;  %4893 = vmatprep.subr.bf16.mxu1 %v8629_v63  ;;  %v4797_v28 = vsel %vm1439_vm3, %v4796_v12, %v4795_v7  ;;  %v8663_v62 = vld [vmem:[#allocation8 + $0xbc0] ss:$8 sps:$4 sm:$0xff]   ;;  %v4956_v3 = vunpack.c.l.b16 %v4927_v59  ;;  %v5112_v6 = vrot.slane %v4953_v31, 7 }
 0x325   :  { %v9508_v22 = vadd.f32 %v2661_v9, %v2514_v13  ;;  %v4798_v35 = vsel %vm1442_vm4, %v4636_v4, %v4797_v28  ;;  %v4928_v63 = vld [vmem:[#allocation2 + $0x48] sm:$0x8]  ;;  %v4959_v4 = vrot.slane %v4953_v31, 6  ;;  %v4962_v5 = vrot.slane %v4955_v60, 4  ;;  %v4929_v56 = vld [vmem:[#allocation2 + $0x58] sm:$0x8] }
 0x326   :  { %v4799_v39 = vpack.c.b16 %v4798_v35, %v4798_v35  ;;  %v5113_v8 = vrot.slane %v4954_v58, 6  ;;  %v4957_v9 = vunpack.c.l.b16 %v4928_v63  ;;  %v5115_v10 = vrot.slane %v4955_v60, 5  ;;  %v8666_v11 = vld [vmem:[#allocation8 + $0xb50] ss:$8 sps:$4 sm:$0xff]   ;;  %v8674_v13 = vld [vmem:[#allocation8 + $0xb64] ss:$8 sps:$4 sm:$0xff]  }
 0x327   :  { %4742 = vmatpush1.bf16.msra.mxu0 %v8624_v16  ;;  %4894 = vmatpush1.bf16.msra.mxu1 %v8627_v17  ;;  %v8669_v12 = vld [vmem:[#allocation8 + $0xbd0] ss:$8 sps:$4 sm:$0xff]   ;;  %v8677_v14 = vld [vmem:[#allocation8 + $0xbe4] ss:$8 sps:$4 sm:$0xff]   ;;  %v4961_v15 = vsel %vm1430_vm0, %v4960_v51, %v4959_v4  ;;  %v4964_v16 = vrot.slane %v4956_v3, 3  ;;  %v4958_v20 = vunpack.c.l.b16 %v4929_v56  ;;  %v5117_v23 = vrot.slane %v4956_v3, 4 }
 0x328   :  { %4743 = vmatprep.subr.bf16.mxu0 %v8632_v2  ;;  %4895 = vmatprep.subr.bf16.mxu1 %v8635_v21  ;;  %v4963_v2 = vsel %vm1433_vm1, %v4962_v5, %v4961_v15  ;;  %v5114_v21 = vsel %vm1430_vm0, %v5113_v8, %v5112_v6  ;;  %v4966_v28 = vrot.slane %v4957_v9, 2  ;;  %v8672_v35 = vld [vmem:[#allocation8 + $0xb60] ss:$8 sps:$4 sm:$0xff]   ;;  %v8692_v31 = vld [vmem:[#allocation8 + $0xc14] ss:$8 sps:$4 sm:$0xff]  }
 0x329   :  { %v8695_v58 = vld [vmem:[#allocation8 + $0xc94] ss:$8 sps:$4 sm:$0xff]   ;;  %v8690_v59 = vld [vmem:[#allocation8 + $0xc10] ss:$8 sps:$4 sm:$0xff]   ;;  %v8696_v63 = vld [vmem:[#allocation8 + $0xc20] ss:$8 sps:$4 sm:$0xff]  }
 0x32a   :  { %v8693_v60 = vld [vmem:[#allocation8 + $0xc90] ss:$8 sps:$4 sm:$0xff]   ;;  %v8707_v3 = vld [vmem:[#allocation8 + $0xcb4] ss:$8 sps:$4 sm:$0xff]   ;;  %v5248_v4 = vld [vmem:[#allocation2 + $0x8] sm:$0x10] }
 0x32b   :  { %4744 = vmatpush1.bf16.msra.mxu0 %v8630_v29  ;;  %4896 = vmatpush1.bf16.msra.mxu1 %v8633_v30  ;;  %v5116_v29 = vsel %vm1433_vm1, %v5115_v10, %v5114_v21  ;;  %v5119_v30 = vrot.slane %v4957_v9, 3  ;;  %v5249_v51 = vld [vmem:[#allocation2 + $0x18] sm:$0x10]  ;;  %v5250_v5 = vld [vmem:[#allocation2 + $0x28] sm:$0x10]  ;;  %v5277_v10 = vunpack.c.h.b16 %v5248_v4 }
 0x32c   :  { %5052 = vmatprep.subr.bf16.mxu0 %v8638_v32  ;;  %5205 = vmatprep.subr.bf16.mxu1 %v8641_v33  ;;  %v8702_v6 = vld [vmem:[#allocation8 + $0xc30] ss:$8 sps:$4 sm:$0xff]   ;;  %v8710_v56 = vld [vmem:[#allocation8 + $0xc44] ss:$8 sps:$4 sm:$0xff]   ;;  %v8708_v15 = vld [vmem:[#allocation8 + $0xc40] ss:$8 sps:$4 sm:$0xff]  }
 0x32d   :  { %v8705_v8 = vld [vmem:[#allocation8 + $0xcb0] ss:$8 sps:$4 sm:$0xff]   ;;  %v8713_v9 = vld [vmem:[#allocation8 + $0xcc4] ss:$8 sps:$4 sm:$0xff]   ;;  %v5435_v21 = vrot.slane %v5277_v10, 1 }
 0x32e   :  { %4762 = vmatmul.mubr.bf16.vlgmr.msra.gmra.mrb[64].mxu0 %v4647_v38  ;;  %4914 = vmatmul.mubr.bf16.vlgmr.msra.gmra.mrb[64].mxu1 %v4799_v39 }
 0x32f   :  { %5053 = vmatpush1.bf16.msra.mxu0 %v8636_v36  ;;  %5206 = vmatpush1.bf16.msra.mxu1 %v8639_v37  ;;  %v8675_v36 = vld [vmem:[#allocation8 + $0xbe0] ss:$8 sps:$4 sm:$0xff]  }
 0x330   :  { %5054 = vmatprep.subr.bf16.mxu0 %v8644_v40  ;;  %5207 = vmatprep.subr.bf16.mxu1 %v8647_v41  ;;  %v8683_v40 = vld [vmem:[#allocation8 + $0xbf4] ss:$8 sps:$4 sm:$0xff]   ;;  %v4965_v41 = vsel %vm1436_vm2, %v4964_v16, %v4963_v2  ;;  %v8711_v16 = vld [vmem:[#allocation8 + $0xcc0] ss:$8 sps:$4 sm:$0xff]  }
 0x331   :  { %5084 = vmatprep.mubr.bf16.mxu0 %v9185_v24  ;;  %5237 = vmatprep.mubr.bf16.mxu1 %v9185_v24 }
 0x333   :  { %5055 = vmatpush1.bf16.msra.mxu0 %v8642_v42  ;;  %5208 = vmatpush1.bf16.msra.mxu1 %v8645_v43  ;;  %v4968_v43 = vrot.slane %v4958_v20, 1 }
 0x334   :  { %5056 = vmatprep.subr.bf16.mxu0 %v8650_v44  ;;  %5209 = vmatprep.subr.bf16.mxu1 %v8653_v45  ;;  %v5121_v44 = vrot.slane %v4958_v20, 2  ;;  %v4967_v45 = vsel %vm1439_vm3, %v4966_v28, %v4965_v41  ;;  %v8719_v20 = vld [vmem:[#allocation8 + $0xcd4] ss:$8 sps:$4 sm:$0xff]  }
 0x335   :  { %v4969_v52 = vsel %vm1442_vm4, %v4968_v43, %v4967_v45 }
 0x337   :  { %5057 = vmatpush1.bf16.msra.mxu0 %v8648_v46  ;;  %5210 = vmatpush1.bf16.msra.mxu1 %v8651_v47  ;;  %v8678_v47 = vld [vmem:[#allocation8 + $0xb70] ss:$8 sps:$4 sm:$0xff]  }
 0x338   :  { %5058 = vmatprep.subr.bf16.mxu0 %v8656_v48  ;;  %5211 = vmatprep.subr.bf16.mxu1 %v8659_v49  ;;  %v8681_v48 = vld [vmem:[#allocation8 + $0xbf0] ss:$8 sps:$4 sm:$0xff]   ;;  %v8686_v49 = vld [vmem:[#allocation8 + $0xc04] ss:$8 sps:$4 sm:$0xff]  }
 0x33b   :  { %5059 = vmatpush1.bf16.msra.mxu0 %v8654_v25  ;;  %5212 = vmatpush1.bf16.msra.mxu1 %v8657_v54  ;;  %v8684_v25 = vld [vmem:[#allocation8 + $0xc00] ss:$8 sps:$4 sm:$0xff]  }
 0x33c   :  { %5060 = vmatprep.subr.bf16.mxu0 %v8662_v55  ;;  %5213 = vmatprep.subr.bf16.mxu1 %v8665_v57  ;;  %v8687_v54 = vld [vmem:[#allocation8 + $0xc80] ss:$8 sps:$4 sm:$0xff]   ;;  %v4970_v55 = vpack.c.b16 %v4969_v52, %v4969_v52 }
 0x33d   :  { %v8720_v52 = vld [vmem:[#allocation8 + $0xc60] ss:$8 sps:$4 sm:$0xff]  }
 0x33f   :  { %5061 = vmatpush1.bf16.msra.mxu0 %v8660_v61  ;;  %5214 = vmatpush1.bf16.msra.mxu1 %v8663_v62  ;;  %v8698_v61 = vld [vmem:[#allocation8 + $0xc24] ss:$8 sps:$4 sm:$0xff]  }
 0x340   :  { %5062 = vmatprep.subr.bf16.mxu0 %v8668_v0  ;;  %5215 = vmatprep.subr.bf16.mxu1 %v8671_v1  ;;  %v8701_v62 = vld [vmem:[#allocation8 + $0xca4] ss:$8 sps:$4 sm:$0xff]   ;;  %v8699_v0 = vld [vmem:[#allocation8 + $0xca0] ss:$8 sps:$4 sm:$0xff]   ;;  %v8704_v1 = vld [vmem:[#allocation8 + $0xc34] ss:$8 sps:$4 sm:$0xff]  }
 0x341   :  { %v2829_v17 = vpop.f32.mrb[40].mxu0  ;;  %v2981_v19 = vpop.f32.mrb[40].mxu1 }
 0x342   :  { %v2836_v26 = vadd.f32 %v2829_v17, %v9506_v18  ;;  %v2831_v7 = vpop.f32.mrb[41].mxu0  ;;  %v2983_v27 = vpop.f32.mrb[41].mxu1  ;;  %v8680_v18 = vld [vmem:[#allocation8 + $0xb74] ss:$8 sps:$4 sm:$0xff]  }
 0x343   :  { %v2837_v32 = vadd.f32 %v2831_v7, %v9508_v22  ;;  %v2833_v33 = vpop.f32.mrb[42].mxu0  ;;  %v2985_v34 = vpop.f32.mrb[42].mxu1  ;;  %5063 = vmatpush1.bf16.msra.mxu0 %v8666_v11  ;;  %5216 = vmatpush1.bf16.msra.mxu1 %v8669_v12  ;;  %v5118_v22 = vsel %vm1436_vm2, %v5117_v23, %v5116_v29  ;;  %v5278_v11 = vunpack.c.h.b16 %v5249_v51  ;;  %v5279_v12 = vunpack.c.h.b16 %v5250_v5  ;;  %v5253_v17 = vld [vmem:[#allocation2 + $0x58] sm:$0x10]  ;;  %v8714_v29 = vld [vmem:[#allocation8 + $0xc50] ss:$8 sps:$4 sm:$0xff]  }
 0x344   :  { %v9524_v37 = vadd.f32 %v2981_v19, %v2836_v26  ;;  %v2834_v38 = vpop.f32.mrb[43].mxu0  ;;  %v2986_v39 = vpop.f32.mrb[43].mxu1  ;;  %5064 = vmatprep.subr.bf16.mxu0 %v8674_v13  ;;  %5217 = vmatprep.subr.bf16.mxu1 %v8677_v14  ;;  %v5120_v46 = vsel %vm1439_vm3, %v5119_v30, %v5118_v22  ;;  %v5251_v13 = vld [vmem:[#allocation2 + $0x38] sm:$0x10]  ;;  %v5252_v14 = vld [vmem:[#allocation2 + $0x48] sm:$0x10]  ;;  %v5282_v28 = vunpack.c.h.b16 %v5253_v17 }
 0x345   :  { %v9527_v42 = vadd.f32 %v2983_v27, %v2837_v32  ;;  %v5122_v53 = vsel %vm1442_vm4, %v5121_v44, %v5120_v46  ;;  %v8716_v19 = vld [vmem:[#allocation8 + $0xc54] ss:$8 sps:$4 sm:$0xff]   ;;  %v5283_v2 = vrot.slane %v5278_v11, 7  ;;  %v5280_v23 = vunpack.c.h.b16 %v5251_v13  ;;  %v8717_v30 = vld [vmem:[#allocation8 + $0xcd0] ss:$8 sps:$4 sm:$0xff]  }
 0x346   :  { %v5123_v57 = vpack.c.b16 %v5122_v53, %v5122_v53  ;;  %v5285_v26 = vrot.slane %v5279_v12, 6  ;;  %v5437_v7 = vrot.slane %v5279_v12, 7  ;;  %v5281_v27 = vunpack.c.h.b16 %v5252_v14  ;;  %v8722_v32 = vld [vmem:[#allocation8 + $0xc64] ss:$8 sps:$4 sm:$0xff]   ;;  %v8723_v53 = vld [vmem:[#allocation8 + $0xce0] ss:$8 sps:$4 sm:$0xff]  }
 0x347   :  { %5065 = vmatpush1.bf16.msra.mxu0 %v8672_v35  ;;  %5218 = vmatpush1.bf16.msra.mxu1 %v8675_v36  ;;  %v8725_v33 = vld [vmem:[#allocation8 + $0xce4] ss:$8 sps:$4 sm:$0xff]   ;;  %v5284_v34 = vsel %vm1430_vm0, %v5283_v2, %v5277_v10  ;;  %v5436_v35 = vsel %vm1430_vm0, %v5278_v11, %v5435_v21  ;;  %v5439_v41 = vrot.slane %v5280_v23, 6  ;;  %v5291_v46 = vrot.slane %v5282_v28, 3  ;;  %v8732_v51 = vld [vmem:[#allocation8 + $0xd00] ss:$8 sps:$4 sm:$0xff]  }
 0x348   :  { %5066 = vmatprep.subr.bf16.mxu0 %v8680_v18  ;;  %5219 = vmatprep.subr.bf16.mxu1 %v8683_v40  ;;  %v5286_v39 = vsel %vm1433_vm1, %v5285_v26, %v5284_v34  ;;  %v5287_v18 = vrot.slane %v5280_v23, 5  ;;  %v5438_v40 = vsel %vm1433_vm1, %v5437_v7, %v5436_v35  ;;  %v5289_v45 = vrot.slane %v5281_v27, 4  ;;  %v8735_v5 = vld [vmem:[#allocation8 + $0xd80] ss:$8 sps:$4 sm:$0xff]   ;;  %v8738_v10 = vld [vmem:[#allocation8 + $0xd10] ss:$8 sps:$4 sm:$0xff]  }
 0x349   :  { %v8741_v11 = vld [vmem:[#allocation8 + $0xd90] ss:$8 sps:$4 sm:$0xff]   ;;  %v8746_v12 = vld [vmem:[#allocation8 + $0xd24] ss:$8 sps:$4 sm:$0xff]   ;;  %v8744_v14 = vld [vmem:[#allocation8 + $0xd20] ss:$8 sps:$4 sm:$0xff]  }
 0x34a   :  { %v8749_v13 = vld [vmem:[#allocation8 + $0xda4] ss:$8 sps:$4 sm:$0xff]   ;;  %v8755_v17 = vld [vmem:[#allocation8 + $0xdb4] ss:$8 sps:$4 sm:$0xff]   ;;  %v8750_v2 = vld [vmem:[#allocation8 + $0xd30] ss:$8 sps:$4 sm:$0xff]  }
 0x34b   :  { %5067 = vmatpush1.bf16.msra.mxu0 %v8678_v47  ;;  %5220 = vmatpush1.bf16.msra.mxu1 %v8681_v48  ;;  %v5441_v47 = vrot.slane %v5281_v27, 5  ;;  %v8753_v21 = vld [vmem:[#allocation8 + $0xdb0] ss:$8 sps:$4 sm:$0xff]   ;;  %v5572_v23 = vld [vmem:[#allocation2 + $0x28] sm:$0x20] }
 0x34c   :  { %5375 = vmatprep.subr.bf16.mxu0 %v8686_v49  ;;  %5527 = vmatprep.subr.bf16.mxu1 %v8689_v50  ;;  %v8758_v26 = vld [vmem:[#allocation8 + $0xd44] ss:$8 sps:$4 sm:$0xff]   ;;  %v5573_v27 = vld [vmem:[#allocation2 + $0x38] sm:$0x20]  ;;  %v8756_v34 = vld [vmem:[#allocation8 + $0xd40] ss:$8 sps:$4 sm:$0xff]  }
 0x34d   :  { %v8761_v7 = vld [vmem:[#allocation8 + $0xdc4] ss:$8 sps:$4 sm:$0xff]   ;;  %v8759_v35 = vld [vmem:[#allocation8 + $0xdc0] ss:$8 sps:$4 sm:$0xff]  }
 0x34e   :  { %5085 = vmatmul.mubr.bf16.vlgmr.msra.gmra.mrb[68].mxu0 %v4970_v55  ;;  %5238 = vmatmul.mubr.bf16.vlgmr.msra.gmra.mrb[68].mxu1 %v5123_v57  ;;  %v8731_v57 = vld [vmem:[#allocation8 + $0xcf4] ss:$8 sps:$4 sm:$0xff]  }
 0x34f   :  { %5376 = vmatpush1.bf16.msra.mxu0 %v8684_v25  ;;  %5528 = vmatpush1.bf16.msra.mxu1 %v8687_v54 }
 0x350   :  { %5377 = vmatprep.subr.bf16.mxu0 %v8692_v31  ;;  %5529 = vmatprep.subr.bf16.mxu1 %v8695_v58  ;;  %v5288_v58 = vsel %vm1436_vm2, %v5287_v18, %v5286_v39  ;;  %v5602_v39 = vunpack.c.h.b16 %v5573_v27  ;;  %v8786_v27 = vld [vmem:[#allocation8 + $0xe10] ss:$8 sps:$4 sm:$0xff]  }
 0x351   :  { %5407 = vmatprep.mubr.bf16.mxu0 %v9185_v24  ;;  %5559 = vmatprep.mubr.bf16.mxu1 %v9185_v24 }
 0x353   :  { %5378 = vmatpush1.bf16.msra.mxu0 %v8690_v59  ;;  %5530 = vmatpush1.bf16.msra.mxu1 %v8693_v60  ;;  %v5443_v59 = vrot.slane %v5282_v28, 4  ;;  %v5290_v60 = vsel %vm1439_vm3, %v5289_v45, %v5288_v58  ;;  %v5574_v28 = vld [vmem:[#allocation2 + $0x48] sm:$0x20] }
 0x354   :  { %5379 = vmatprep.subr.bf16.mxu0 %v8698_v61  ;;  %5531 = vmatprep.subr.bf16.mxu1 %v8701_v62  ;;  %v8726_v62 = vld [vmem:[#allocation8 + $0xc70] ss:$8 sps:$4 sm:$0xff]   ;;  %v5603_v18 = vunpack.c.h.b16 %v5574_v28 }
 0x355   :  { %v8789_v28 = vld [vmem:[#allocation8 + $0xe90] ss:$8 sps:$4 sm:$0xff]  }
 0x357   :  { %5380 = vmatpush1.bf16.msra.mxu0 %v8696_v63  ;;  %5532 = vmatpush1.bf16.msra.mxu1 %v8699_v0  ;;  %v8729_v63 = vld [vmem:[#allocation8 + $0xcf0] ss:$8 sps:$4 sm:$0xff]   ;;  %v8734_v0 = vld [vmem:[#allocation8 + $0xd04] ss:$8 sps:$4 sm:$0xff]  }
 0x358   :  { %5381 = vmatprep.subr.bf16.mxu0 %v8704_v1  ;;  %5533 = vmatprep.subr.bf16.mxu1 %v8707_v3  ;;  %v8737_v1 = vld [vmem:[#allocation8 + $0xd84] ss:$8 sps:$4 sm:$0xff]   ;;  %v5292_v3 = vsel %vm1442_vm4, %v5291_v46, %v5290_v60  ;;  %v8762_v46 = vld [vmem:[#allocation8 + $0xd50] ss:$8 sps:$4 sm:$0xff]  }
 0x35b   :  { %5382 = vmatpush1.bf16.msra.mxu0 %v8702_v6  ;;  %5534 = vmatpush1.bf16.msra.mxu1 %v8705_v8  ;;  %v5293_v6 = vpack.c.b16 %v5292_v3, %v5292_v3  ;;  %v8768_v3 = vld [vmem:[#allocation8 + $0xd60] ss:$8 sps:$4 sm:$0xff]  }
 0x35c   :  { %5383 = vmatprep.subr.bf16.mxu0 %v8710_v56  ;;  %5535 = vmatprep.subr.bf16.mxu1 %v8713_v9  ;;  %v8740_v56 = vld [vmem:[#allocation8 + $0xd14] ss:$8 sps:$4 sm:$0xff]  }
 0x35d   :  { %v8743_v9 = vld [vmem:[#allocation8 + $0xd94] ss:$8 sps:$4 sm:$0xff]  }
 0x35f   :  { %5384 = vmatpush1.bf16.msra.mxu0 %v8708_v15  ;;  %5536 = vmatpush1.bf16.msra.mxu1 %v8711_v16  ;;  %v8747_v15 = vld [vmem:[#allocation8 + $0xda0] ss:$8 sps:$4 sm:$0xff]   ;;  %v8752_v16 = vld [vmem:[#allocation8 + $0xd34] ss:$8 sps:$4 sm:$0xff]  }
 0x360   :  { %5385 = vmatprep.subr.bf16.mxu0 %v8716_v19  ;;  %5537 = vmatprep.subr.bf16.mxu1 %v8719_v20  ;;  %v5570_v19 = vld [vmem:[#allocation2 + $0x8] sm:$0x20]  ;;  %v5571_v20 = vld [vmem:[#allocation2 + $0x18] sm:$0x20] }
 0x361   :  { %v3151_v36 = vpop.f32.mrb[44].mxu0  ;;  %v3303_v38 = vpop.f32.mrb[44].mxu1 }
 0x362   :  { %v3158_v43 = vadd.f32 %v3151_v36, %v9524_v37  ;;  %v3153_v22 = vpop.f32.mrb[45].mxu0  ;;  %v3305_v44 = vpop.f32.mrb[45].mxu1  ;;  %v8728_v37 = vld [vmem:[#allocation8 + $0xc74] ss:$8 sps:$4 sm:$0xff]  }
 0x363   :  { %v3159_v48 = vadd.f32 %v3153_v22, %v9527_v42  ;;  %v3155_v49 = vpop.f32.mrb[46].mxu0  ;;  %v3307_v50 = vpop.f32.mrb[46].mxu1  ;;  %5386 = vmatpush1.bf16.msra.mxu0 %v8714_v29  ;;  %5538 = vmatpush1.bf16.msra.mxu1 %v8717_v30  ;;  %v5440_v42 = vsel %vm1436_vm2, %v5439_v41, %v5438_v40  ;;  %v5575_v29 = vld [vmem:[#allocation2 + $0x58] sm:$0x20]  ;;  %v5599_v30 = vunpack.c.h.b16 %v5570_v19 }
 0x364   :  { %v9542_v25 = vadd.f32 %v3303_v38, %v3158_v43  ;;  %v3156_v54 = vpop.f32.mrb[47].mxu0  ;;  %v3308_v55 = vpop.f32.mrb[47].mxu1  ;;  %5387 = vmatprep.subr.bf16.mxu0 %v8722_v32  ;;  %5539 = vmatprep.subr.bf16.mxu1 %v8725_v33  ;;  %v5442_v61 = vsel %vm1439_vm3, %v5441_v47, %v5440_v42  ;;  %v5600_v32 = vunpack.c.h.b16 %v5571_v20  ;;  %v5601_v33 = vunpack.c.h.b16 %v5572_v23  ;;  %v8764_v36 = vld [vmem:[#allocation8 + $0xd54] ss:$8 sps:$4 sm:$0xff]   ;;  %v8765_v47 = vld [vmem:[#allocation8 + $0xdd0] ss:$8 sps:$4 sm:$0xff]  }
 0x365   :  { %v9544_v31 = vadd.f32 %v3305_v44, %v3159_v48  ;;  %v5444_v4 = vsel %vm1442_vm4, %v5443_v59, %v5442_v61  ;;  %v8767_v38 = vld [vmem:[#allocation8 + $0xdd4] ss:$8 sps:$4 sm:$0xff]   ;;  %v5604_v40 = vunpack.c.h.b16 %v5575_v29  ;;  %v5605_v41 = vrot.slane %v5599_v30, 2  ;;  %v8770_v48 = vld [vmem:[#allocation8 + $0xd64] ss:$8 sps:$4 sm:$0xff]  }
 0x366   :  { %v5445_v8 = vpack.c.b16 %v5444_v4, %v5444_v4  ;;  %v5606_v43 = vrot.slane %v5600_v32, 1  ;;  %v5757_v22 = vrot.slane %v5599_v30, 3  ;;  %v5758_v44 = vrot.slane %v5600_v32, 2  ;;  %v8773_v49 = vld [vmem:[#allocation8 + $0xde4] ss:$8 sps:$4 sm:$0xff]  }
 0x367   :  { %5388 = vmatpush1.bf16.msra.mxu0 %v8720_v52  ;;  %5540 = vmatpush1.bf16.msra.mxu1 %v8723_v53  ;;  %v5760_v45 = vrot.slane %v5601_v33, 1  ;;  %v5609_v50 = vrot.slane %v5602_v39, 7  ;;  %v5611_v55 = vrot.slane %v5603_v18, 6  ;;  %v8771_v4 = vld [vmem:[#allocation8 + $0xde0] ss:$8 sps:$4 sm:$0xff]  }
 0x368   :  { %5389 = vmatprep.subr.bf16.mxu0 %v8728_v37  ;;  %5541 = vmatprep.subr.bf16.mxu1 %v8731_v57  ;;  %v5607_v54 = vsel %vm1430_vm0, %v5606_v43, %v5605_v41  ;;  %v5613_v37 = vrot.slane %v5604_v40, 5  ;;  %v5759_v57 = vsel %vm1430_vm0, %v5758_v44, %v5757_v22  ;;  %v8780_v20 = vld [vmem:[#allocation8 + $0xe00] ss:$8 sps:$4 sm:$0xff]   ;;  %v8794_v29 = vld [vmem:[#allocation8 + $0xe24] ss:$8 sps:$4 sm:$0xff]  }
 0x369   :  { %v5608_v60 = vsel %vm1433_vm1, %v5601_v33, %v5607_v54  ;;  %v5761_v61 = vsel %vm1433_vm1, %v5760_v45, %v5759_v57  ;;  %v8797_v30 = vld [vmem:[#allocation8 + $0xea4] ss:$8 sps:$4 sm:$0xff]   ;;  %v8792_v32 = vld [vmem:[#allocation8 + $0xe20] ss:$8 sps:$4 sm:$0xff]   ;;  %v5895_v22 = vld [vmem:[#allocation2 + $0x38] sm:$0x40] }
 0x36a   :  { %v8795_v33 = vld [vmem:[#allocation8 + $0xea0] ss:$8 sps:$4 sm:$0xff]   ;;  %v8806_v41 = vld [vmem:[#allocation8 + $0xe44] ss:$8 sps:$4 sm:$0xff]   ;;  %v5897_v54 = vld [vmem:[#allocation2 + $0x58] sm:$0x40] }
 0x36b   :  { %5390 = vmatpush1.bf16.msra.mxu0 %v8726_v62  ;;  %5542 = vmatpush1.bf16.msra.mxu1 %v8729_v63  ;;  %v5763_v62 = vrot.slane %v5603_v18, 7  ;;  %v8801_v18 = vld [vmem:[#allocation8 + $0xeb0] ss:$8 sps:$4 sm:$0xff]   ;;  %v8809_v43 = vld [vmem:[#allocation8 + $0xec4] ss:$8 sps:$4 sm:$0xff]  }
 0x36c   :  { %5697 = vmatprep.subr.bf16.mxu0 %v8734_v0  ;;  %5849 = vmatprep.subr.bf16.mxu1 %v8737_v1 }
 0x36e   :  { %5408 = vmatmul.mubr.bf16.vlgmr.msra.gmra.mrb[72].mxu0 %v5293_v6  ;;  %5560 = vmatmul.mubr.bf16.vlgmr.msra.gmra.mrb[72].mxu1 %v5445_v8  ;;  %v8779_v8 = vld [vmem:[#allocation8 + $0xdf4] ss:$8 sps:$4 sm:$0xff]  }
 0x36f   :  { %5698 = vmatpush1.bf16.msra.mxu0 %v8732_v51  ;;  %5850 = vmatpush1.bf16.msra.mxu1 %v8735_v5 }
 0x370   :  { %5699 = vmatprep.subr.bf16.mxu0 %v8740_v56  ;;  %5851 = vmatprep.subr.bf16.mxu1 %v8743_v9  ;;  %v5610_v9 = vsel %vm1436_vm2, %v5609_v50, %v5608_v60  ;;  %v8812_v50 = vld [vmem:[#allocation8 + $0xe54] ss:$8 sps:$4 sm:$0xff]  }
 0x371   :  { %5729 = vmatprep.mubr.bf16.mxu0 %v9185_v24  ;;  %5881 = vmatprep.mubr.bf16.mxu1 %v9185_v24 }
 0x373   :  { %5700 = vmatpush1.bf16.msra.mxu0 %v8738_v10  ;;  %5852 = vmatpush1.bf16.msra.mxu1 %v8741_v11  ;;  %v5765_v10 = vrot.slane %v5604_v40, 6  ;;  %v5612_v11 = vsel %vm1439_vm3, %v5611_v55, %v5610_v9  ;;  %v5894_v40 = vld [vmem:[#allocation2 + $0x28] sm:$0x40] }
 0x374   :  { %5701 = vmatprep.subr.bf16.mxu0 %v8746_v12  ;;  %5853 = vmatprep.subr.bf16.mxu1 %v8749_v13  ;;  %v8774_v13 = vld [vmem:[#allocation8 + $0xd70] ss:$8 sps:$4 sm:$0xff]  }
 0x377   :  { %5702 = vmatpush1.bf16.msra.mxu0 %v8744_v14  ;;  %5854 = vmatpush1.bf16.msra.mxu1 %v8747_v15  ;;  %v8777_v14 = vld [vmem:[#allocation8 + $0xdf0] ss:$8 sps:$4 sm:$0xff]   ;;  %v8782_v15 = vld [vmem:[#allocation8 + $0xe04] ss:$8 sps:$4 sm:$0xff]  }
 0x378   :  { %5703 = vmatprep.subr.bf16.mxu0 %v8752_v16  ;;  %5855 = vmatprep.subr.bf16.mxu1 %v8755_v17  ;;  %v8785_v16 = vld [vmem:[#allocation8 + $0xe84] ss:$8 sps:$4 sm:$0xff]   ;;  %v5614_v17 = vsel %vm1442_vm4, %v5613_v37, %v5612_v11 }
 0x37b   :  { %5704 = vmatpush1.bf16.msra.mxu0 %v8750_v2  ;;  %5856 = vmatpush1.bf16.msra.mxu1 %v8753_v21  ;;  %v8783_v2 = vld [vmem:[#allocation8 + $0xe80] ss:$8 sps:$4 sm:$0xff]   ;;  %v5615_v21 = vpack.c.b16 %v5614_v17, %v5614_v17 }
 0x37c   :  { %5705 = vmatprep.subr.bf16.mxu0 %v8758_v26  ;;  %5857 = vmatprep.subr.bf16.mxu1 %v8761_v7  ;;  %v8788_v26 = vld [vmem:[#allocation8 + $0xe14] ss:$8 sps:$4 sm:$0xff]   ;;  %v8816_v17 = vld [vmem:[#allocation8 + $0xe60] ss:$8 sps:$4 sm:$0xff]  }
 0x37d   :  { %v8791_v7 = vld [vmem:[#allocation8 + $0xe94] ss:$8 sps:$4 sm:$0xff]  }
 0x37f   :  { %5706 = vmatpush1.bf16.msra.mxu0 %v8756_v34  ;;  %5858 = vmatpush1.bf16.msra.mxu1 %v8759_v35  ;;  %v8800_v34 = vld [vmem:[#allocation8 + $0xe34] ss:$8 sps:$4 sm:$0xff]  }
 0x380   :  { %5707 = vmatprep.subr.bf16.mxu0 %v8764_v36  ;;  %5859 = vmatprep.subr.bf16.mxu1 %v8767_v38  ;;  %v8803_v35 = vld [vmem:[#allocation8 + $0xeb4] ss:$8 sps:$4 sm:$0xff]   ;;  %v5892_v36 = vld [vmem:[#allocation2 + $0x8] sm:$0x40] }
 0x381   :  { %v3473_v52 = vpop.f32.mrb[48].mxu0  ;;  %v3625_v53 = vpop.f32.mrb[48].mxu1  ;;  %v5893_v38 = vld [vmem:[#allocation2 + $0x18] sm:$0x40]  ;;  %v5921_v44 = vunpack.c.h.b16 %v5892_v36 }
 0x382   :  { %v3480_v58 = vadd.f32 %v3473_v52, %v9542_v25  ;;  %v3475_v42 = vpop.f32.mrb[49].mxu0  ;;  %v3627_v59 = vpop.f32.mrb[49].mxu1  ;;  %v8776_v25 = vld [vmem:[#allocation8 + $0xd74] ss:$8 sps:$4 sm:$0xff]   ;;  %v5922_v45 = vunpack.c.h.b16 %v5893_v38  ;;  %v8828_v38 = vld [vmem:[#allocation8 + $0xf00] ss:$8 sps:$4 sm:$0xff]  }
 0x383   :  { %v3481_v63 = vadd.f32 %v3475_v42, %v9544_v31  ;;  %v3477_v0 = vpop.f32.mrb[50].mxu0  ;;  %v3629_v1 = vpop.f32.mrb[50].mxu1  ;;  %5708 = vmatpush1.bf16.msra.mxu0 %v8762_v46  ;;  %5860 = vmatpush1.bf16.msra.mxu1 %v8765_v47  ;;  %v5762_v31 = vsel %vm1436_vm2, %v5602_v39, %v5761_v61  ;;  %v8798_v39 = vld [vmem:[#allocation8 + $0xe30] ss:$8 sps:$4 sm:$0xff]   ;;  %v5923_v46 = vunpack.c.h.b16 %v5894_v40  ;;  %v8804_v47 = vld [vmem:[#allocation8 + $0xe40] ss:$8 sps:$4 sm:$0xff]  }
 0x384   :  { %v9560_v51 = vadd.f32 %v3625_v53, %v3480_v58  ;;  %v3478_v5 = vpop.f32.mrb[51].mxu0  ;;  %v3630_v6 = vpop.f32.mrb[51].mxu1  ;;  %5709 = vmatprep.subr.bf16.mxu0 %v8770_v48  ;;  %5861 = vmatprep.subr.bf16.mxu1 %v8773_v49  ;;  %v5764_v12 = vsel %vm1439_vm3, %v5763_v62, %v5762_v31  ;;  %v8807_v48 = vld [vmem:[#allocation8 + $0xec0] ss:$8 sps:$4 sm:$0xff]   ;;  %v5896_v49 = vld [vmem:[#allocation2 + $0x48] sm:$0x40]  ;;  %v5924_v53 = vunpack.c.h.b16 %v5895_v22  ;;  %v5926_v1 = vunpack.c.h.b16 %v5897_v54 }
 0x385   :  { %v9562_v56 = vadd.f32 %v3627_v59, %v3481_v63  ;;  %v5766_v19 = vsel %vm1442_vm4, %v5765_v10, %v5764_v12  ;;  %v8815_v52 = vld [vmem:[#allocation8 + $0xed4] ss:$8 sps:$4 sm:$0xff]   ;;  %v5927_v55 = vrot.slane %v5921_v44, 4  ;;  %v5928_v37 = vrot.slane %v5922_v45, 3  ;;  %v8810_v61 = vld [vmem:[#allocation8 + $0xe50] ss:$8 sps:$4 sm:$0xff]  }
 0x386   :  { %v5767_v23 = vpack.c.b16 %v5766_v19, %v5766_v19  ;;  %v6079_v57 = vrot.slane %v5921_v44, 5  ;;  %v6080_v58 = vrot.slane %v5922_v45, 4  ;;  %v5925_v42 = vunpack.c.h.b16 %v5896_v49  ;;  %v8813_v62 = vld [vmem:[#allocation8 + $0xed0] ss:$8 sps:$4 sm:$0xff]   ;;  %v8818_v63 = vld [vmem:[#allocation8 + $0xe64] ss:$8 sps:$4 sm:$0xff]  }
 0x387   :  { %5710 = vmatpush1.bf16.msra.mxu0 %v8768_v3  ;;  %5862 = vmatpush1.bf16.msra.mxu1 %v8771_v4  ;;  %v5930_v59 = vrot.slane %v5923_v46, 2  ;;  %v6082_v60 = vrot.slane %v5923_v46, 3  ;;  %v8821_v0 = vld [vmem:[#allocation8 + $0xee4] ss:$8 sps:$4 sm:$0xff]   ;;  %v5929_v5 = vsel %vm1430_vm0, %v5928_v37, %v5927_v55  ;;  %v5932_v6 = vrot.slane %v5924_v53, 1 }
 0x388   :  { %5711 = vmatprep.subr.bf16.mxu0 %v8776_v25  ;;  %5863 = vmatprep.subr.bf16.mxu1 %v8779_v8  ;;  %v6081_v25 = vsel %vm1430_vm0, %v6080_v58, %v6079_v57  ;;  %v6084_v8 = vrot.slane %v5924_v53, 2  ;;  %v8819_v19 = vld [vmem:[#allocation8 + $0xee0] ss:$8 sps:$4 sm:$0xff]   ;;  %v8834_v22 = vld [vmem:[#allocation8 + $0xf10] ss:$8 sps:$4 sm:$0xff]  }
 0x389   :  { %v5931_v11 = vsel %vm1433_vm1, %v5930_v59, %v5929_v5  ;;  %v6083_v12 = vsel %vm1433_vm1, %v6082_v60, %v6081_v25  ;;  %v8837_v44 = vld [vmem:[#allocation8 + $0xf90] ss:$8 sps:$4 sm:$0xff]   ;;  %v8842_v45 = vld [vmem:[#allocation8 + $0xf24] ss:$8 sps:$4 sm:$0xff]   ;;  %v8848_v49 = vld [vmem:[#allocation8 + $0xf34] ss:$8 sps:$4 sm:$0xff]  }
 0x38a   :  { %v8845_v46 = vld [vmem:[#allocation8 + $0xfa4] ss:$8 sps:$4 sm:$0xff]   ;;  %v6215_v53 = vld [vmem:[#allocation2 + $0x18] sm:$0x80]  ;;  %v8846_v54 = vld [vmem:[#allocation8 + $0xf30] ss:$8 sps:$4 sm:$0xff]  }
 0x38b   :  { %5712 = vmatpush1.bf16.msra.mxu0 %v8774_v13  ;;  %5864 = vmatpush1.bf16.msra.mxu1 %v8777_v14  ;;  %v6086_v13 = vrot.slane %v5925_v42, 1  ;;  %v8849_v55 = vld [vmem:[#allocation8 + $0xfb0] ss:$8 sps:$4 sm:$0xff]   ;;  %v6216_v37 = vld [vmem:[#allocation2 + $0x28] sm:$0x80] }
 0x38c   :  { %6019 = vmatprep.subr.bf16.mxu0 %v8782_v15  ;;  %6171 = vmatprep.subr.bf16.mxu1 %v8785_v16  ;;  %v8854_v57 = vld [vmem:[#allocation8 + $0xf44] ss:$8 sps:$4 sm:$0xff]   ;;  %v6217_v59 = vld [vmem:[#allocation2 + $0x38] sm:$0x80] }
 0x38d   :  { %v8857_v58 = vld [vmem:[#allocation8 + $0xfc4] ss:$8 sps:$4 sm:$0xff]  }
 0x38e   :  { %5730 = vmatmul.mubr.bf16.vlgmr.msra.gmra.mrb[76].mxu0 %v5615_v21  ;;  %5882 = vmatmul.mubr.bf16.vlgmr.msra.gmra.mrb[76].mxu1 %v5767_v23  ;;  %v8827_v23 = vld [vmem:[#allocation8 + $0xef4] ss:$8 sps:$4 sm:$0xff]   ;;  %v6218_v60 = vld [vmem:[#allocation2 + $0x48] sm:$0x80] }
 0x38f   :  { %6020 = vmatpush1.bf16.msra.mxu0 %v8780_v20  ;;  %6172 = vmatpush1.bf16.msra.mxu1 %v8783_v2  ;;  %v6247_v25 = vunpack.c.h.b16 %v6218_v60 }
 0x390   :  { %6021 = vmatprep.subr.bf16.mxu0 %v8788_v26  ;;  %6173 = vmatprep.subr.bf16.mxu1 %v8791_v7  ;;  %v5933_v7 = vsel %vm1436_vm2, %v5932_v6, %v5931_v11 }
 0x391   :  { %6051 = vmatprep.mubr.bf16.mxu0 %v9185_v24  ;;  %6203 = vmatprep.mubr.bf16.mxu1 %v9185_v24 }
 0x393   :  { %6022 = vmatpush1.bf16.msra.mxu0 %v8786_v27  ;;  %6174 = vmatpush1.bf16.msra.mxu1 %v8789_v28  ;;  %v5935_v27 = vrot.slane %v5926_v1, 7  ;;  %v5934_v28 = vsel %vm1439_vm3, %v5925_v42, %v5933_v7  ;;  %v6244_v42 = vunpack.c.h.b16 %v6215_v53 }
 0x394   :  { %6023 = vmatprep.subr.bf16.mxu0 %v8794_v29  ;;  %6175 = vmatprep.subr.bf16.mxu1 %v8797_v30  ;;  %v8822_v30 = vld [vmem:[#allocation8 + $0xe70] ss:$8 sps:$4 sm:$0xff]  }
 0x395   :  { %v6250_v6 = vrot.slane %v6244_v42, 5 }
 0x397   :  { %6024 = vmatpush1.bf16.msra.mxu0 %v8792_v32  ;;  %6176 = vmatpush1.bf16.msra.mxu1 %v8795_v33  ;;  %v8825_v32 = vld [vmem:[#allocation8 + $0xef0] ss:$8 sps:$4 sm:$0xff]   ;;  %v8830_v33 = vld [vmem:[#allocation8 + $0xf04] ss:$8 sps:$4 sm:$0xff]  }
 0x398   :  { %6025 = vmatprep.subr.bf16.mxu0 %v8800_v34  ;;  %6177 = vmatprep.subr.bf16.mxu1 %v8803_v35  ;;  %v8833_v34 = vld [vmem:[#allocation8 + $0xf84] ss:$8 sps:$4 sm:$0xff]   ;;  %v5936_v35 = vsel %vm1442_vm4, %v5935_v27, %v5934_v28 }
 0x39b   :  { %6026 = vmatpush1.bf16.msra.mxu0 %v8798_v39  ;;  %6178 = vmatpush1.bf16.msra.mxu1 %v8801_v18  ;;  %v8831_v39 = vld [vmem:[#allocation8 + $0xf80] ss:$8 sps:$4 sm:$0xff]   ;;  %v5937_v18 = vpack.c.b16 %v5936_v35, %v5936_v35 }
 0x39c   :  { %6027 = vmatprep.subr.bf16.mxu0 %v8806_v41  ;;  %6179 = vmatprep.subr.bf16.mxu1 %v8809_v43  ;;  %v8836_v41 = vld [vmem:[#allocation8 + $0xf14] ss:$8 sps:$4 sm:$0xff]  }
 0x39d   :  { %v8839_v43 = vld [vmem:[#allocation8 + $0xf94] ss:$8 sps:$4 sm:$0xff]  }
 0x39f   :  { %6028 = vmatpush1.bf16.msra.mxu0 %v8804_v47  ;;  %6180 = vmatpush1.bf16.msra.mxu1 %v8807_v48  ;;  %v8840_v47 = vld [vmem:[#allocation8 + $0xf20] ss:$8 sps:$4 sm:$0xff]  }
 0x3a0   :  { %6029 = vmatprep.subr.bf16.mxu0 %v8812_v50  ;;  %6181 = vmatprep.subr.bf16.mxu1 %v8815_v52  ;;  %v8843_v48 = vld [vmem:[#allocation8 + $0xfa0] ss:$8 sps:$4 sm:$0xff]   ;;  %v8851_v50 = vld [vmem:[#allocation8 + $0xfb4] ss:$8 sps:$4 sm:$0xff]   ;;  %v6214_v52 = vld [vmem:[#allocation2 + $0x8] sm:$0x80] }
 0x3a1   :  { %v3796_v3 = vpop.f32.mrb[52].mxu0  ;;  %v3949_v4 = vpop.f32.mrb[52].mxu1 }
 0x3a2   :  { %v3803_v9 = vadd.f32 %v3796_v3, %v9560_v51  ;;  %v3798_v31 = vpop.f32.mrb[53].mxu0  ;;  %v3951_v10 = vpop.f32.mrb[53].mxu1  ;;  %v8824_v51 = vld [vmem:[#allocation8 + $0xe74] ss:$8 sps:$4 sm:$0xff]  }
 0x3a3   :  { %v3804_v14 = vadd.f32 %v3798_v31, %v9562_v56  ;;  %v3800_v15 = vpop.f32.mrb[54].mxu0  ;;  %v3953_v16 = vpop.f32.mrb[54].mxu1  ;;  %6030 = vmatpush1.bf16.msra.mxu0 %v8810_v61  ;;  %6182 = vmatpush1.bf16.msra.mxu1 %v8813_v62  ;;  %v6085_v56 = vsel %vm1436_vm2, %v6084_v8, %v6083_v12  ;;  %v6219_v61 = vld [vmem:[#allocation2 + $0x58] sm:$0x80]  ;;  %v6245_v62 = vunpack.c.h.b16 %v6216_v37  ;;  %v6403_v31 = vrot.slane %v6244_v42, 6 }
 0x3a4   :  { %v9578_v20 = vadd.f32 %v3949_v4, %v3803_v9  ;;  %v3801_v2 = vpop.f32.mrb[55].mxu0  ;;  %v3954_v21 = vpop.f32.mrb[55].mxu1  ;;  %6031 = vmatprep.subr.bf16.mxu0 %v8818_v63  ;;  %6183 = vmatprep.subr.bf16.mxu1 %v8821_v0  ;;  %v6087_v29 = vsel %vm1439_vm3, %v6086_v13, %v6085_v56  ;;  %v8852_v63 = vld [vmem:[#allocation8 + $0xf40] ss:$8 sps:$4 sm:$0xff]   ;;  %v8863_v3 = vld [vmem:[#allocation8 + $0xfd4] ss:$8 sps:$4 sm:$0xff]   ;;  %v6246_v4 = vunpack.c.h.b16 %v6217_v59  ;;  %v6248_v8 = vunpack.c.h.b16 %v6219_v61 }
 0x3a5   :  { %v9580_v26 = vadd.f32 %v3951_v10, %v3804_v14  ;;  %v6088_v36 = vsel %vm1442_vm4, %v5926_v1, %v6087_v29  ;;  %v8855_v0 = vld [vmem:[#allocation8 + $0xfc0] ss:$8 sps:$4 sm:$0xff]   ;;  %v8860_v1 = vld [vmem:[#allocation8 + $0xf54] ss:$8 sps:$4 sm:$0xff]   ;;  %v6252_v10 = vrot.slane %v6245_v62, 4  ;;  %v6405_v11 = vrot.slane %v6245_v62, 5 }
 0x3a6   :  { %v6089_v40 = vpack.c.b16 %v6088_v36, %v6088_v36  ;;  %v8858_v12 = vld [vmem:[#allocation8 + $0xf50] ss:$8 sps:$4 sm:$0xff]   ;;  %v8866_v14 = vld [vmem:[#allocation8 + $0xf64] ss:$8 sps:$4 sm:$0xff]   ;;  %v6256_v21 = vrot.slane %v6247_v25, 2  ;;  %v6407_v7 = vrot.slane %v6246_v4, 4 }
 0x3a7   :  { %6032 = vmatpush1.bf16.msra.mxu0 %v8816_v17  ;;  %6184 = vmatpush1.bf16.msra.mxu1 %v8819_v19  ;;  %v8861_v13 = vld [vmem:[#allocation8 + $0xfd0] ss:$8 sps:$4 sm:$0xff]   ;;  %v8869_v15 = vld [vmem:[#allocation8 + $0xfe4] ss:$8 sps:$4 sm:$0xff]   ;;  %v6254_v17 = vrot.slane %v6246_v4, 3 }
 0x3a8   :  { %6033 = vmatprep.subr.bf16.mxu0 %v8824_v51  ;;  %6185 = vmatprep.subr.bf16.mxu1 %v8827_v23  ;;  %v6258_v51 = vrot.slane %v6248_v8, 1  ;;  %v8864_v36 = vld [vmem:[#allocation8 + $0xf60] ss:$8 sps:$4 sm:$0xff]   ;;  %v8879_v4 = vld [vmem:[#allocation11 + $0x10] ss:$8 sps:$4 sm:$0xff]  }
 0x3ab   :  { %6034 = vmatpush1.bf16.msra.mxu0 %v8822_v30  ;;  %6186 = vmatpush1.bf16.msra.mxu1 %v8825_v32  ;;  %v6409_v32 = vrot.slane %v6247_v25, 3  ;;  %v8887_v25 = vld [vmem:[#allocation11 + $0x34] ss:$8 sps:$4 sm:$0xff]  }
 0x3ac   :  { %6342 = vmatprep.subr.bf16.mxu0 %v8830_v33  ;;  %6495 = vmatprep.subr.bf16.mxu1 %v8833_v34 }
 0x3ae   :  { %6052 = vmatmul.mubr.bf16.vlgmr.msra.gmra.mrb[80].mxu0 %v5937_v18  ;;  %6204 = vmatmul.mubr.bf16.vlgmr.msra.gmra.mrb[80].mxu1 %v6089_v40 }
 0x3af   :  { %6343 = vmatpush1.bf16.msra.mxu0 %v8828_v38  ;;  %6496 = vmatpush1.bf16.msra.mxu1 %v8831_v39  ;;  %v8867_v38 = vld [vmem:[#allocation8 + $0xfe0] ss:$8 sps:$4 sm:$0xff]  }
 0x3b0   :  { %6344 = vmatprep.subr.bf16.mxu0 %v8836_v41  ;;  %6497 = vmatprep.subr.bf16.mxu1 %v8839_v43  ;;  %v8875_v41 = vld [vmem:[#allocation8 + $0xff4] ss:$8 sps:$4 sm:$0xff]  }
 0x3b1   :  { %6374 = vmatprep.mubr.bf16.mxu0 %v9185_v24  ;;  %6527 = vmatprep.mubr.bf16.mxu1 %v9185_v24  ;;  %v6243_v24 = vunpack.c.h.b16 %v6214_v52 }
 0x3b3   :  { %6345 = vmatpush1.bf16.msra.mxu0 %v8834_v22  ;;  %6498 = vmatpush1.bf16.msra.mxu1 %v8837_v44  ;;  %v6249_v5 = vrot.slane %v6243_v24, 6  ;;  %v6402_v9 = vrot.slane %v6243_v24, 7 }
 0x3b4   :  { %6346 = vmatprep.subr.bf16.mxu0 %v8842_v45  ;;  %6499 = vmatprep.subr.bf16.mxu1 %v8845_v46  ;;  %v6411_v45 = vrot.slane %v6248_v8, 2  ;;  %v8885_v8 = vld [vmem:[#allocation11 + $0x30] ss:$8 sps:$4 sm:$0xff]  }
 0x3b5   :  { %v6251_v16 = vsel %vm1430_vm0, %v6250_v6, %v6249_v5  ;;  %v6404_v23 = vsel %vm1430_vm0, %v6403_v31, %v6402_v9  ;;  %v8884_v5 = vld [vmem:[#allocation11 + $0x24] ss:$8 sps:$4 sm:$0xff]   ;;  %v8882_v6 = vld [vmem:[#allocation11 + $0x20] ss:$8 sps:$4 sm:$0xff]  }
 0x3b6   :  { %v6253_v29 = vsel %vm1433_vm1, %v6252_v10, %v6251_v16  ;;  %v6406_v30 = vsel %vm1433_vm1, %v6405_v11, %v6404_v23  ;;  %v8890_v9 = vld [vmem:[#allocation11 + $0x44] ss:$8 sps:$4 sm:$0xff]   ;;  %v8888_v31 = vld [vmem:[#allocation11 + $0x40] ss:$8 sps:$4 sm:$0xff]   ;;  %v8891_v23 = vld [vmem:[#allocation11 + $0x50] ss:$8 sps:$4 sm:$0xff]  }
 0x3b7   :  { %6347 = vmatpush1.bf16.msra.mxu0 %v8840_v47  ;;  %6500 = vmatpush1.bf16.msra.mxu1 %v8843_v48  ;;  %v6255_v22 = vsel %vm1436_vm2, %v6254_v17, %v6253_v29  ;;  %v6408_v44 = vsel %vm1436_vm2, %v6407_v7, %v6406_v30  ;;  %v8870_v47 = vld [vmem:[#allocation8 + $0xf70] ss:$8 sps:$4 sm:$0xff]  }
 0x3b8   :  { %6348 = vmatprep.subr.bf16.mxu0 %v8848_v49  ;;  %6501 = vmatprep.subr.bf16.mxu1 %v8851_v50  ;;  %v6410_v46 = vsel %vm1439_vm3, %v6409_v32, %v6408_v44  ;;  %v8873_v48 = vld [vmem:[#allocation8 + $0xff0] ss:$8 sps:$4 sm:$0xff]   ;;  %v8900_v32 = vld [vmem:[#allocation11 + $0x80] ss:$8 sps:$4 sm:$0xff]  }
 0x3b9   :  { %v6412_v50 = vsel %vm1442_vm4, %v6411_v45, %v6410_v46  ;;  %v8893_v7 = vld [vmem:[#allocation11 + $0x54] ss:$8 sps:$4 sm:$0xff]   ;;  %v8897_v29 = vld [vmem:[#allocation11 + $0x70] ss:$8 sps:$4 sm:$0xff]   ;;  %v8902_v30 = vld [vmem:[#allocation11 + $0x84] ss:$8 sps:$4 sm:$0xff]  }
 0x3ba   :  { %v6413_v53 = vpack.c.b16 %v6412_v50, %v6412_v50 }
 0x3bb   :  { %6349 = vmatpush1.bf16.msra.mxu0 %v8846_v54  ;;  %6502 = vmatpush1.bf16.msra.mxu1 %v8849_v55 }
 0x3bc   :  { %6350 = vmatprep.subr.bf16.mxu0 %v8854_v57  ;;  %6503 = vmatprep.subr.bf16.mxu1 %v8857_v58 }
 0x3bf   :  { %6351 = vmatpush1.bf16.msra.mxu0 %v8852_v63  ;;  %6504 = vmatpush1.bf16.msra.mxu1 %v8855_v0  ;;  %v8876_v0 = vld [vmem:[#allocation11] ss:$8 sps:$4 sm:$0xff]  }
 0x3c0   :  { %6352 = vmatprep.subr.bf16.mxu0 %v8860_v1  ;;  %6505 = vmatprep.subr.bf16.mxu1 %v8863_v3  ;;  %v8878_v1 = vld [vmem:[#allocation11 + $0x4] ss:$8 sps:$4 sm:$0xff]   ;;  %v8881_v3 = vld [vmem:[#allocation11 + $0x14] ss:$8 sps:$4 sm:$0xff]  }
 0x3c1   :  { %v4119_v19 = vpop.f32.mrb[56].mxu0  ;;  %v4271_v2 = vpop.f32.mrb[56].mxu1 }
 0x3c2   :  { %v4126_v27 = vadd.f32 %v4119_v19, %v9578_v20  ;;  %v4121_v56 = vpop.f32.mrb[57].mxu0  ;;  %v4273_v28 = vpop.f32.mrb[57].mxu1  ;;  %v8872_v20 = vld [vmem:[#allocation8 + $0xf74] ss:$8 sps:$4 sm:$0xff]  }
 0x3c3   :  { %v4127_v33 = vadd.f32 %v4121_v56, %v9580_v26  ;;  %v4123_v34 = vpop.f32.mrb[58].mxu0  ;;  %v4275_v35 = vpop.f32.mrb[58].mxu1  ;;  %6353 = vmatpush1.bf16.msra.mxu0 %v8858_v12  ;;  %6506 = vmatpush1.bf16.msra.mxu1 %v8861_v13  ;;  %v6257_v26 = vsel %vm1439_vm3, %v6256_v21, %v6255_v22  ;;  %v8894_v56 = vld [vmem:[#allocation11 + $0x60] ss:$8 sps:$4 sm:$0xff]  }
 0x3c4   :  { %v4278_v39 = vadd.f32 %v4271_v2, %v4126_v27  ;;  %v4124_v18 = vpop.f32.mrb[59].mxu0  ;;  %v4276_v40 = vpop.f32.mrb[59].mxu1  ;;  %6354 = vmatprep.subr.bf16.mxu0 %v8866_v14  ;;  %6507 = vmatprep.subr.bf16.mxu1 %v8869_v15  ;;  %v6259_v49 = vsel %vm1442_vm4, %v6258_v51, %v6257_v26  ;;  %v8896_v27 = vld [vmem:[#allocation11 + $0x64] ss:$8 sps:$4 sm:$0xff]   ;;  %v8903_v34 = vld [vmem:[#allocation11 + $0x90] ss:$8 sps:$4 sm:$0xff]  }
 0x3c5   :  { %v4279_v43 = vadd.f32 %v4273_v28, %v4127_v33  ;;  %v6260_v52 = vpack.c.b16 %v6259_v49, %v6259_v49  ;;  %v8899_v28 = vld [vmem:[#allocation11 + $0x74] ss:$8 sps:$4 sm:$0xff]   ;;  %v8908_v35 = vld [vmem:[#allocation11 + $0xa4] ss:$8 sps:$4 sm:$0xff]   ;;  %v8912_v40 = vld [vmem:[#allocation11 + $0xc0] ss:$8 sps:$4 sm:$0xff]  }
 0x3c6   :  { %v8905_v33 = vld [vmem:[#allocation11 + $0x94] ss:$8 sps:$4 sm:$0xff]   ;;  %v8914_v18 = vld [vmem:[#allocation11 + $0xc4] ss:$8 sps:$4 sm:$0xff]  }
 0x3c7   :  { %6355 = vmatpush1.bf16.msra.mxu0 %v8864_v36  ;;  %6508 = vmatpush1.bf16.msra.mxu1 %v8867_v38  ;;  %v8906_v36 = vld [vmem:[#allocation11 + $0xa0] ss:$8 sps:$4 sm:$0xff]   ;;  %v8911_v38 = vld [vmem:[#allocation11 + $0xb4] ss:$8 sps:$4 sm:$0xff]  }
 0x3c8   :  { %6356 = vmatprep.subr.bf16.mxu0 %v8872_v20  ;;  %6509 = vmatprep.subr.bf16.mxu1 %v8875_v41 }
 0x3cb   :  { %6357 = vmatpush1.bf16.msra.mxu0 %v8870_v47  ;;  %6510 = vmatpush1.bf16.msra.mxu1 %v8873_v48 }
 0x3cc   :  { %6760 = vmatprep.subr.bf16.mxu0 %v8878_v1  ;;  %v8933_v1 = vld [vmem:[#allocation14 + $0x20] sm:$0xff]  }
 0x3ce   :  { %6375 = vmatmul.mubr.bf16.vlgmr.msra.gmra.mrb[84].mxu0 %v6260_v52  ;;  %6528 = vmatmul.mubr.bf16.vlgmr.msra.gmra.mrb[84].mxu1 %v6413_v53  ;;  %v8915_v52 = vld [vmem:[#allocation11 + $0xd0] ss:$8 sps:$4 sm:$0xff]   ;;  %v8917_v53 = vld [vmem:[#allocation11 + $0xd4] ss:$8 sps:$4 sm:$0xff]  }
 0x3cf   :  { %6761 = vmatpush1.bf16.msra.mxu0 %v8876_v0  ;;  %v8932_v0 = vld [vmem:[#allocation14 + $0x60] sm:$0xff]  }
 0x3d0   :  { %6762 = vmatprep.subr.bf16.mxu0 %v8881_v3  ;;  %v8934_v3 = vld [vmem:[#allocation14 + $0x68] sm:$0xff]  }
 0x3d3   :  { %6763 = vmatpush1.bf16.msra.mxu0 %v8879_v4 }
 0x3d4   :  { %6764 = vmatprep.subr.bf16.mxu0 %v8884_v5 }
 0x3d7   :  { %6765 = vmatpush1.bf16.msra.mxu0 %v8882_v6  ;;  %v8935_v6 = vld [vmem:[#allocation14 + $0x28] sm:$0xff]  }
 0x3d8   :  { %6766 = vmatprep.subr.bf16.mxu0 %v8887_v25 }
 0x3db   :  { %6767 = vmatpush1.bf16.msra.mxu0 %v8885_v8 }
 0x3dc   :  { %6768 = vmatprep.subr.bf16.mxu0 %v8890_v9 }
 0x3df   :  { %6769 = vmatpush1.bf16.msra.mxu0 %v8888_v31 }
 0x3e0   :  { %6770 = vmatprep.subr.bf16.mxu0 %v8893_v7 }
 0x3e1   :  { %v4441_v54 = vpop.f32.mrb[60].mxu0  ;;  %v4593_v55 = vpop.f32.mrb[60].mxu1 }
 0x3e2   :  { %v4448_v37 = vadd.f32 %v4441_v54, %v4278_v39  ;;  %v4443_v57 = vpop.f32.mrb[61].mxu0  ;;  %v4595_v58 = vpop.f32.mrb[61].mxu1  ;;  %v8909_v39 = vld [vmem:[#allocation11 + $0xb0] ss:$8 sps:$4 sm:$0xff]   ;;  %v8920_v54 = vld [vmem:[#allocation11 + $0xe4] ss:$8 sps:$4 sm:$0xff]  }
 0x3e3   :  { %v4449_v24 = vadd.f32 %v4443_v57, %v4279_v43  ;;  %v4445_v42 = vpop.f32.mrb[62].mxu0  ;;  %v4597_v59 = vpop.f32.mrb[62].mxu1  ;;  %6771 = vmatpush1.bf16.msra.mxu0 %v8891_v23  ;;  %v8925_v57 = vld [vmem:[#allocation14] sm:$0xff]  }
 0x3e4   :  { %v4600_v60 = vadd.f32 %v4593_v55, %v4448_v37  ;;  %v4446_v61 = vpop.f32.mrb[63].mxu0  ;;  %v4598_v62 = vpop.f32.mrb[63].mxu1  ;;  %6772 = vmatprep.subr.bf16.mxu0 %v8896_v27  ;;  %v8918_v55 = vld [vmem:[#allocation11 + $0xe0] ss:$8 sps:$4 sm:$0xff]   ;;  %v8921_v59 = vld [vmem:[#allocation11 + $0xf0] ss:$8 sps:$4 sm:$0xff]  }
 0x3e5   :  { %v4601_v63 = vadd.f32 %v4595_v58, %v4449_v24  ;;  %v8924_v37 = vld [vmem:[#allocation14 + $0x40] sm:$0xff]   ;;  %v8926_v58 = vld [vmem:[#allocation14 + $0x48] sm:$0xff]   ;;  %v8923_v24 = vld [vmem:[#allocation11 + $0xf4] ss:$8 sps:$4 sm:$0xff]  }
 0x3e6   :  { %7930 = vmatprep.subr.bf16.mxu1 %v8924_v37  ;;  %v8927_v42 = vld [vmem:[#allocation14 + $0x8] sm:$0xff]   ;;  %v8929_v61 = vld [vmem:[#allocation14 + $0x10] sm:$0xff]   ;;  %v8930_v62 = vld [vmem:[#allocation14 + $0x58] sm:$0xff]  }
 0x3e7   :  { %6773 = vmatpush1.bf16.msra.mxu0 %v8894_v56  ;;  %7931 = vmatpush3.bf16.msra.mxu1 %v8925_v57 }
 0x3e8   :  { %6774 = vmatprep.subr.bf16.mxu0 %v8899_v28  ;;  %7932 = vmatprep.subr.bf16.mxu1 %v8926_v58 }
 0x3eb   :  { %6775 = vmatpush1.bf16.msra.mxu0 %v8897_v29  ;;  %7933 = vmatpush3.bf16.msra.mxu1 %v8927_v42 }
 0x3ec   :  { %6776 = vmatprep.subr.bf16.mxu0 %v8902_v30 }
 0x3ef   :  { %6777 = vmatpush1.bf16.msra.mxu0 %v8900_v32 }
 0x3f0   :  { %6778 = vmatprep.subr.bf16.mxu0 %v8905_v33 }
 0x3f3   :  { %6779 = vmatpush1.bf16.msra.mxu0 %v8903_v34 }
 0x3f4   :  { %6780 = vmatprep.subr.bf16.mxu0 %v8908_v35 }
 0x3f7   :  { %6781 = vmatpush1.bf16.msra.mxu0 %v8906_v36 }
 0x3f8   :  { %6782 = vmatprep.subr.bf16.mxu0 %v8911_v38 }
 0x3fb   :  { %6783 = vmatpush1.bf16.msra.mxu0 %v8909_v39 }
 0x3fc   :  { %6784 = vmatprep.subr.bf16.mxu0 %v8914_v18 }
 0x3ff   :  { %6785 = vmatpush1.bf16.msra.mxu0 %v8912_v40 }
 0x400   :  { %6786 = vmatprep.subr.bf16.mxu0 %v8917_v53 }
 0x401   :  { %v4763_v10 = vpop.f32.mrb[64].mxu0  ;;  %v4915_v11 = vpop.f32.mrb[64].mxu1 }
 0x402   :  { %v4770_v12 = vadd.f32 %v4763_v10, %v4600_v60  ;;  %v4765_v13 = vpop.f32.mrb[65].mxu0  ;;  %v4917_v14 = vpop.f32.mrb[65].mxu1  ;;  %v8928_v60 = vld [vmem:[#allocation14 + $0x50] sm:$0xff]  }
 0x403   :  { %v4771_v15 = vadd.f32 %v4765_v13, %v4601_v63  ;;  %v4767_v16 = vpop.f32.mrb[66].mxu0  ;;  %v4919_v17 = vpop.f32.mrb[66].mxu1  ;;  %6787 = vmatpush1.bf16.msra.mxu0 %v8915_v52  ;;  %7934 = vmatprep.subr.bf16.mxu1 %v8928_v60  ;;  %v8931_v63 = vld [vmem:[#allocation14 + $0x18] sm:$0xff]  }
 0x404   :  { %v4922_v19 = vadd.f32 %v4915_v11, %v4770_v12  ;;  %v4768_v2 = vpop.f32.mrb[67].mxu0  ;;  %v4920_v21 = vpop.f32.mrb[67].mxu1  ;;  %6788 = vmatprep.subr.bf16.mxu0 %v8920_v54  ;;  %7935 = vmatpush3.bf16.msra.mxu1 %v8929_v61 }
 0x405   :  { %v4923_v51 = vadd.f32 %v4917_v14, %v4771_v15  ;;  %7936 = vmatprep.subr.bf16.mxu1 %v8930_v62 }
 0x407   :  { %6789 = vmatpush1.bf16.msra.mxu0 %v8918_v55 }
 0x408   :  { %6790 = vmatprep.subr.bf16.mxu0 %v8923_v24  ;;  %7937 = vmatpush3.bf16.msra.mxu1 %v8931_v63 }
 0x409   :  { %7938 = vmatprep.subr.bf16.mxu1 %v8932_v0 }
 0x40b   :  { %6791 = vmatpush1.bf16.msra.mxu0 %v8921_v59 }
 0x40c   :  { %7939 = vmatpush3.bf16.msra.mxu1 %v8933_v1  ;;  %v8936_v1 = vld [vmem:[#allocation14 + $0x70] sm:$0xff]  }
 0x40d   :  { %7940 = vmatprep.subr.bf16.mxu1 %v8934_v3  ;;  %v8937_v3 = vld [vmem:[#allocation14 + $0x30] sm:$0xff]  }
 0x410   :  { %7941 = vmatpush3.bf16.msra.mxu1 %v8935_v6  ;;  %v6588_v6 = vld [vmem:[#allocation12] sm:$0x3] }
 0x411   :  { %7942 = vmatprep.subr.bf16.mxu1 %v8936_v1 }
 0x414   :  { %7943 = vmatpush3.bf16.msra.mxu1 %v8937_v3 }
 0x421   :  { %v5086_v20 = vpop.f32.mrb[68].mxu0  ;;  %v5239_v41 = vpop.f32.mrb[68].mxu1 }
 0x422   :  { %v5093_v43 = vadd.f32 %v5086_v20, %v4922_v19  ;;  %v5088_v22 = vpop.f32.mrb[69].mxu0  ;;  %v5241_v44 = vpop.f32.mrb[69].mxu1 }
 0x423   :  { %v5094_v45 = vadd.f32 %v5088_v22, %v4923_v51  ;;  %v5090_v26 = vpop.f32.mrb[70].mxu0  ;;  %v5243_v46 = vpop.f32.mrb[70].mxu1 }
 0x424   :  { %v5246_v47 = vadd.f32 %v5239_v41, %v5093_v43  ;;  %v5091_v48 = vpop.f32.mrb[71].mxu0  ;;  %v5244_v49 = vpop.f32.mrb[71].mxu1  ;;  %v6540_v43 = vlaneseq }
 0x425   :  { %v5247_v50 = vadd.f32 %v5241_v44, %v5094_v45  ;;  %v6538_v45 = vld [vmem:[#allocation9] sm:$0x3] }
 0x426   :  { %v6541_v22 = vshrl.u32 %v6540_v43, 7 }
 0x428   :  { %v6542_v44 = vsub.s32 0, %v6541_v22  ;;  %v6546_v26 = vsub.s32 1, %v6541_v22 }
 0x42a   :  { %v6543_v49 = vrot.slane %v6538_v45, %v6542_v44  ;;  %v6547_v54 = vrot.slane %v6538_v45, %v6546_v26 }
 0x441   :  { %v5409_v4 = vpop.f32.mrb[72].mxu0  ;;  %v5561_v5 = vpop.f32.mrb[72].mxu1 }
 0x442   :  { %v5416_v25 = vadd.f32 %v5409_v4, %v5246_v47  ;;  %v5411_v8 = vpop.f32.mrb[73].mxu0  ;;  %v5563_v9 = vpop.f32.mrb[73].mxu1  ;;  %v8938_v4 = vld [vmem:[#allocation14 + $0x78] sm:$0xff]  }
 0x443   :  { %v5417_v31 = vadd.f32 %v5411_v8, %v5247_v50  ;;  %v5413_v10 = vpop.f32.mrb[74].mxu0  ;;  %v5565_v11 = vpop.f32.mrb[74].mxu1  ;;  %7944 = vmatprep.subr.bf16.mxu1 %v8938_v4  ;;  %v6597_v8 = vrot.slane %v6588_v6, %v6546_v26 }
 0x444   :  { %v5568_v12 = vadd.f32 %v5561_v5, %v5416_v25  ;;  %v5414_v13 = vpop.f32.mrb[75].mxu0  ;;  %v5566_v14 = vpop.f32.mrb[75].mxu1  ;;  %v8939_v5 = vld [vmem:[#allocation14 + $0x38] sm:$0xff]   ;;  %v6593_v25 = vrot.slane %v6588_v6, %v6542_v44 }
 0x445   :  { %v5569_v15 = vadd.f32 %v5563_v9, %v5417_v31  ;;  %7945 = vmatpush3.bf16.msra.mxu1 %v8939_v5 }
 0x461   :  { %v5731_v16 = vpop.f32.mrb[76].mxu0  ;;  %v5883_v17 = vpop.f32.mrb[76].mxu1 }
 0x462   :  { %v5738_v19 = vadd.f32 %v5731_v16, %v5568_v12  ;;  %v5733_v2 = vpop.f32.mrb[77].mxu0  ;;  %v5885_v21 = vpop.f32.mrb[77].mxu1 }
 0x463   :  { %v5739_v51 = vadd.f32 %v5733_v2, %v5569_v15  ;;  %v5735_v23 = vpop.f32.mrb[78].mxu0  ;;  %v5887_v7 = vpop.f32.mrb[78].mxu1 }
 0x464   :  { %v5890_v27 = vadd.f32 %v5883_v17, %v5738_v19  ;;  %v5736_v56 = vpop.f32.mrb[79].mxu0  ;;  %v5888_v28 = vpop.f32.mrb[79].mxu1  ;;  %v9186_v19 = vmov 0.0  }
 0x465   :  { %v5891_v29 = vadd.f32 %v5885_v21, %v5739_v51  ;;  %7954 = vmatprep.subr.mxu1 %v9186_v19  ;;  %v7743_v21 = vld [vmem:[#allocation15] ss:$0 sm:$0xff]  ;;  %v6980_v28 = vld [vmem:[#allocation17] sm:$0x7] }
 0x481   :  { %v6053_v30 = vpop.f32.mrb[80].mxu0  ;;  %v6205_v32 = vpop.f32.mrb[80].mxu1 }
 0x482   :  { %v6060_v33 = vadd.f32 %v6053_v30, %v5890_v27  ;;  %v6055_v34 = vpop.f32.mrb[81].mxu0  ;;  %v6207_v35 = vpop.f32.mrb[81].mxu1 }
 0x483   :  { %v6061_v36 = vadd.f32 %v6055_v34, %v5891_v29  ;;  %v6057_v38 = vpop.f32.mrb[82].mxu0  ;;  %v6209_v39 = vpop.f32.mrb[82].mxu1 }
 0x484   :  { %v6212_v18 = vadd.f32 %v6205_v32, %v6060_v33  ;;  %v6058_v40 = vpop.f32.mrb[83].mxu0  ;;  %v6210_v20 = vpop.f32.mrb[83].mxu1 }
 0x485   :  { %v6213_v41 = vadd.f32 %v6207_v35, %v6061_v36 }
 0x4a1   :  { %v6376_v46 = vpop.f32.mrb[84].mxu0  ;;  %v6529_v47 = vpop.f32.mrb[84].mxu1 }
 0x4a2   :  { %v6383_v48 = vadd.f32 %v6376_v46, %v6212_v18  ;;  %v6378_v50 = vpop.f32.mrb[85].mxu0  ;;  %v6531_v52 = vpop.f32.mrb[85].mxu1 }
 0x4a3   :  { %v6384_v53 = vadd.f32 %v6378_v50, %v6213_v41  ;;  %v6380_v55 = vpop.f32.mrb[86].mxu0  ;;  %v6533_v37 = vpop.f32.mrb[86].mxu1 }
 0x4a4   :  { %v6536_v57 = vadd.f32 %v6529_v47, %v6383_v48  ;;  %v6381_v58 = vpop.f32.mrb[87].mxu0  ;;  %v6534_v24 = vpop.f32.mrb[87].mxu1 }
 0x4a5   :  { %v6537_v42 = vadd.f32 %v6531_v52, %v6384_v53 }
 0x4a6   :  { %v6550_v59 = vadd.f32 %v6543_v49, %v6536_v57 }
 0x4a7   :  { %v6551_v60 = vadd.f32 %v6547_v54, %v6537_v42 }
 0x4a8   :  { %v6552_v61 = vmax.f32 %v6550_v59, 0.0 }
 0x4a9   :  { %v6553_v62 = vmax.f32 %v6551_v60, 0.0 }
 0x4aa   :  { %v6554_v0 = vpack.c.bf16 %v6552_v61, %v6552_v61 }
 0x4ab   :  { %v6555_v63 = vpack.c.bf16 %v6553_v62, %v6553_v62 }
 0x4ad   :  { %6792 = vmatprep.mubr.bf16.mxu0 %v6555_v63 }
 0x4ae   :  { %6793 = vmatmul.mubr.bf16.vlgmr.msra.gmra.mrb[88].mxu0 %v6554_v0 }
 0x581   :  { %v6794_v9 = vpop.f32.mrb[88].mxu0 }
 0x582   :  { %v6795_v31 = vadd.f32 %v6794_v9, %v6593_v25  ;;  %v6796_v10 = vpop.f32.mrb[89].mxu0 }
 0x583   :  { %v6797_v11 = vadd.f32 %v6796_v10, %v6597_v8  ;;  %v6798_v12 = vpop.f32.mrb[90].mxu0 }
 0x584   :  { %v6801_v13 = vmax.f32 %v6795_v31, 0.0  ;;  %v6799_v14 = vpop.f32.mrb[91].mxu0 }
 0x585   :  { %v6802_v15 = vmax.f32 %v6797_v11, 0.0 }
 0x586   :  { %v6803_v17 = vpack.c.bf16 %v6801_v13, %v6801_v13 }
 0x587   :  { %v6804_v16 = vpack.c.bf16 %v6802_v15, %v6802_v15 }
 0x589   :  { %6972 = vmatprep.mubr.bf16.mxu1 %v6804_v16 }
 0x58a   :  { %6973 = vmatmul.mubr.bf16.vlgmr.msra.gmra.mrb[88].mxu1 %v6803_v17 }
 0x58b   :  { %7956 = vmatprep.mubr.msk.f32.mxu1 %vm9187_vm5, %v9186_v19 }
 0x65d   :  { %v7946_v2 = vpop.f32.mrb[88].mxu1 }
 0x65e   :  { %v7947_v51 = vpop.f32.mrb[89].mxu1 }
 0x65f   :  { %v7948_v23 = vadd.f32 %v7947_v51, %v7946_v2  ;;  %v7949_v7 = vpop.f32.mrb[90].mxu1 }
 0x660   :  { %v7950_v27 = vpop.f32.mrb[91].mxu1 }
 0x661   :  { %v6975_v56 = vadd.f32 %v7948_v23, %v7743_v21 }
 0x663   :  { %7955 = vmatpush3.msk.msra.mxu1 %vm6985_vm6, %v6975_v56 }
 0x664   :  { %7957 = vmatmul.mubr.msk.f32.vlgmr.msra.gmra.mrb[92].mxu1 %vm6981_vm7, %v6980_v28 }
 0x737   :  { %v7055_v29 = vpop.f32.mrb[92].mxu1 }
 0x738   :  { %7059 = vst [vmem:[#allocation18] sm:$0x7] %v7055_v29  ;;  %v7958_v30 = vpop.f32.mrb[93].mxu1 }
 0x739   :  { %9149 = shalt.err (!%p9146_p6)
}
 0x73a   :  { %s9150_s12 = scalar_lea.hbm %s9623_s9, 64 }
 0x73b   :  { %p9151_p7 = scmp.ne.s32.totalorder %s9623_s9, %s9150_s12  ;;  %p9154_p8 = scmp.lt.u32.totalorder %s9150_s12, %s9623_s9 }
 0x73d   :  { %p9156_p9 = pnand %p9154_p8, %p9151_p7 }
 0x73f   :  { %9159 = shalt.err (!%p9156_p9)
}
 0x740   :  { %7069 = dma.vmem_to_hbm [thread:$0]  %s7067_s20, 64, %s9623_s9, [#allocation5]  }
 0x741   :  { %9170 = dma.done.wait [#allocation5], 64  }
 0x742   :  { %9171 = vsyncadd [#allocation5], 4294967232 }
 0x743   :  { %7073 = vsyncpa [#allocation4], 1 }
 0x744   :  { %7074 = vsyncpa [#allocation7], 1 }
 0x745   :  { %7075 = vsyncpa [#allocation10], 1 }
 0x746   :  { %7076 = vsyncpa [#allocation13], 1 }
 0x747   :  { %7077 = vsyncpa [#allocation16], 1 }
 0x748   :  { %7078 = vsyncpa [#allocation5], 1 }

</bundles_post_ra>
